<compile_context>
chip_gen: v6e
topology: v6e:2x2x1
jax: 0.10.0
libtpu: 0.0.40
codegen_flags: <defaults>
</compile_context>

<pallas_src>
import jax
import jax.numpy as jnp
from jax.experimental import pallas as pl
from jax.experimental.pallas import tpu as pltpu

VOCAB = 128    # synthetic vocabulary (module derives it from the corpus)
HIDDEN = 256   # matches the module's hidden_size
SEQ_LEN = 8    # example sequence length for the demo


def _encoder_gru_kernel(tok_ref,     # SMEM (T,)    int32 token ids
                        emb_ref,     # VMEM (V, H)  f32  embedding table (resident)
                        wih_ref,     # VMEM (H, 3H) bf16 = weight_ih_l0.T  [r|z|n]
                        whh_ref,     # VMEM (H, 3H) bf16 = weight_hh_l0.T
                        bias_i_ref,  # VMEM (1, 3H) f32  b_ih with b_hh[r,z] folded in
                        bhn_ref,     # VMEM (1, H)  f32  b_hn (stays inside r*(...))
                        h0_ref,      # VMEM (1, H)  f32  initial hidden state
                        out_ref,     # VMEM (T, H)  f32  h_t for every step
                        x_scr):      # VMEM (T, H)  f32  scratch: gathered embeddings
    T, H = out_ref.shape

    # ---- Prologue (off the serial path) -------------------------------------
    # Gather the embedding row of every token from the resident table.
    for t in range(T):
        x_scr[pl.ds(t, 1), :] = emb_ref[pl.ds(tok_ref[t], 1), :]

    # One batched MXU matmul for the whole input-to-hidden path (M=T rows).
    gi_all = jnp.dot(x_scr[...].astype(wih_ref.dtype), wih_ref[...],
                     preferred_element_type=jnp.float32) + bias_i_ref[...]

    b_hn = bhn_ref[...]                      # (1, H), hoisted out of the loop
    h = h0_ref[...]                          # (1, H) f32, carried in vregs

    # ---- Serial GRU recurrence (fully unrolled, h lives in registers) -------
    for t in range(T):
        gh = jnp.dot(h.astype(whh_ref.dtype), whh_ref[...],
                     preferred_element_type=jnp.float32)        # (1, 3H) f32
        gi = gi_all[t:t + 1, :]                                  # (1, 3H) f32

        r = jax.nn.sigmoid(gi[:, 0:H] + gh[:, 0:H])
        z = jax.nn.sigmoid(gi[:, H:2 * H] + gh[:, H:2 * H])
        n = jnp.tanh(gi[:, 2 * H:3 * H] + r * (gh[:, 2 * H:3 * H] + b_hn))
        h = (1.0 - z) * n + z * h

        out_ref[pl.ds(t, 1), :] = h


def encoder_rnn_forward(tokens, hidden, params):
    """Runs the EncoderRNN forward over a token sequence in one pallas_call.

    tokens : int32 (T,) token indices (T=1 reproduces module.forward exactly)
    hidden : (1, 1, H) float32 initial hidden state
    returns (outputs (T, 1, H), final hidden (1, 1, H))
    """
    emb = params["embedding"]          # (V, H)  f32
    wih_t = params["wih_t"]            # (H, 3H) bf16
    whh_t = params["whh_t"]            # (H, 3H) bf16
    bih, bhh = params["bih"], params["bhh"]   # (1, 3H) f32 each

    tokens = jnp.asarray(tokens, jnp.int32).reshape(-1)
    T = int(tokens.shape[0])
    H = hidden.shape[-1]
    h0 = hidden.reshape(1, H).astype(jnp.float32)

    # Fold the r/z hidden biases into the precomputed input gates; only b_hn
    # must remain on the recurrent side (inside r * (...)).
    bias_i = jnp.concatenate([bih[:, :2 * H] + bhh[:, :2 * H], bih[:, 2 * H:]], axis=1)
    b_hn = bhh[:, 2 * H:]

    vmem = pl.BlockSpec(memory_space=pltpu.MemorySpace.VMEM)
    smem = pl.BlockSpec(memory_space=pltpu.MemorySpace.SMEM)

    out = pl.pallas_call(
        _encoder_gru_kernel,
        out_shape=jax.ShapeDtypeStruct((T, H), jnp.float32),
        in_specs=[smem, vmem, vmem, vmem, vmem, vmem, vmem],
        out_specs=vmem,
        scratch_shapes=[pltpu.VMEM((T, H), jnp.float32)],
    )(tokens, emb, wih_t, whh_t, bias_i, b_hn, h0)

    outputs = out.reshape(T, 1, H)
    hidden_out = out[T - 1].reshape(1, 1, H)
    return outputs, hidden_out


def encoder_rnn_step(token, hidden, params):
    """Exact equivalent of EncoderRNN.forward(input, hidden) -> (output, hidden)."""
    outputs, h_new = encoder_rnn_forward(
        jnp.asarray(token, jnp.int32).reshape(1), hidden, params)
    return outputs.reshape(1, 1, hidden.shape[-1]), h_new


def init_params(key, vocab=VOCAB, hidden=HIDDEN):
    """Deterministic synthetic parameters (shapes match nn.Embedding + nn.GRU)."""
    k_emb, k_wih, k_whh, k_bih, k_bhh = jax.random.split(key, 5)
    bound = 1.0 / jnp.sqrt(hidden)
    emb = jax.random.normal(k_emb, (vocab, hidden), jnp.float32)
    # torch weight_ih_l0 / weight_hh_l0 are (3H, H); we store their transpose in bf16.
    wih = jax.random.uniform(k_wih, (3 * hidden, hidden), jnp.float32, -bound, bound)
    whh = jax.random.uniform(k_whh, (3 * hidden, hidden), jnp.float32, -bound, bound)
    bih = jax.random.uniform(k_bih, (1, 3 * hidden), jnp.float32, -bound, bound)
    bhh = jax.random.uniform(k_bhh, (1, 3 * hidden), jnp.float32, -bound, bound)
    return {"embedding": emb,
            "wih_t": wih.T.astype(jnp.bfloat16),
            "whh_t": whh.T.astype(jnp.bfloat16),
            "bih": bih, "bhh": bhh}


def reference_forward(tokens, hidden, params):
    """Pure-JAX reference of the same recurrent forward pass (same bf16 casts)."""
    H = hidden.shape[-1]
    h = hidden.reshape(1, H).astype(jnp.float32)
    wih, whh = params["wih_t"], params["whh_t"]
    outs = []
    for i in range(tokens.shape[0]):
        x = params["embedding"][tokens[i]].reshape(1, H)
        gi = jnp.dot(x.astype(wih.dtype), wih,
                     preferred_element_type=jnp.float32) + params["bih"]
        gh = jnp.dot(h.astype(whh.dtype), whh,
                     preferred_element_type=jnp.float32) + params["bhh"]
        i_r, i_z, i_n = gi[:, :H], gi[:, H:2 * H], gi[:, 2 * H:]
        h_r, h_z, h_n = gh[:, :H], gh[:, H:2 * H], gh[:, 2 * H:]
        r = jax.nn.sigmoid(i_r + h_r)
        z = jax.nn.sigmoid(i_z + h_z)
        n = jnp.tanh(i_n + r * h_n)
        h = (1.0 - z) * n + z * h
        outs.append(h)
    return jnp.stack(outs, axis=0), h.reshape(1, 1, H)


# TODO(synk): prepareData()/Lang corpus construction, addConfusion() file I/O and
# the Adam optimizer are training/data-side and have no Pallas equivalent.

if __name__ == "__main__":
    key = jax.random.PRNGKey(0)
    k_params, k_tok = jax.random.split(key)
    params = init_params(k_params)

    tokens = jax.random.randint(k_tok, (SEQ_LEN,), 0, VOCAB, jnp.int32)
    hidden0 = jnp.zeros((1, 1, HIDDEN), jnp.float32)      # initHidden()

    # Full-sequence kernel: one pallas_call, one batched gi matmul, unrolled recurrence.
    outs, h_final = encoder_rnn_forward(tokens, hidden0, params)
    outs = jax.block_until_ready(outs)
    h_final = jax.block_until_ready(h_final)

    ref_outs, ref_h = reference_forward(tokens, hidden0, params)
    assert outs.shape == (SEQ_LEN, 1, HIDDEN) and h_final.shape == (1, 1, HIDDEN)
    assert jnp.allclose(outs, ref_outs, atol=1e-2), "sequence output mismatch vs reference"
    assert jnp.allclose(h_final, ref_h, atol=1e-2), "final hidden mismatch vs reference"

    # Single-step path: identical semantics to EncoderRNN.forward(input, hidden).
    out1, h1 = encoder_rnn_step(jnp.int32(7), hidden0, params)
    out1 = jax.block_until_ready(out1)
    h1 = jax.block_until_ready(h1)
    ref_out1, ref_h1 = reference_forward(jnp.array([7], jnp.int32), hidden0, params)
    assert jnp.allclose(out1, ref_out1.reshape(1, 1, HIDDEN), atol=1e-2)
    assert jnp.allclose(h1, ref_h1, atol=1e-2)

    print("KERNEL_OK")
</pallas_src>

<mosaic_0001>
module attributes {stable_mosaic.version = 11 : i64} {
  func.func @_encoder_gru_kernel(%arg0: memref<8xi32, #tpu.memory_space<smem>>, %arg1: memref<128x256xf32, #tpu.memory_space<vmem>>, %arg2: memref<256x768xbf16, #tpu.memory_space<vmem>>, %arg3: memref<256x768xbf16, #tpu.memory_space<vmem>>, %arg4: memref<1x768xf32, #tpu.memory_space<vmem>>, %arg5: memref<1x256xf32, #tpu.memory_space<vmem>>, %arg6: memref<1x256xf32, #tpu.memory_space<vmem>>, %arg7: memref<8x256xf32, #tpu.memory_space<vmem>>, %arg8: memref<8x256xf32, #tpu.memory_space<vmem>>) attributes {dimension_semantics = [], scalar_prefetch = 0 : i64, scratch_operands = 1 : i64, tpu.core_type = #tpu.core_type<tc>} {
    %c0 = arith.constant 0 : index
    %0 = memref.load %arg0[%c0] : memref<8xi32, #tpu.memory_space<smem>>
    %1 = arith.index_cast %0 : i32 to index
    %c0_0 = arith.constant 0 : index
    %2 = vector.load %arg1[%1, %c0_0] : memref<128x256xf32, #tpu.memory_space<vmem>>, vector<1x256xf32>
    %c0_1 = arith.constant 0 : index
    %c0_2 = arith.constant 0 : index
    %3 = vector.load %arg8[%c0_1, %c0_2] : memref<8x256xf32, #tpu.memory_space<vmem>>, vector<1x256xf32>
    tpu.vector_store %arg8[%c0_1, %c0_2], %2 {strides = array<i32>} : memref<8x256xf32, #tpu.memory_space<vmem>>, vector<1x256xf32>,
    %c1 = arith.constant 1 : index
    %4 = memref.load %arg0[%c1] : memref<8xi32, #tpu.memory_space<smem>>
    %5 = arith.index_cast %4 : i32 to index
    %c0_3 = arith.constant 0 : index
    %6 = vector.load %arg1[%5, %c0_3] : memref<128x256xf32, #tpu.memory_space<vmem>>, vector<1x256xf32>
    %c1_4 = arith.constant 1 : index
    %c0_5 = arith.constant 0 : index
    %7 = vector.load %arg8[%c1_4, %c0_5] : memref<8x256xf32, #tpu.memory_space<vmem>>, vector<1x256xf32>
    tpu.vector_store %arg8[%c1_4, %c0_5], %6 {strides = array<i32>} : memref<8x256xf32, #tpu.memory_space<vmem>>, vector<1x256xf32>,
    %c2 = arith.constant 2 : index
    %8 = memref.load %arg0[%c2] : memref<8xi32, #tpu.memory_space<smem>>
    %9 = arith.index_cast %8 : i32 to index
    %c0_6 = arith.constant 0 : index
    %10 = vector.load %arg1[%9, %c0_6] : memref<128x256xf32, #tpu.memory_space<vmem>>, vector<1x256xf32>
    %c2_7 = arith.constant 2 : index
    %c0_8 = arith.constant 0 : index
    %11 = vector.load %arg8[%c2_7, %c0_8] : memref<8x256xf32, #tpu.memory_space<vmem>>, vector<1x256xf32>
    tpu.vector_store %arg8[%c2_7, %c0_8], %10 {strides = array<i32>} : memref<8x256xf32, #tpu.memory_space<vmem>>, vector<1x256xf32>,
    %c3 = arith.constant 3 : index
    %12 = memref.load %arg0[%c3] : memref<8xi32, #tpu.memory_space<smem>>
    %13 = arith.index_cast %12 : i32 to index
    %c0_9 = arith.constant 0 : index
    %14 = vector.load %arg1[%13, %c0_9] : memref<128x256xf32, #tpu.memory_space<vmem>>, vector<1x256xf32>
    %c3_10 = arith.constant 3 : index
    %c0_11 = arith.constant 0 : index
    %15 = vector.load %arg8[%c3_10, %c0_11] : memref<8x256xf32, #tpu.memory_space<vmem>>, vector<1x256xf32>
    tpu.vector_store %arg8[%c3_10, %c0_11], %14 {strides = array<i32>} : memref<8x256xf32, #tpu.memory_space<vmem>>, vector<1x256xf32>,
    %c4 = arith.constant 4 : index
    %16 = memref.load %arg0[%c4] : memref<8xi32, #tpu.memory_space<smem>>
    %17 = arith.index_cast %16 : i32 to index
    %c0_12 = arith.constant 0 : index
    %18 = vector.load %arg1[%17, %c0_12] : memref<128x256xf32, #tpu.memory_space<vmem>>, vector<1x256xf32>
    %c4_13 = arith.constant 4 : index
    %c0_14 = arith.constant 0 : index
    %19 = vector.load %arg8[%c4_13, %c0_14] : memref<8x256xf32, #tpu.memory_space<vmem>>, vector<1x256xf32>
    tpu.vector_store %arg8[%c4_13, %c0_14], %18 {strides = array<i32>} : memref<8x256xf32, #tpu.memory_space<vmem>>, vector<1x256xf32>,
    %c5 = arith.constant 5 : index
    %20 = memref.load %arg0[%c5] : memref<8xi32, #tpu.memory_space<smem>>
    %21 = arith.index_cast %20 : i32 to index
    %c0_15 = arith.constant 0 : index
    %22 = vector.load %arg1[%21, %c0_15] : memref<128x256xf32, #tpu.memory_space<vmem>>, vector<1x256xf32>
    %c5_16 = arith.constant 5 : index
    %c0_17 = arith.constant 0 : index
    %23 = vector.load %arg8[%c5_16, %c0_17] : memref<8x256xf32, #tpu.memory_space<vmem>>, vector<1x256xf32>
    tpu.vector_store %arg8[%c5_16, %c0_17], %22 {strides = array<i32>} : memref<8x256xf32, #tpu.memory_space<vmem>>, vector<1x256xf32>,
    %c6 = arith.constant 6 : index
    %24 = memref.load %arg0[%c6] : memref<8xi32, #tpu.memory_space<smem>>
    %25 = arith.index_cast %24 : i32 to index
    %c0_18 = arith.constant 0 : index
    %26 = vector.load %arg1[%25, %c0_18] : memref<128x256xf32, #tpu.memory_space<vmem>>, vector<1x256xf32>
    %c6_19 = arith.constant 6 : index
    %c0_20 = arith.constant 0 : index
    %27 = vector.load %arg8[%c6_19, %c0_20] : memref<8x256xf32, #tpu.memory_space<vmem>>, vector<1x256xf32>
    tpu.vector_store %arg8[%c6_19, %c0_20], %26 {strides = array<i32>} : memref<8x256xf32, #tpu.memory_space<vmem>>, vector<1x256xf32>,
    %c7 = arith.constant 7 : index
    %28 = memref.load %arg0[%c7] : memref<8xi32, #tpu.memory_space<smem>>
    %29 = arith.index_cast %28 : i32 to index
    %c0_21 = arith.constant 0 : index
    %30 = vector.load %arg1[%29, %c0_21] : memref<128x256xf32, #tpu.memory_space<vmem>>, vector<1x256xf32>
    %c7_22 = arith.constant 7 : index
    %c0_23 = arith.constant 0 : index
    %31 = vector.load %arg8[%c7_22, %c0_23] : memref<8x256xf32, #tpu.memory_space<vmem>>, vector<1x256xf32>
    tpu.vector_store %arg8[%c7_22, %c0_23], %30 {strides = array<i32>} : memref<8x256xf32, #tpu.memory_space<vmem>>, vector<1x256xf32>,
    %c0_24 = arith.constant 0 : index
    %c0_25 = arith.constant 0 : index
    %32 = vector.load %arg8[%c0_24, %c0_25] : memref<8x256xf32, #tpu.memory_space<vmem>>, vector<8x256xf32>
    %33 = arith.truncf %32 : vector<8x256xf32> to vector<8x256xbf16>
    %c0_26 = arith.constant 0 : index
    %c0_27 = arith.constant 0 : index
    %34 = vector.load %arg2[%c0_26, %c0_27] : memref<256x768xbf16, #tpu.memory_space<vmem>>, vector<256x768xbf16>
    %cst = arith.constant dense<0.000000e+00> : vector<8x768xf32>
    %35 = tpu.matmul %33, %34, %cst {dimension_numbers = #tpu.dot_dimension_numbers<[1], [0], [0], [1], [0, 0, 1, 1], [], []>} : vector<8x256xbf16>, vector<256x768xbf16>, vector<8x768xf32> -> vector<8x768xf32>
    %c0_28 = arith.constant 0 : index
    %c0_29 = arith.constant 0 : index
    %36 = vector.load %arg4[%c0_28, %c0_29] : memref<1x768xf32, #tpu.memory_space<vmem>>, vector<1x768xf32>
    %37 = vector.broadcast %36 : vector<1x768xf32> to vector<8x768xf32>
    %38 = arith.addf %35, %37 : vector<8x768xf32>
    %c0_30 = arith.constant 0 : index
    %c0_31 = arith.constant 0 : index
    %39 = vector.load %arg5[%c0_30, %c0_31] : memref<1x256xf32, #tpu.memory_space<vmem>>, vector<1x256xf32>
    %c0_32 = arith.constant 0 : index
    %c0_33 = arith.constant 0 : index
    %40 = vector.load %arg6[%c0_32, %c0_33] : memref<1x256xf32, #tpu.memory_space<vmem>>, vector<1x256xf32>
    %41 = arith.truncf %40 : vector<1x256xf32> to vector<1x256xbf16>
    %c0_34 = arith.constant 0 : index
    %c0_35 = arith.constant 0 : index
    %42 = vector.load %arg3[%c0_34, %c0_35] : memref<256x768xbf16, #tpu.memory_space<vmem>>, vector<256x768xbf16>
    %cst_36 = arith.constant dense<0.000000e+00> : vector<1x768xf32>
    %43 = tpu.matmul %41, %42, %cst_36 {dimension_numbers = #tpu.dot_dimension_numbers<[1], [0], [0], [1], [0, 0, 1, 1], [], []>} : vector<1x256xbf16>, vector<256x768xbf16>, vector<1x768xf32> -> vector<1x768xf32>
    %44 = vector.extract_strided_slice %38 {offsets = [0, 0], sizes = [1, 768], strides = [1, 1]} : vector<8x768xf32> to vector<1x768xf32>
    %45 = vector.extract_strided_slice %44 {offsets = [0, 0], sizes = [1, 256], strides = [1, 1]} : vector<1x768xf32> to vector<1x256xf32>
    %46 = vector.extract_strided_slice %43 {offsets = [0, 0], sizes = [1, 256], strides = [1, 1]} : vector<1x768xf32> to vector<1x256xf32>
    %47 = arith.addf %45, %46 : vector<1x256xf32>
    %48 = arith.negf %47 : vector<1x256xf32>
    %49 = math.exp %48 : vector<1x256xf32>
    %cst_37 = arith.constant 1.000000e+00 : f32
    %50 = vector.broadcast %cst_37 : f32 to vector<1x256xf32>
    %51 = arith.addf %50, %49 : vector<1x256xf32>
    %52 = arith.divf %50, %51 : vector<1x256xf32>
    %53 = vector.extract_strided_slice %44 {offsets = [0, 256], sizes = [1, 256], strides = [1, 1]} : vector<1x768xf32> to vector<1x256xf32>
    %54 = vector.extract_strided_slice %43 {offsets = [0, 256], sizes = [1, 256], strides = [1, 1]} : vector<1x768xf32> to vector<1x256xf32>
    %55 = arith.addf %53, %54 : vector<1x256xf32>
    %56 = arith.negf %55 : vector<1x256xf32>
    %57 = math.exp %56 : vector<1x256xf32>
    %cst_38 = arith.constant 1.000000e+00 : f32
    %58 = vector.broadcast %cst_38 : f32 to vector<1x256xf32>
    %59 = arith.addf %58, %57 : vector<1x256xf32>
    %60 = arith.divf %58, %59 : vector<1x256xf32>
    %61 = vector.extract_strided_slice %44 {offsets = [0, 512], sizes = [1, 256], strides = [1, 1]} : vector<1x768xf32> to vector<1x256xf32>
    %62 = vector.extract_strided_slice %43 {offsets = [0, 512], sizes = [1, 256], strides = [1, 1]} : vector<1x768xf32> to vector<1x256xf32>
    %63 = arith.addf %62, %39 : vector<1x256xf32>
    %64 = arith.mulf %52, %63 : vector<1x256xf32>
    %65 = arith.addf %61, %64 : vector<1x256xf32>
    %66 = math.tanh %65 : vector<1x256xf32>
    %cst_39 = arith.constant 1.000000e+00 : f32
    %67 = vector.broadcast %cst_39 : f32 to vector<1x256xf32>
    %68 = arith.subf %67, %60 : vector<1x256xf32>
    %69 = arith.mulf %68, %66 : vector<1x256xf32>
    %70 = arith.mulf %60, %40 : vector<1x256xf32>
    %71 = arith.addf %69, %70 : vector<1x256xf32>
    %c0_40 = arith.constant 0 : index
    %c0_41 = arith.constant 0 : index
    %72 = vector.load %arg7[%c0_40, %c0_41] : memref<8x256xf32, #tpu.memory_space<vmem>>, vector<1x256xf32>
    tpu.vector_store %arg7[%c0_40, %c0_41], %71 {strides = array<i32>} : memref<8x256xf32, #tpu.memory_space<vmem>>, vector<1x256xf32>,
    %73 = arith.truncf %71 : vector<1x256xf32> to vector<1x256xbf16>
    %c0_42 = arith.constant 0 : index
    %c0_43 = arith.constant 0 : index
    %74 = vector.load %arg3[%c0_42, %c0_43] : memref<256x768xbf16, #tpu.memory_space<vmem>>, vector<256x768xbf16>
    %cst_44 = arith.constant dense<0.000000e+00> : vector<1x768xf32>
    %75 = tpu.matmul %73, %74, %cst_44 {dimension_numbers = #tpu.dot_dimension_numbers<[1], [0], [0], [1], [0, 0, 1, 1], [], []>} : vector<1x256xbf16>, vector<256x768xbf16>, vector<1x768xf32> -> vector<1x768xf32>
    %76 = vector.extract_strided_slice %38 {offsets = [1, 0], sizes = [1, 768], strides = [1, 1]} : vector<8x768xf32> to vector<1x768xf32>
    %77 = vector.extract_strided_slice %76 {offsets = [0, 0], sizes = [1, 256], strides = [1, 1]} : vector<1x768xf32> to vector<1x256xf32>
    %78 = vector.extract_strided_slice %75 {offsets = [0, 0], sizes = [1, 256], strides = [1, 1]} : vector<1x768xf32> to vector<1x256xf32>
    %79 = arith.addf %77, %78 : vector<1x256xf32>
    %80 = arith.negf %79 : vector<1x256xf32>
    %81 = math.exp %80 : vector<1x256xf32>
    %cst_45 = arith.constant 1.000000e+00 : f32
    %82 = vector.broadcast %cst_45 : f32 to vector<1x256xf32>
    %83 = arith.addf %82, %81 : vector<1x256xf32>
    %84 = arith.divf %82, %83 : vector<1x256xf32>
    %85 = vector.extract_strided_slice %76 {offsets = [0, 256], sizes = [1, 256], strides = [1, 1]} : vector<1x768xf32> to vector<1x256xf32>
    %86 = vector.extract_strided_slice %75 {offsets = [0, 256], sizes = [1, 256], strides = [1, 1]} : vector<1x768xf32> to vector<1x256xf32>
    %87 = arith.addf %85, %86 : vector<1x256xf32>
    %88 = arith.negf %87 : vector<1x256xf32>
    %89 = math.exp %88 : vector<1x256xf32>
    %cst_46 = arith.constant 1.000000e+00 : f32
    %90 = vector.broadcast %cst_46 : f32 to vector<1x256xf32>
    %91 = arith.addf %90, %89 : vector<1x256xf32>
    %92 = arith.divf %90, %91 : vector<1x256xf32>
    %93 = vector.extract_strided_slice %76 {offsets = [0, 512], sizes = [1, 256], strides = [1, 1]} : vector<1x768xf32> to vector<1x256xf32>
    %94 = vector.extract_strided_slice %75 {offsets = [0, 512], sizes = [1, 256], strides = [1, 1]} : vector<1x768xf32> to vector<1x256xf32>
    %95 = arith.addf %94, %39 : vector<1x256xf32>
    %96 = arith.mulf %84, %95 : vector<1x256xf32>
    %97 = arith.addf %93, %96 : vector<1x256xf32>
    %98 = math.tanh %97 : vector<1x256xf32>
    %cst_47 = arith.constant 1.000000e+00 : f32
    %99 = vector.broadcast %cst_47 : f32 to vector<1x256xf32>
    %100 = arith.subf %99, %92 : vector<1x256xf32>
    %101 = arith.mulf %100, %98 : vector<1x256xf32>
    %102 = arith.mulf %92, %71 : vector<1x256xf32>
    %103 = arith.addf %101, %102 : vector<1x256xf32>
    %c1_48 = arith.constant 1 : index
    %c0_49 = arith.constant 0 : index
    %104 = vector.load %arg7[%c1_48, %c0_49] : memref<8x256xf32, #tpu.memory_space<vmem>>, vector<1x256xf32>
    tpu.vector_store %arg7[%c1_48, %c0_49], %103 {strides = array<i32>} : memref<8x256xf32, #tpu.memory_space<vmem>>, vector<1x256xf32>,
    %105 = arith.truncf %103 : vector<1x256xf32> to vector<1x256xbf16>
    %c0_50 = arith.constant 0 : index
    %c0_51 = arith.constant 0 : index
    %106 = vector.load %arg3[%c0_50, %c0_51] : memref<256x768xbf16, #tpu.memory_space<vmem>>, vector<256x768xbf16>
    %cst_52 = arith.constant dense<0.000000e+00> : vector<1x768xf32>
    %107 = tpu.matmul %105, %106, %cst_52 {dimension_numbers = #tpu.dot_dimension_numbers<[1], [0], [0], [1], [0, 0, 1, 1], [], []>} : vector<1x256xbf16>, vector<256x768xbf16>, vector<1x768xf32> -> vector<1x768xf32>
    %108 = vector.extract_strided_slice %38 {offsets = [2, 0], sizes = [1, 768], strides = [1, 1]} : vector<8x768xf32> to vector<1x768xf32>
    %109 = vector.extract_strided_slice %108 {offsets = [0, 0], sizes = [1, 256], strides = [1, 1]} : vector<1x768xf32> to vector<1x256xf32>
    %110 = vector.extract_strided_slice %107 {offsets = [0, 0], sizes = [1, 256], strides = [1, 1]} : vector<1x768xf32> to vector<1x256xf32>
    %111 = arith.addf %109, %110 : vector<1x256xf32>
    %112 = arith.negf %111 : vector<1x256xf32>
    %113 = math.exp %112 : vector<1x256xf32>
    %cst_53 = arith.constant 1.000000e+00 : f32
    %114 = vector.broadcast %cst_53 : f32 to vector<1x256xf32>
    %115 = arith.addf %114, %113 : vector<1x256xf32>
    %116 = arith.divf %114, %115 : vector<1x256xf32>
    %117 = vector.extract_strided_slice %108 {offsets = [0, 256], sizes = [1, 256], strides = [1, 1]} : vector<1x768xf32> to vector<1x256xf32>
    %118 = vector.extract_strided_slice %107 {offsets = [0, 256], sizes = [1, 256], strides = [1, 1]} : vector<1x768xf32> to vector<1x256xf32>
    %119 = arith.addf %117, %118 : vector<1x256xf32>
    %120 = arith.negf %119 : vector<1x256xf32>
    %121 = math.exp %120 : vector<1x256xf32>
    %cst_54 = arith.constant 1.000000e+00 : f32
    %122 = vector.broadcast %cst_54 : f32 to vector<1x256xf32>
    %123 = arith.addf %122, %121 : vector<1x256xf32>
    %124 = arith.divf %122, %123 : vector<1x256xf32>
    %125 = vector.extract_strided_slice %108 {offsets = [0, 512], sizes = [1, 256], strides = [1, 1]} : vector<1x768xf32> to vector<1x256xf32>
    %126 = vector.extract_strided_slice %107 {offsets = [0, 512], sizes = [1, 256], strides = [1, 1]} : vector<1x768xf32> to vector<1x256xf32>
    %127 = arith.addf %126, %39 : vector<1x256xf32>
    %128 = arith.mulf %116, %127 : vector<1x256xf32>
    %129 = arith.addf %125, %128 : vector<1x256xf32>
    %130 = math.tanh %129 : vector<1x256xf32>
    %cst_55 = arith.constant 1.000000e+00 : f32
    %131 = vector.broadcast %cst_55 : f32 to vector<1x256xf32>
    %132 = arith.subf %131, %124 : vector<1x256xf32>
    %133 = arith.mulf %132, %130 : vector<1x256xf32>
    %134 = arith.mulf %124, %103 : vector<1x256xf32>
    %135 = arith.addf %133, %134 : vector<1x256xf32>
    %c2_56 = arith.constant 2 : index
    %c0_57 = arith.constant 0 : index
    %136 = vector.load %arg7[%c2_56, %c0_57] : memref<8x256xf32, #tpu.memory_space<vmem>>, vector<1x256xf32>
    tpu.vector_store %arg7[%c2_56, %c0_57], %135 {strides = array<i32>} : memref<8x256xf32, #tpu.memory_space<vmem>>, vector<1x256xf32>,
    %137 = arith.truncf %135 : vector<1x256xf32> to vector<1x256xbf16>
    %c0_58 = arith.constant 0 : index
    %c0_59 = arith.constant 0 : index
    %138 = vector.load %arg3[%c0_58, %c0_59] : memref<256x768xbf16, #tpu.memory_space<vmem>>, vector<256x768xbf16>
    %cst_60 = arith.constant dense<0.000000e+00> : vector<1x768xf32>
    %139 = tpu.matmul %137, %138, %cst_60 {dimension_numbers = #tpu.dot_dimension_numbers<[1], [0], [0], [1], [0, 0, 1, 1], [], []>} : vector<1x256xbf16>, vector<256x768xbf16>, vector<1x768xf32> -> vector<1x768xf32>
    %140 = vector.extract_strided_slice %38 {offsets = [3, 0], sizes = [1, 768], strides = [1, 1]} : vector<8x768xf32> to vector<1x768xf32>
    %141 = vector.extract_strided_slice %140 {offsets = [0, 0], sizes = [1, 256], strides = [1, 1]} : vector<1x768xf32> to vector<1x256xf32>
    %142 = vector.extract_strided_slice %139 {offsets = [0, 0], sizes = [1, 256], strides = [1, 1]} : vector<1x768xf32> to vector<1x256xf32>
    %143 = arith.addf %141, %142 : vector<1x256xf32>
    %144 = arith.negf %143 : vector<1x256xf32>
    %145 = math.exp %144 : vector<1x256xf32>
    %cst_61 = arith.constant 1.000000e+00 : f32
    %146 = vector.broadcast %cst_61 : f32 to vector<1x256xf32>
    %147 = arith.addf %146, %145 : vector<1x256xf32>
    %148 = arith.divf %146, %147 : vector<1x256xf32>
    %149 = vector.extract_strided_slice %140 {offsets = [0, 256], sizes = [1, 256], strides = [1, 1]} : vector<1x768xf32> to vector<1x256xf32>
    %150 = vector.extract_strided_slice %139 {offsets = [0, 256], sizes = [1, 256], strides = [1, 1]} : vector<1x768xf32> to vector<1x256xf32>
    %151 = arith.addf %149, %150 : vector<1x256xf32>
    %152 = arith.negf %151 : vector<1x256xf32>
    %153 = math.exp %152 : vector<1x256xf32>
    %cst_62 = arith.constant 1.000000e+00 : f32
    %154 = vector.broadcast %cst_62 : f32 to vector<1x256xf32>
    %155 = arith.addf %154, %153 : vector<1x256xf32>
    %156 = arith.divf %154, %155 : vector<1x256xf32>
    %157 = vector.extract_strided_slice %140 {offsets = [0, 512], sizes = [1, 256], strides = [1, 1]} : vector<1x768xf32> to vector<1x256xf32>
    %158 = vector.extract_strided_slice %139 {offsets = [0, 512], sizes = [1, 256], strides = [1, 1]} : vector<1x768xf32> to vector<1x256xf32>
    %159 = arith.addf %158, %39 : vector<1x256xf32>
    %160 = arith.mulf %148, %159 : vector<1x256xf32>
    %161 = arith.addf %157, %160 : vector<1x256xf32>
    %162 = math.tanh %161 : vector<1x256xf32>
    %cst_63 = arith.constant 1.000000e+00 : f32
    %163 = vector.broadcast %cst_63 : f32 to vector<1x256xf32>
    %164 = arith.subf %163, %156 : vector<1x256xf32>
    %165 = arith.mulf %164, %162 : vector<1x256xf32>
    %166 = arith.mulf %156, %135 : vector<1x256xf32>
    %167 = arith.addf %165, %166 : vector<1x256xf32>
    %c3_64 = arith.constant 3 : index
    %c0_65 = arith.constant 0 : index
    %168 = vector.load %arg7[%c3_64, %c0_65] : memref<8x256xf32, #tpu.memory_space<vmem>>, vector<1x256xf32>
    tpu.vector_store %arg7[%c3_64, %c0_65], %167 {strides = array<i32>} : memref<8x256xf32, #tpu.memory_space<vmem>>, vector<1x256xf32>,
    %169 = arith.truncf %167 : vector<1x256xf32> to vector<1x256xbf16>
    %c0_66 = arith.constant 0 : index
    %c0_67 = arith.constant 0 : index
    %170 = vector.load %arg3[%c0_66, %c0_67] : memref<256x768xbf16, #tpu.memory_space<vmem>>, vector<256x768xbf16>
    %cst_68 = arith.constant dense<0.000000e+00> : vector<1x768xf32>
    %171 = tpu.matmul %169, %170, %cst_68 {dimension_numbers = #tpu.dot_dimension_numbers<[1], [0], [0], [1], [0, 0, 1, 1], [], []>} : vector<1x256xbf16>, vector<256x768xbf16>, vector<1x768xf32> -> vector<1x768xf32>
    %172 = vector.extract_strided_slice %38 {offsets = [4, 0], sizes = [1, 768], strides = [1, 1]} : vector<8x768xf32> to vector<1x768xf32>
    %173 = vector.extract_strided_slice %172 {offsets = [0, 0], sizes = [1, 256], strides = [1, 1]} : vector<1x768xf32> to vector<1x256xf32>
    %174 = vector.extract_strided_slice %171 {offsets = [0, 0], sizes = [1, 256], strides = [1, 1]} : vector<1x768xf32> to vector<1x256xf32>
    %175 = arith.addf %173, %174 : vector<1x256xf32>
    %176 = arith.negf %175 : vector<1x256xf32>
    %177 = math.exp %176 : vector<1x256xf32>
    %cst_69 = arith.constant 1.000000e+00 : f32
    %178 = vector.broadcast %cst_69 : f32 to vector<1x256xf32>
    %179 = arith.addf %178, %177 : vector<1x256xf32>
    %180 = arith.divf %178, %179 : vector<1x256xf32>
    %181 = vector.extract_strided_slice %172 {offsets = [0, 256], sizes = [1, 256], strides = [1, 1]} : vector<1x768xf32> to vector<1x256xf32>
    %182 = vector.extract_strided_slice %171 {offsets = [0, 256], sizes = [1, 256], strides = [1, 1]} : vector<1x768xf32> to vector<1x256xf32>
    %183 = arith.addf %181, %182 : vector<1x256xf32>
    %184 = arith.negf %183 : vector<1x256xf32>
    %185 = math.exp %184 : vector<1x256xf32>
    %cst_70 = arith.constant 1.000000e+00 : f32
    %186 = vector.broadcast %cst_70 : f32 to vector<1x256xf32>
    %187 = arith.addf %186, %185 : vector<1x256xf32>
    %188 = arith.divf %186, %187 : vector<1x256xf32>
    %189 = vector.extract_strided_slice %172 {offsets = [0, 512], sizes = [1, 256], strides = [1, 1]} : vector<1x768xf32> to vector<1x256xf32>
    %190 = vector.extract_strided_slice %171 {offsets = [0, 512], sizes = [1, 256], strides = [1, 1]} : vector<1x768xf32> to vector<1x256xf32>
    %191 = arith.addf %190, %39 : vector<1x256xf32>
    %192 = arith.mulf %180, %191 : vector<1x256xf32>
    %193 = arith.addf %189, %192 : vector<1x256xf32>
    %194 = math.tanh %193 : vector<1x256xf32>
    %cst_71 = arith.constant 1.000000e+00 : f32
    %195 = vector.broadcast %cst_71 : f32 to vector<1x256xf32>
    %196 = arith.subf %195, %188 : vector<1x256xf32>
    %197 = arith.mulf %196, %194 : vector<1x256xf32>
    %198 = arith.mulf %188, %167 : vector<1x256xf32>
    %199 = arith.addf %197, %198 : vector<1x256xf32>
    %c4_72 = arith.constant 4 : index
    %c0_73 = arith.constant 0 : index
    %200 = vector.load %arg7[%c4_72, %c0_73] : memref<8x256xf32, #tpu.memory_space<vmem>>, vector<1x256xf32>
    tpu.vector_store %arg7[%c4_72, %c0_73], %199 {strides = array<i32>} : memref<8x256xf32, #tpu.memory_space<vmem>>, vector<1x256xf32>,
    %201 = arith.truncf %199 : vector<1x256xf32> to vector<1x256xbf16>
    %c0_74 = arith.constant 0 : index
    %c0_75 = arith.constant 0 : index
    %202 = vector.load %arg3[%c0_74, %c0_75] : memref<256x768xbf16, #tpu.memory_space<vmem>>, vector<256x768xbf16>
    %cst_76 = arith.constant dense<0.000000e+00> : vector<1x768xf32>
    %203 = tpu.matmul %201, %202, %cst_76 {dimension_numbers = #tpu.dot_dimension_numbers<[1], [0], [0], [1], [0, 0, 1, 1], [], []>} : vector<1x256xbf16>, vector<256x768xbf16>, vector<1x768xf32> -> vector<1x768xf32>
    %204 = vector.extract_strided_slice %38 {offsets = [5, 0], sizes = [1, 768], strides = [1, 1]} : vector<8x768xf32> to vector<1x768xf32>
    %205 = vector.extract_strided_slice %204 {offsets = [0, 0], sizes = [1, 256], strides = [1, 1]} : vector<1x768xf32> to vector<1x256xf32>
    %206 = vector.extract_strided_slice %203 {offsets = [0, 0], sizes = [1, 256], strides = [1, 1]} : vector<1x768xf32> to vector<1x256xf32>
    %207 = arith.addf %205, %206 : vector<1x256xf32>
    %208 = arith.negf %207 : vector<1x256xf32>
    %209 = math.exp %208 : vector<1x256xf32>
    %cst_77 = arith.constant 1.000000e+00 : f32
    %210 = vector.broadcast %cst_77 : f32 to vector<1x256xf32>
    %211 = arith.addf %210, %209 : vector<1x256xf32>
    %212 = arith.divf %210, %211 : vector<1x256xf32>
    %213 = vector.extract_strided_slice %204 {offsets = [0, 256], sizes = [1, 256], strides = [1, 1]} : vector<1x768xf32> to vector<1x256xf32>
    %214 = vector.extract_strided_slice %203 {offsets = [0, 256], sizes = [1, 256], strides = [1, 1]} : vector<1x768xf32> to vector<1x256xf32>
    %215 = arith.addf %213, %214 : vector<1x256xf32>
    %216 = arith.negf %215 : vector<1x256xf32>
    %217 = math.exp %216 : vector<1x256xf32>
    %cst_78 = arith.constant 1.000000e+00 : f32
    %218 = vector.broadcast %cst_78 : f32 to vector<1x256xf32>
    %219 = arith.addf %218, %217 : vector<1x256xf32>
    %220 = arith.divf %218, %219 : vector<1x256xf32>
    %221 = vector.extract_strided_slice %204 {offsets = [0, 512], sizes = [1, 256], strides = [1, 1]} : vector<1x768xf32> to vector<1x256xf32>
    %222 = vector.extract_strided_slice %203 {offsets = [0, 512], sizes = [1, 256], strides = [1, 1]} : vector<1x768xf32> to vector<1x256xf32>
    %223 = arith.addf %222, %39 : vector<1x256xf32>
    %224 = arith.mulf %212, %223 : vector<1x256xf32>
    %225 = arith.addf %221, %224 : vector<1x256xf32>
    %226 = math.tanh %225 : vector<1x256xf32>
    %cst_79 = arith.constant 1.000000e+00 : f32
    %227 = vector.broadcast %cst_79 : f32 to vector<1x256xf32>
    %228 = arith.subf %227, %220 : vector<1x256xf32>
    %229 = arith.mulf %228, %226 : vector<1x256xf32>
    %230 = arith.mulf %220, %199 : vector<1x256xf32>
    %231 = arith.addf %229, %230 : vector<1x256xf32>
    %c5_80 = arith.constant 5 : index
    %c0_81 = arith.constant 0 : index
    %232 = vector.load %arg7[%c5_80, %c0_81] : memref<8x256xf32, #tpu.memory_space<vmem>>, vector<1x256xf32>
    tpu.vector_store %arg7[%c5_80, %c0_81], %231 {strides = array<i32>} : memref<8x256xf32, #tpu.memory_space<vmem>>, vector<1x256xf32>,
    %233 = arith.truncf %231 : vector<1x256xf32> to vector<1x256xbf16>
    %c0_82 = arith.constant 0 : index
    %c0_83 = arith.constant 0 : index
    %234 = vector.load %arg3[%c0_82, %c0_83] : memref<256x768xbf16, #tpu.memory_space<vmem>>, vector<256x768xbf16>
    %cst_84 = arith.constant dense<0.000000e+00> : vector<1x768xf32>
    %235 = tpu.matmul %233, %234, %cst_84 {dimension_numbers = #tpu.dot_dimension_numbers<[1], [0], [0], [1], [0, 0, 1, 1], [], []>} : vector<1x256xbf16>, vector<256x768xbf16>, vector<1x768xf32> -> vector<1x768xf32>
    %236 = vector.extract_strided_slice %38 {offsets = [6, 0], sizes = [1, 768], strides = [1, 1]} : vector<8x768xf32> to vector<1x768xf32>
    %237 = vector.extract_strided_slice %236 {offsets = [0, 0], sizes = [1, 256], strides = [1, 1]} : vector<1x768xf32> to vector<1x256xf32>
    %238 = vector.extract_strided_slice %235 {offsets = [0, 0], sizes = [1, 256], strides = [1, 1]} : vector<1x768xf32> to vector<1x256xf32>
    %239 = arith.addf %237, %238 : vector<1x256xf32>
    %240 = arith.negf %239 : vector<1x256xf32>
    %241 = math.exp %240 : vector<1x256xf32>
    %cst_85 = arith.constant 1.000000e+00 : f32
    %242 = vector.broadcast %cst_85 : f32 to vector<1x256xf32>
    %243 = arith.addf %242, %241 : vector<1x256xf32>
    %244 = arith.divf %242, %243 : vector<1x256xf32>
    %245 = vector.extract_strided_slice %236 {offsets = [0, 256], sizes = [1, 256], strides = [1, 1]} : vector<1x768xf32> to vector<1x256xf32>
    %246 = vector.extract_strided_slice %235 {offsets = [0, 256], sizes = [1, 256], strides = [1, 1]} : vector<1x768xf32> to vector<1x256xf32>
    %247 = arith.addf %245, %246 : vector<1x256xf32>
    %248 = arith.negf %247 : vector<1x256xf32>
    %249 = math.exp %248 : vector<1x256xf32>
    %cst_86 = arith.constant 1.000000e+00 : f32
    %250 = vector.broadcast %cst_86 : f32 to vector<1x256xf32>
    %251 = arith.addf %250, %249 : vector<1x256xf32>
    %252 = arith.divf %250, %251 : vector<1x256xf32>
    %253 = vector.extract_strided_slice %236 {offsets = [0, 512], sizes = [1, 256], strides = [1, 1]} : vector<1x768xf32> to vector<1x256xf32>
    %254 = vector.extract_strided_slice %235 {offsets = [0, 512], sizes = [1, 256], strides = [1, 1]} : vector<1x768xf32> to vector<1x256xf32>
    %255 = arith.addf %254, %39 : vector<1x256xf32>
    %256 = arith.mulf %244, %255 : vector<1x256xf32>
    %257 = arith.addf %253, %256 : vector<1x256xf32>
    %258 = math.tanh %257 : vector<1x256xf32>
    %cst_87 = arith.constant 1.000000e+00 : f32
    %259 = vector.broadcast %cst_87 : f32 to vector<1x256xf32>
    %260 = arith.subf %259, %252 : vector<1x256xf32>
    %261 = arith.mulf %260, %258 : vector<1x256xf32>
    %262 = arith.mulf %252, %231 : vector<1x256xf32>
    %263 = arith.addf %261, %262 : vector<1x256xf32>
    %c6_88 = arith.constant 6 : index
    %c0_89 = arith.constant 0 : index
    %264 = vector.load %arg7[%c6_88, %c0_89] : memref<8x256xf32, #tpu.memory_space<vmem>>, vector<1x256xf32>
    tpu.vector_store %arg7[%c6_88, %c0_89], %263 {strides = array<i32>} : memref<8x256xf32, #tpu.memory_space<vmem>>, vector<1x256xf32>,
    %265 = arith.truncf %263 : vector<1x256xf32> to vector<1x256xbf16>
    %c0_90 = arith.constant 0 : index
    %c0_91 = arith.constant 0 : index
    %266 = vector.load %arg3[%c0_90, %c0_91] : memref<256x768xbf16, #tpu.memory_space<vmem>>, vector<256x768xbf16>
    %cst_92 = arith.constant dense<0.000000e+00> : vector<1x768xf32>
    %267 = tpu.matmul %265, %266, %cst_92 {dimension_numbers = #tpu.dot_dimension_numbers<[1], [0], [0], [1], [0, 0, 1, 1], [], []>} : vector<1x256xbf16>, vector<256x768xbf16>, vector<1x768xf32> -> vector<1x768xf32>
    %268 = vector.extract_strided_slice %38 {offsets = [7, 0], sizes = [1, 768], strides = [1, 1]} : vector<8x768xf32> to vector<1x768xf32>
    %269 = vector.extract_strided_slice %268 {offsets = [0, 0], sizes = [1, 256], strides = [1, 1]} : vector<1x768xf32> to vector<1x256xf32>
    %270 = vector.extract_strided_slice %267 {offsets = [0, 0], sizes = [1, 256], strides = [1, 1]} : vector<1x768xf32> to vector<1x256xf32>
    %271 = arith.addf %269, %270 : vector<1x256xf32>
    %272 = arith.negf %271 : vector<1x256xf32>
    %273 = math.exp %272 : vector<1x256xf32>
    %cst_93 = arith.constant 1.000000e+00 : f32
    %274 = vector.broadcast %cst_93 : f32 to vector<1x256xf32>
    %275 = arith.addf %274, %273 : vector<1x256xf32>
    %276 = arith.divf %274, %275 : vector<1x256xf32>
    %277 = vector.extract_strided_slice %268 {offsets = [0, 256], sizes = [1, 256], strides = [1, 1]} : vector<1x768xf32> to vector<1x256xf32>
    %278 = vector.extract_strided_slice %267 {offsets = [0, 256], sizes = [1, 256], strides = [1, 1]} : vector<1x768xf32> to vector<1x256xf32>
    %279 = arith.addf %277, %278 : vector<1x256xf32>
    %280 = arith.negf %279 : vector<1x256xf32>
    %281 = math.exp %280 : vector<1x256xf32>
    %cst_94 = arith.constant 1.000000e+00 : f32
    %282 = vector.broadcast %cst_94 : f32 to vector<1x256xf32>
    %283 = arith.addf %282, %281 : vector<1x256xf32>
    %284 = arith.divf %282, %283 : vector<1x256xf32>
    %285 = vector.extract_strided_slice %268 {offsets = [0, 512], sizes = [1, 256], strides = [1, 1]} : vector<1x768xf32> to vector<1x256xf32>
    %286 = vector.extract_strided_slice %267 {offsets = [0, 512], sizes = [1, 256], strides = [1, 1]} : vector<1x768xf32> to vector<1x256xf32>
    %287 = arith.addf %286, %39 : vector<1x256xf32>
    %288 = arith.mulf %276, %287 : vector<1x256xf32>
    %289 = arith.addf %285, %288 : vector<1x256xf32>
    %290 = math.tanh %289 : vector<1x256xf32>
    %cst_95 = arith.constant 1.000000e+00 : f32
    %291 = vector.broadcast %cst_95 : f32 to vector<1x256xf32>
    %292 = arith.subf %291, %284 : vector<1x256xf32>
    %293 = arith.mulf %292, %290 : vector<1x256xf32>
    %294 = arith.mulf %284, %263 : vector<1x256xf32>
    %295 = arith.addf %293, %294 : vector<1x256xf32>
    %c7_96 = arith.constant 7 : index
    %c0_97 = arith.constant 0 : index
    %296 = vector.load %arg7[%c7_96, %c0_97] : memref<8x256xf32, #tpu.memory_space<vmem>>, vector<1x256xf32>
    tpu.vector_store %arg7[%c7_96, %c0_97], %295 {strides = array<i32>} : memref<8x256xf32, #tpu.memory_space<vmem>>, vector<1x256xf32>,
    return
  }
}

</mosaic_0001>

<bundles_post_ra>
// kernel: tpu_custom_call.1
= control target key start
LH: loop header
LB: loop body
LE: loop exit
PB: predicated region body
PF: predicated region fallthrough
CT: control target
= control target key end

     0   :  { %12 = vsyncpa [#allocation6], 0  ;;  %s11068_s0 = inlined_call_operand.hbm [shape: s32[8], index: 0, kind: input, shape index: {}]   ;;  %s11069_s1 = inlined_call_operand.hbm [shape: f32[128,256], index: 1, kind: input, shape index: {}]   ;;  %s11070_s2 = inlined_call_operand.hbm [shape: bf16[256,768], index: 2, kind: input, shape index: {}]   ;;  %s11071_s3 = inlined_call_operand.hbm [shape: bf16[256,768], index: 3, kind: input, shape index: {}]   ;;  %s11072_s4 = inlined_call_operand.vmem [shape: f32[1,768], index: 4, kind: input, shape index: {}]   ;;  %s11073_s5 = inlined_call_operand.vmem [shape: f32[1,256], index: 5, kind: input, shape index: {}]   ;;  %s11074_s6 = inlined_call_operand.vmem [shape: f32[1,256], index: 6, kind: input, shape index: {}]   ;;  %s11075_s7 = inlined_call_operand.hbm [shape: f32[8,256], index: 7, kind: output, shape index: {}]  }
   0x1   :  { %13 = vsyncpa [#allocation4], 0 }
   0x2   :  { %14 = vsyncpa [#allocation9], 0 }
   0x3   :  { %15 = vsyncpa [#allocation5], 0  ;;  %s9277_s24 = smov [#allocation8]  }
   0x4   :  { %s41_s25 = sshll.u32 %s9277_s24, 4  ;;  %s42_s25 = int_to_ptr.vmem [resolvable:$true] %s41_s25 }
   0x5   :  { %s9189_s26 = scalar_lea.vmem %s42_s25, 12288  ;;  %p9194_p1 = scmp.lt.s32.totalorder %s42_s25, %s42_s25 }
   0x6   :  { %p9190_p0 = scmp.ne.s32.totalorder %s42_s25, %s9189_s26  ;;  %p9195_p2 = scmp.lt.s32.totalorder %s9189_s26, %s9189_s26 }
   0x8   :  { %p9196_p3 = por %p9195_p2, %p9194_p1 }
   0xa   :  { %p9197_p4 = pnand %p9196_p3, %p9190_p0 }
   0xc   :  { %9200 = shalt.err (!%p9197_p4)
}
   0xd   :  { %s9278_s27 = smov 384   ;;  %s9279_s28 = smov 24  }
   0xe   :  { %47 = dma.hbm_to_vmem [thread:$0]  %s11070_s2, 12288, %s42_s25, [#allocation9], %s9278_s27, %s9278_s27, %s9279_s28  }
   0xf   :  { %s9280_s8 = smov [#allocation3]   ;;  %s9281_s11 = smov [#allocation7]  }
  0x10   :  { %23 = dma.hbm_to_smem %s11068_s0, 16, %s9280_s8, [#allocation6]  }
  0x11   :  { %s29_s12 = sshll.u32 %s9281_s11, 4  ;;  %s30_s12 = int_to_ptr.vmem [resolvable:$true] %s29_s12 }
  0x12   :  { %s9217_s13 = scalar_lea.vmem %s30_s12, 4096  ;;  %p9222_p6 = scmp.lt.s32.totalorder %s30_s12, %s30_s12 }
  0x13   :  { %p9218_p5 = scmp.ne.s32.totalorder %s30_s12, %s9217_s13  ;;  %p9223_p7 = scmp.lt.s32.totalorder %s9217_s13, %s9217_s13 }
  0x15   :  { %p9224_p8 = por %p9223_p7, %p9222_p6 }
  0x17   :  { %p9225_p9 = pnand %p9224_p8, %p9218_p5 }
  0x19   :  { %9228 = shalt.err (!%p9225_p9)
}
  0x1a   :  { %s9282_s14 = smov 256   ;;  %s9283_s15 = smov 16  }
  0x1b   :  { %35 = dma.hbm_to_vmem [thread:$0]  %s11069_s1, 4096, %s30_s12, [#allocation4], %s9282_s14, %s9282_s14, %s9283_s15  }
  0x1c   :  { %s9284_s2 = smov [#allocation10]  }
  0x1d   :  { %s53_s18 = sshll.u32 %s9284_s2, 4  ;;  %s54_s18 = int_to_ptr.vmem [resolvable:$true] %s53_s18 }
  0x1e   :  { %s9237_s0 = scalar_lea.vmem %s54_s18, 12288  ;;  %p9242_p11 = scmp.lt.s32.totalorder %s54_s18, %s54_s18 }
  0x1f   :  { %p9238_p10 = scmp.ne.s32.totalorder %s54_s18, %s9237_s0  ;;  %p9243_p12 = scmp.lt.s32.totalorder %s9237_s0, %s9237_s0 }
  0x21   :  { %p9244_p13 = por %p9243_p12, %p9242_p11 }
  0x23   :  { %p9245_p0 = pnand %p9244_p13, %p9238_p10 }
  0x25   :  { %9248 = shalt.err (!%p9245_p0)
}
  0x26   :  { %59 = dma.hbm_to_vmem [thread:$0]  %s11071_s3, 12288, %s54_s18, [#allocation9], %s9278_s27, %s9278_s27, %s9279_s28  }
  0x27   :  { %9269 = dma.done.wait [#allocation6], 16  }
  0x28   :  { %9270 = vsyncadd [#allocation6], 4294967280 }
  0x29   :  { %9271 = dma.done.wait [#allocation4], 4096  }
  0x2a   :  { %9272 = vsyncadd [#allocation4], 4294963200 }
  0x2b   :  { %9273 = dma.done.wait [#allocation9], 24576  }
  0x2c   :  { %9274 = vsyncadd [#allocation9], 4294942720 }
  0x2d   :  { %78 = sfence }
  0x2e   :  { %v8258_v0 = vld [vmem:[#allocation8 + $0x154] ss:$24 sps:$4 sm:$0xff]   ;;  %v8262_v2 = vld [vmem:[#allocation8 + $0x150] ss:$24 sps:$4 sm:$0xff]   ;;  %v8264_v4 = vld [vmem:[#allocation8 + $0x124] ss:$24 sps:$4 sm:$0xff]   ;;  %v89_v40 = vlaneseq }
  0x2f   :  { %v8260_v1 = vld [vmem:[#allocation8 + $0x15c] ss:$24 sps:$4 sm:$0xff]   ;;  %798 = vmatprep.subr.bf16.mxu0 %v8258_v0  ;;  %v8263_v3 = vld [vmem:[#allocation8 + $0x158] ss:$24 sps:$4 sm:$0xff]   ;;  %v8266_v5 = vld [vmem:[#allocation8 + $0x12c] ss:$24 sps:$4 sm:$0xff]  }
  0x30   :  { %839 = vmatprep.subr.bf16.mxu1 %v8260_v1  ;;  %799 = vmatpush1.bf16.msra.mxu0 %v8262_v2  ;;  %v8268_v6 = vld [vmem:[#allocation8 + $0x120] ss:$24 sps:$4 sm:$0xff]   ;;  %v8270_v8 = vld [vmem:[#allocation8 + $0xf4] ss:$24 sps:$4 sm:$0xff]   ;;  %v8274_v10 = vld [vmem:[#allocation8 + $0xf0] ss:$24 sps:$4 sm:$0xff]  }
  0x31   :  { %840 = vmatpush1.bf16.msra.mxu1 %v8263_v3  ;;  %800 = vmatprep.subr.bf16.mxu0 %v8264_v4  ;;  %v8269_v7 = vld [vmem:[#allocation8 + $0x128] ss:$24 sps:$4 sm:$0xff]   ;;  %v8272_v9 = vld [vmem:[#allocation8 + $0xfc] ss:$24 sps:$4 sm:$0xff]   ;;  %v8275_v11 = vld [vmem:[#allocation8 + $0xf8] ss:$24 sps:$4 sm:$0xff]  }
  0x32   :  { %841 = vmatprep.subr.bf16.mxu1 %v8266_v5  ;;  %v8276_v12 = vld [vmem:[#allocation8 + $0xc4] ss:$24 sps:$4 sm:$0xff]   ;;  %s9345_s1 = sld [smem:[#allocation3]]  ;;  %v8280_v14 = vld [vmem:[#allocation8 + $0xc0] ss:$24 sps:$4 sm:$0xff]   ;;  %vm9390_vm0 = vcmp.lt.s32.totalorder %v89_v40, 256 }
  0x33   :  { %v8278_v13 = vld [vmem:[#allocation8 + $0xcc] ss:$24 sps:$4 sm:$0xff]   ;;  %s9347_s3 = sld [smem:[#allocation3 + $0x1]]  ;;  %v8281_v15 = vld [vmem:[#allocation8 + $0xc8] ss:$24 sps:$4 sm:$0xff]  }
  0x34   :  { %801 = vmatpush1.bf16.msra.mxu0 %v8268_v6  ;;  %v8282_v16 = vld [vmem:[#allocation8 + $0x94] ss:$24 sps:$4 sm:$0xff]   ;;  %s9349_s21 = sld [smem:[#allocation3 + $0x2]]  ;;  %v8286_v18 = vld [vmem:[#allocation8 + $0x90] ss:$24 sps:$4 sm:$0xff]  }
  0x35   :  { %842 = vmatpush1.bf16.msra.mxu1 %v8269_v7  ;;  %802 = vmatprep.subr.bf16.mxu0 %v8270_v8  ;;  %v8284_v17 = vld [vmem:[#allocation8 + $0x9c] ss:$24 sps:$4 sm:$0xff]   ;;  %v8287_v19 = vld [vmem:[#allocation8 + $0x98] ss:$24 sps:$4 sm:$0xff]   ;;  %v8290_v21 = vld [vmem:[#allocation8 + $0x6c] ss:$24 sps:$4 sm:$0xff]  }
  0x36   :  { %843 = vmatprep.subr.bf16.mxu1 %v8272_v9  ;;  %v8288_v20 = vld [vmem:[#allocation8 + $0x64] ss:$24 sps:$4 sm:$0xff]   ;;  %s9353_s24 = sld [smem:[#allocation3 + $0x3]]  ;;  %v8292_v22 = vld [vmem:[#allocation8 + $0x60] ss:$24 sps:$4 sm:$0xff]  }
  0x37   :  { %v8293_v23 = vld [vmem:[#allocation8 + $0x68] ss:$24 sps:$4 sm:$0xff]   ;;  %v8294_v24 = vld [vmem:[#allocation8 + $0x34] ss:$24 sps:$4 sm:$0xff]   ;;  %s9358_s30 = sld [smem:[#allocation3 + $0x4]] }
  0x38   :  { %803 = vmatpush1.bf16.msra.mxu0 %v8274_v10  ;;  %s80_s22 = sshra.s32 %s9345_s1, 3  ;;  %s83_s25 = sand.u32 7, %s9345_s1  ;;  %v8296_v25 = vld [vmem:[#allocation8 + $0x3c] ss:$24 sps:$4 sm:$0xff]   ;;  %v8298_v26 = vld [vmem:[#allocation8 + $0x30] ss:$24 sps:$4 sm:$0xff]  }
  0x39   :  { %844 = vmatpush1.bf16.msra.mxu1 %v8275_v11  ;;  %804 = vmatprep.subr.bf16.mxu0 %v8276_v12  ;;  %s96_s23 = sshra.s32 %s9347_s3, 3  ;;  %s8240_s26 = sshll.u32 %s80_s22, 4  ;;  %v8299_v27 = vld [vmem:[#allocation8 + $0x38] ss:$24 sps:$4 sm:$0xff]   ;;  %v8300_v28 = vld [vmem:[#allocation8 + $0x4] ss:$24 sps:$4 sm:$0xff]  }
  0x3a   :  { %845 = vmatprep.subr.bf16.mxu1 %v8278_v13  ;;  %s99_s27 = sand.u32 7, %s9347_s3  ;;  %s8241_s28 = sshll.u32 %s96_s23, 4  ;;  %v8302_v29 = vld [vmem:[#allocation8 + $0xc] ss:$24 sps:$4 sm:$0xff]   ;;  %v8304_v30 = vld [vmem:[#allocation8] ss:$24 sps:$4 sm:$0xff]  }
  0x3b   :  { %s109_s29 = sshra.s32 %s9349_s21, 3  ;;  %s9360_s8 = sld [smem:[#allocation3 + $0x5]]  ;;  %v8305_v31 = vld [vmem:[#allocation8 + $0x8] ss:$24 sps:$4 sm:$0xff]   ;;  %v8306_v32 = vld [vmem:[#allocation8 + $0x2d4] ss:$24 sps:$4 sm:$0xff]  }
  0x3c   :  { %805 = vmatpush1.bf16.msra.mxu0 %v8280_v14  ;;  %s9362_s9 = sadd.s32 %s8240_s26, %s83_s25  ;;  %s9364_s10 = sadd.s32 %s8241_s28, %s99_s27  ;;  %v8308_v33 = vld [vmem:[#allocation8 + $0x2dc] ss:$24 sps:$4 sm:$0xff]   ;;  %v8310_v34 = vld [vmem:[#allocation8 + $0x2d0] ss:$24 sps:$4 sm:$0xff]   ;;  %v8314_v37 = vld [vmem:[#allocation8 + $0x2ac] ss:$24 sps:$4 sm:$0xff]  }
  0x3d   :  { %846 = vmatpush1.bf16.msra.mxu1 %v8281_v15  ;;  %806 = vmatprep.subr.bf16.mxu0 %v8282_v16  ;;  %s9366_s11 = sld [smem:[#allocation3 + $0x6]]  ;;  %s112_s12 = sand.u32 7, %s9349_s21  ;;  %v8311_v35 = vld [vmem:[#allocation8 + $0x2d8] ss:$24 sps:$4 sm:$0xff]   ;;  %v8312_v36 = vld [vmem:[#allocation8 + $0x2a4] ss:$24 sps:$4 sm:$0xff]  }
  0x3e   :  { %847 = vmatprep.subr.bf16.mxu1 %v8284_v17  ;;  %s8242_s13 = sshll.u32 %s109_s29, 4  ;;  %s9369_s14 = sld [smem:[#allocation3 + $0x7]]  ;;  %v8316_v38 = vld [vmem:[#allocation8 + $0x2a0] ss:$24 sps:$4 sm:$0xff]   ;;  %v8318_v41 = vld [vmem:[#allocation8 + $0x274] ss:$24 sps:$4 sm:$0xff]  }
  0x3f   :  { %s122_s15 = sshra.s32 %s9353_s24, 3  ;;  %s9372_s16 = sadd.s32 %s8242_s13, %s112_s12  ;;  %v8317_v39 = vld [vmem:[#allocation8 + $0x2a8] ss:$24 sps:$4 sm:$0xff]   ;;  %v8320_v42 = vld [vmem:[#allocation8 + $0x27c] ss:$24 sps:$4 sm:$0xff]  }
  0x40   :  { %807 = vmatpush1.bf16.msra.mxu0 %v8286_v18  ;;  %s135_s17 = sshra.s32 %s9358_s30, 3  ;;  %s125_s2 = sand.u32 7, %s9353_s24  ;;  %v8322_v43 = vld [vmem:[#allocation8 + $0x270] ss:$24 sps:$4 sm:$0xff]   ;;  %v8324_v46 = vld [vmem:[#allocation8 + $0x244] ss:$24 sps:$4 sm:$0xff]  }
  0x41   :  { %848 = vmatpush1.bf16.msra.mxu1 %v8287_v19  ;;  %808 = vmatprep.subr.bf16.mxu0 %v8288_v20  ;;  %s148_s18 = sshra.s32 %s9360_s8, 3  ;;  %s8243_s0 = sshll.u32 %s122_s15, 4  ;;  %v8323_v44 = vld [vmem:[#allocation8 + $0x278] ss:$24 sps:$4 sm:$0xff]   ;;  %v8326_v47 = vld [vmem:[#allocation8 + $0x24c] ss:$24 sps:$4 sm:$0xff]  }
  0x42   :  { %849 = vmatprep.subr.bf16.mxu1 %v8290_v21  ;;  %s138_s19 = sand.u32 7, %s9358_s30  ;;  %s8244_s20 = sshll.u32 %s135_s17, 4  ;;  %v8328_v48 = vld [vmem:[#allocation8 + $0x240] ss:$24 sps:$4 sm:$0xff]   ;;  %v8330_v50 = vld [vmem:[#allocation8 + $0x214] ss:$24 sps:$4 sm:$0xff]  }
  0x43   :  { %s161_s1 = sshra.s32 %s9366_s11, 3  ;;  %s151_s3 = sand.u32 7, %s9360_s8  ;;  %v8329_v49 = vld [vmem:[#allocation8 + $0x248] ss:$24 sps:$4 sm:$0xff]   ;;  %v8332_v51 = vld [vmem:[#allocation8 + $0x21c] ss:$24 sps:$4 sm:$0xff]  }
  0x44   :  { %809 = vmatpush1.bf16.msra.mxu0 %v8292_v22  ;;  %s8245_s21 = sshll.u32 %s148_s18, 4  ;;  %s164_s22 = sand.u32 7, %s9366_s11  ;;  %v8334_v60 = vld [vmem:[#allocation8 + $0x210] ss:$24 sps:$4 sm:$0xff]   ;;  %v8336_v62 = vld [vmem:[#allocation8 + $0x1e4] ss:$24 sps:$4 sm:$0xff]  }
  0x45   :  { %850 = vmatpush1.bf16.msra.mxu1 %v8293_v23  ;;  %810 = vmatprep.subr.bf16.mxu0 %v8294_v24  ;;  %s174_s23 = sshra.s32 %s9369_s14, 3  ;;  %s8246_s24 = sshll.u32 %s161_s1, 4  ;;  %v8335_v61 = vld [vmem:[#allocation8 + $0x218] ss:$24 sps:$4 sm:$0xff]   ;;  %v8338_v63 = vld [vmem:[#allocation8 + $0x1ec] ss:$24 sps:$4 sm:$0xff]  }
  0x46   :  { %851 = vmatprep.subr.bf16.mxu1 %v8296_v25  ;;  %s177_s25 = sand.u32 7, %s9369_s14  ;;  %s9383_s26 = sadd.s32 %s8243_s0, %s125_s2  ;;  %v8340_v0 = vld [vmem:[#allocation8 + $0x1e0] ss:$24 sps:$4 sm:$0xff]   ;;  %v8342_v2 = vld [vmem:[#allocation8 + $0x1b4] ss:$24 sps:$4 sm:$0xff]  }
  0x47   :  { %s8247_s27 = sshll.u32 %s174_s23, 4  ;;  %s9385_s28 = sadd.s32 %s8244_s20, %s138_s19  ;;  %v8341_v1 = vld [vmem:[#allocation8 + $0x1e8] ss:$24 sps:$4 sm:$0xff]   ;;  %v8344_v3 = vld [vmem:[#allocation8 + $0x1bc] ss:$24 sps:$4 sm:$0xff]  }
  0x48   :  { %811 = vmatpush1.bf16.msra.mxu0 %v8298_v26  ;;  %s9387_s29 = sadd.s32 %s8245_s21, %s151_s3  ;;  %s9394_s30 = sadd.s32 %s8246_s24, %s164_s22  ;;  %v8346_v6 = vld [vmem:[#allocation8 + $0x1b0] ss:$24 sps:$4 sm:$0xff]   ;;  %v8348_v8 = vld [vmem:[#allocation8 + $0x184] ss:$24 sps:$4 sm:$0xff]   ;;  %v8352_v10 = vld [vmem:[#allocation8 + $0x180] ss:$24 sps:$4 sm:$0xff]  }
  0x49   :  { %852 = vmatpush1.bf16.msra.mxu1 %v8299_v27  ;;  %812 = vmatprep.subr.bf16.mxu0 %v8300_v28  ;;  %s9396_s8 = sadd.s32 %s8247_s27, %s177_s25  ;;  %s87_s11 = scalar_lea.vmem [#allocation7], %s9362_s9  ;;  %v8347_v7 = vld [vmem:[#allocation8 + $0x1b8] ss:$24 sps:$4 sm:$0xff]   ;;  %v8350_v9 = vld [vmem:[#allocation8 + $0x18c] ss:$24 sps:$4 sm:$0xff]  }
  0x4a   :  { %853 = vmatprep.subr.bf16.mxu1 %v8302_v29  ;;  %v88_v52 = vld [vmem:[%s87_s11] ss:$8 sm:$0x3]  ;;  %s103_s12 = scalar_lea.vmem [#allocation7], %s9364_s10  ;;  %s116_s13 = scalar_lea.vmem [#allocation7], %s9372_s16 }
  0x4b   :  { %v104_v53 = vld [vmem:[%s103_s12] ss:$8 sm:$0x3]  ;;  %93 = vst.msk [vmem:[#allocation2] ss:$8 sm:$0x3] %vm9390_vm0, %v88_v52 }
  0x4c   :  { %813 = vmatpush1.bf16.msra.mxu0 %v8304_v30  ;;  %106 = vst.msk [vmem:[#allocation2 + $0x1] ss:$8 sm:$0x3] %vm9390_vm0, %v104_v53  ;;  %v117_v54 = vld [vmem:[%s116_s13] ss:$8 sm:$0x3] }
  0x4d   :  { %854 = vmatpush1.bf16.msra.mxu1 %v8305_v31  ;;  %814 = vmatprep.subr.bf16.mxu0 %v8306_v32  ;;  %s129_s14 = scalar_lea.vmem [#allocation7], %s9383_s26  ;;  %119 = vst.msk [vmem:[#allocation2 + $0x2] ss:$8 sm:$0x3] %vm9390_vm0, %v117_v54  ;;  %s142_s9 = scalar_lea.vmem [#allocation7], %s9385_s28 }
  0x4e   :  { %855 = vmatprep.subr.bf16.mxu1 %v8308_v33  ;;  %v130_v55 = vld [vmem:[%s129_s14] ss:$8 sm:$0x3]  ;;  %s155_s10 = scalar_lea.vmem [#allocation7], %s9387_s29  ;;  %s168_s15 = scalar_lea.vmem [#allocation7], %s9394_s30 }
  0x4f   :  { %132 = vst.msk [vmem:[#allocation2 + $0x3] ss:$8 sm:$0x3] %vm9390_vm0, %v130_v55  ;;  %v143_v56 = vld [vmem:[%s142_s9] ss:$8 sm:$0x3] }
  0x50   :  { %815 = vmatpush2.bf16.msra.mxu0 %v8310_v34  ;;  %v156_v57 = vld [vmem:[%s155_s10] ss:$8 sm:$0x3]  ;;  %145 = vst.msk [vmem:[#allocation2 + $0x4] ss:$8 sm:$0x3] %vm9390_vm0, %v143_v56 }
  0x51   :  { %856 = vmatpush2.bf16.msra.mxu1 %v8311_v35  ;;  %816 = vmatprep.subr.bf16.mxu0 %v8312_v36  ;;  %158 = vst.msk [vmem:[#allocation2 + $0x5] ss:$8 sm:$0x3] %vm9390_vm0, %v156_v57  ;;  %v169_v58 = vld [vmem:[%s168_s15] ss:$8 sm:$0x3] }
  0x52   :  { %857 = vmatprep.subr.bf16.mxu1 %v8314_v37  ;;  %s181_s16 = scalar_lea.vmem [#allocation7], %s9396_s8  ;;  %171 = vst.msk [vmem:[#allocation2 + $0x6] ss:$8 sm:$0x3] %vm9390_vm0, %v169_v58  ;;  %v8353_v11 = vld [vmem:[#allocation8 + $0x188] ss:$24 sps:$4 sm:$0xff]  }
  0x53   :  { %v182_v59 = vld [vmem:[%s181_s16] ss:$8 sm:$0x3]  ;;  %v8356_v13 = vld [vmem:[#allocation8 + $0x164] ss:$24 sps:$4 sm:$0xff]   ;;  %v9427_v36 = vshrl.u32 %v89_v40, 7 }
  0x54   :  { %817 = vmatpush2.bf16.msra.mxu0 %v8316_v38  ;;  %184 = vst.msk [vmem:[#allocation2 + $0x7] ss:$8 sm:$0x3] %vm9390_vm0, %v182_v59  ;;  %v8359_v14 = vld [vmem:[#allocation10 + $0x154] ss:$24 sps:$4 sm:$0xff]  }
  0x55   :  { %858 = vmatpush2.bf16.msra.mxu1 %v8317_v39  ;;  %818 = vmatprep.subr.bf16.mxu0 %v8318_v41  ;;  %v8354_v16 = vld [vmem:[#allocation8 + $0x160] ss:$24 sps:$4 sm:$0xff]   ;;  %v8357_v17 = vld [vmem:[#allocation10 + $0x150] ss:$24 sps:$4 sm:$0xff]   ;;  %v8362_v18 = vld [vmem:[#allocation8 + $0x134] ss:$24 sps:$4 sm:$0xff]  }
  0x56   :  { %859 = vmatprep.subr.bf16.mxu1 %v8320_v42  ;;  %v8365_v19 = vld [vmem:[#allocation10 + $0x124] ss:$24 sps:$4 sm:$0xff]   ;;  %v8360_v20 = vld [vmem:[#allocation8 + $0x130] ss:$24 sps:$4 sm:$0xff]   ;;  %v8363_v21 = vld [vmem:[#allocation10 + $0x120] ss:$24 sps:$4 sm:$0xff]  }
  0x57   :  { %v8368_v22 = vld [vmem:[#allocation8 + $0x104] ss:$24 sps:$4 sm:$0xff]   ;;  %v8371_v23 = vld [vmem:[#allocation10 + $0xf4] ss:$24 sps:$4 sm:$0xff]   ;;  %v8366_v24 = vld [vmem:[#allocation8 + $0x100] ss:$24 sps:$4 sm:$0xff]  }
  0x58   :  { %819 = vmatpush2.bf16.msra.mxu0 %v8322_v43  ;;  %v8369_v25 = vld [vmem:[#allocation10 + $0xf0] ss:$24 sps:$4 sm:$0xff]   ;;  %v8374_v26 = vld [vmem:[#allocation8 + $0xd4] ss:$24 sps:$4 sm:$0xff]   ;;  %v8377_v27 = vld [vmem:[#allocation10 + $0xc4] ss:$24 sps:$4 sm:$0xff]  }
  0x59   :  { %860 = vmatpush2.bf16.msra.mxu1 %v8323_v44  ;;  %820 = vmatprep.subr.bf16.mxu0 %v8324_v46  ;;  %v8372_v28 = vld [vmem:[#allocation8 + $0xd0] ss:$24 sps:$4 sm:$0xff]   ;;  %v8375_v29 = vld [vmem:[#allocation10 + $0xc0] ss:$24 sps:$4 sm:$0xff]   ;;  %v8380_v30 = vld [vmem:[#allocation8 + $0xa4] ss:$24 sps:$4 sm:$0xff]  }
  0x5a   :  { %861 = vmatprep.subr.bf16.mxu1 %v8326_v47  ;;  %v8383_v31 = vld [vmem:[#allocation10 + $0x94] ss:$24 sps:$4 sm:$0xff]   ;;  %v8378_v32 = vld [vmem:[#allocation8 + $0xa0] ss:$24 sps:$4 sm:$0xff]   ;;  %v8381_v33 = vld [vmem:[#allocation10 + $0x90] ss:$24 sps:$4 sm:$0xff]  }
  0x5b   :  { %v187_v4 = vld [vmem:[#allocation2 + $0x8] sm:$0xff]  ;;  %v186_v12 = vld [vmem:[#allocation2] sm:$0xff]  ;;  %v9430_v42 = vsub.s32 1, %v9427_v36 }
  0x5c   :  { %821 = vmatpush2.bf16.msra.mxu0 %v8328_v48  ;;  %v189_v5 = vpack.c.bf16 %v187_v4, %v187_v4  ;;  %v9422_v15 = vpack.c.bf16 %v186_v12, %v186_v12  ;;  %v8386_v34 = vld [vmem:[#allocation8 + $0x74] ss:$24 sps:$4 sm:$0xff]   ;;  %v8389_v35 = vld [vmem:[#allocation10 + $0x64] ss:$24 sps:$4 sm:$0xff]   ;;  %v8384_v37 = vld [vmem:[#allocation8 + $0x70] ss:$24 sps:$4 sm:$0xff]  }
  0x5d   :  { %862 = vmatpush2.bf16.msra.mxu1 %v8329_v49  ;;  %822 = vmatprep.subr.bf16.mxu0 %v8330_v50  ;;  %v8387_v38 = vld [vmem:[#allocation10 + $0x60] ss:$24 sps:$4 sm:$0xff]   ;;  %v8392_v39 = vld [vmem:[#allocation8 + $0x44] ss:$24 sps:$4 sm:$0xff]   ;;  %v8395_v41 = vld [vmem:[#allocation10 + $0x34] ss:$24 sps:$4 sm:$0xff]  }
  0x5e   :  { %863 = vmatprep.subr.bf16.mxu1 %v8332_v51  ;;  %830 = vmatprep.mubr.bf16.mxu0 %v189_v5  ;;  %v8390_v43 = vld [vmem:[#allocation8 + $0x40] ss:$24 sps:$4 sm:$0xff]   ;;  %v8393_v44 = vld [vmem:[#allocation10 + $0x30] ss:$24 sps:$4 sm:$0xff]   ;;  %v8398_v46 = vld [vmem:[#allocation8 + $0x14] ss:$24 sps:$4 sm:$0xff]  }
  0x5f   :  { %871 = vmatprep.mubr.bf16.mxu1 %v189_v5  ;;  %v8401_v40 = vld [vmem:[#allocation10 + $0x4] ss:$24 sps:$4 sm:$0xff]   ;;  %v9435_v47 = vld [vmem:[%s11074_s6] sm:$0x3]  ;;  %v8399_v49 = vld [vmem:[#allocation10] ss:$24 sps:$4 sm:$0xff]  }
  0x60   :  { %823 = vmatpush2.bf16.msra.mxu0 %v8334_v60  ;;  %v8396_v48 = vld [vmem:[#allocation8 + $0x10] ss:$24 sps:$4 sm:$0xff]   ;;  %v9439_v50 = vrot.slane %v9435_v47, %v9430_v42  ;;  %v8404_v51 = vld [vmem:[#allocation8 + $0x2e4] ss:$24 sps:$4 sm:$0xff]   ;;  %v8407_v52 = vld [vmem:[#allocation10 + $0x2d4] ss:$24 sps:$4 sm:$0xff]  }
  0x61   :  { %864 = vmatpush2.bf16.msra.mxu1 %v8335_v61  ;;  %824 = vmatprep.subr.bf16.mxu0 %v8336_v62  ;;  %v8402_v54 = vld [vmem:[#allocation8 + $0x2e0] ss:$24 sps:$4 sm:$0xff]   ;;  %v8405_v55 = vld [vmem:[#allocation10 + $0x2d0] ss:$24 sps:$4 sm:$0xff]   ;;  %v8410_v56 = vld [vmem:[#allocation8 + $0x2b4] ss:$24 sps:$4 sm:$0xff]  }
  0x62   :  { %865 = vmatprep.subr.bf16.mxu1 %v8338_v63  ;;  %v9443_v53 = vpack.c.bf16 %v9439_v50, %v9439_v50  ;;  %v8413_v57 = vld [vmem:[#allocation10 + $0x2a4] ss:$24 sps:$4 sm:$0xff]   ;;  %v8408_v58 = vld [vmem:[#allocation8 + $0x2b0] ss:$24 sps:$4 sm:$0xff]   ;;  %v8411_v59 = vld [vmem:[#allocation10 + $0x2a0] ss:$24 sps:$4 sm:$0xff]  }
  0x63   :  { %v8416_v60 = vld [vmem:[#allocation8 + $0x284] ss:$24 sps:$4 sm:$0xff]   ;;  %v8419_v61 = vld [vmem:[#allocation10 + $0x274] ss:$24 sps:$4 sm:$0xff]   ;;  %v8414_v62 = vld [vmem:[#allocation8 + $0x280] ss:$24 sps:$4 sm:$0xff]  }
  0x64   :  { %825 = vmatpush2.bf16.msra.mxu0 %v8340_v0  ;;  %v8417_v63 = vld [vmem:[#allocation10 + $0x270] ss:$24 sps:$4 sm:$0xff]   ;;  %v8422_v0 = vld [vmem:[#allocation8 + $0x254] ss:$24 sps:$4 sm:$0xff]   ;;  %v8428_v4 = vld [vmem:[#allocation8 + $0x224] ss:$24 sps:$4 sm:$0xff]  }
  0x65   :  { %866 = vmatpush2.bf16.msra.mxu1 %v8341_v1  ;;  %826 = vmatprep.subr.bf16.mxu0 %v8342_v2  ;;  %v8425_v1 = vld [vmem:[#allocation10 + $0x244] ss:$24 sps:$4 sm:$0xff]   ;;  %v8420_v2 = vld [vmem:[#allocation8 + $0x250] ss:$24 sps:$4 sm:$0xff]  }
  0x66   :  { %867 = vmatprep.subr.bf16.mxu1 %v8344_v3  ;;  %v8423_v3 = vld [vmem:[#allocation10 + $0x240] ss:$24 sps:$4 sm:$0xff]   ;;  %v8440_v12 = vld [vmem:[#allocation8 + $0x1c4] ss:$24 sps:$4 sm:$0xff]  }
  0x68   :  { %827 = vmatpush2.bf16.msra.mxu0 %v8346_v6  ;;  %v8426_v6 = vld [vmem:[#allocation8 + $0x220] ss:$24 sps:$4 sm:$0xff]  }
  0x69   :  { %868 = vmatpush2.bf16.msra.mxu1 %v8347_v7  ;;  %828 = vmatprep.subr.bf16.mxu0 %v8348_v8  ;;  %v8429_v7 = vld [vmem:[#allocation10 + $0x210] ss:$24 sps:$4 sm:$0xff]   ;;  %v8434_v8 = vld [vmem:[#allocation8 + $0x1f4] ss:$24 sps:$4 sm:$0xff]  }
  0x6a   :  { %869 = vmatprep.subr.bf16.mxu1 %v8350_v9  ;;  %v8437_v9 = vld [vmem:[#allocation10 + $0x1e4] ss:$24 sps:$4 sm:$0xff]  }
  0x6c   :  { %829 = vmatpush2.bf16.msra.mxu0 %v8352_v10  ;;  %v8432_v10 = vld [vmem:[#allocation8 + $0x1f0] ss:$24 sps:$4 sm:$0xff]  }
  0x6d   :  { %870 = vmatpush2.bf16.msra.mxu1 %v8353_v11  ;;  %880 = vmatprep.subr.bf16.mxu0 %v8356_v13  ;;  %v8435_v11 = vld [vmem:[#allocation10 + $0x1e0] ss:$24 sps:$4 sm:$0xff]   ;;  %v8443_v13 = vld [vmem:[#allocation10 + $0x1b4] ss:$24 sps:$4 sm:$0xff]  }
  0x6e   :  { %1512 = vmatprep.subr.bf16.mxu1 %v8359_v14  ;;  %v8438_v14 = vld [vmem:[#allocation8 + $0x1c0] ss:$24 sps:$4 sm:$0xff]  }
  0x6f   :  { %831 = vmatmul.mubr.bf16.vlgmr.msra.gmra.mxu0 %v9422_v15 }
  0x70   :  { %872 = vmatmul.mubr.bf16.vlgmr.msra.gmra.mxu1 %v9422_v15  ;;  %881 = vmatpush1.bf16.msra.mxu0 %v8354_v16  ;;  %v8441_v16 = vld [vmem:[#allocation10 + $0x1b0] ss:$24 sps:$4 sm:$0xff]  }
  0x71   :  { %1513 = vmatpush1.bf16.msra.mxu1 %v8357_v17  ;;  %882 = vmatprep.subr.bf16.mxu0 %v8362_v18  ;;  %v9447_v17 = vsub.s32 0, %v9427_v36  ;;  %v8446_v18 = vld [vmem:[#allocation8 + $0x194] ss:$24 sps:$4 sm:$0xff]  }
  0x72   :  { %1514 = vmatprep.subr.bf16.mxu1 %v8365_v19  ;;  %912 = vmatprep.mubr.bf16.mxu0 %v189_v5  ;;  %v8431_v5 = vld [vmem:[#allocation10 + $0x214] ss:$24 sps:$4 sm:$0xff]   ;;  %v8449_v19 = vld [vmem:[#allocation10 + $0x184] ss:$24 sps:$4 sm:$0xff]  }
  0x73   :  { %1544 = vmatprep.mubr.bf16.mxu1 %v9443_v53 }
  0x74   :  { %883 = vmatpush1.bf16.msra.mxu0 %v8360_v20  ;;  %v8444_v20 = vld [vmem:[#allocation8 + $0x190] ss:$24 sps:$4 sm:$0xff]  }
  0x75   :  { %1515 = vmatpush1.bf16.msra.mxu1 %v8363_v21  ;;  %884 = vmatprep.subr.bf16.mxu0 %v8368_v22  ;;  %v9449_v21 = vld [vmem:[#allocation10 + $0x180] ss:$24 sps:$4 sm:$0xff]   ;;  %v9453_v22 = vrot.slane %v9435_v47, %v9447_v17  ;;  %v8485_v47 = vld [vmem:[#allocation10 + $0x74] ss:$24 sps:$4 sm:$0xff]  }
  0x76   :  { %1516 = vmatprep.subr.bf16.mxu1 %v8371_v23  ;;  %v9455_v23 = vld [vmem:[#allocation10 + $0x15c] ss:$24 sps:$4 sm:$0xff]  }
  0x78   :  { %885 = vmatpush1.bf16.msra.mxu0 %v8366_v24  ;;  %v9457_v24 = vld [vmem:[#allocation10 + $0x164] ss:$24 sps:$4 sm:$0xff]  }
  0x79   :  { %1517 = vmatpush1.bf16.msra.mxu1 %v8369_v25  ;;  %886 = vmatprep.subr.bf16.mxu0 %v8374_v26  ;;  %v9461_v25 = vpack.c.bf16 %v9453_v22, %v9453_v22  ;;  %v9463_v26 = vld [vmem:[#allocation10 + $0x158] ss:$24 sps:$4 sm:$0xff]  }
  0x7a   :  { %1518 = vmatprep.subr.bf16.mxu1 %v8377_v27  ;;  %v8453_v27 = vld [vmem:[#allocation10 + $0x160] ss:$24 sps:$4 sm:$0xff]  }
  0x7c   :  { %887 = vmatpush1.bf16.msra.mxu0 %v8372_v28  ;;  %v9466_v28 = vld [vmem:[#allocation10 + $0x12c] ss:$24 sps:$4 sm:$0xff]  }
  0x7d   :  { %1519 = vmatpush1.bf16.msra.mxu1 %v8375_v29  ;;  %888 = vmatprep.subr.bf16.mxu0 %v8380_v30  ;;  %v8461_v29 = vld [vmem:[#allocation10 + $0x134] ss:$24 sps:$4 sm:$0xff]   ;;  %v9472_v30 = vld [vmem:[#allocation10 + $0x128] ss:$24 sps:$4 sm:$0xff]  }
  0x7e   :  { %1520 = vmatprep.subr.bf16.mxu1 %v8383_v31  ;;  %v8459_v31 = vld [vmem:[#allocation10 + $0x130] ss:$24 sps:$4 sm:$0xff]  }
  0x80   :  { %889 = vmatpush1.bf16.msra.mxu0 %v8378_v32  ;;  %v9476_v32 = vld [vmem:[#allocation10 + $0xfc] ss:$24 sps:$4 sm:$0xff]  }
  0x81   :  { %1521 = vmatpush1.bf16.msra.mxu1 %v8381_v33  ;;  %890 = vmatprep.subr.bf16.mxu0 %v8386_v34  ;;  %v8467_v33 = vld [vmem:[#allocation10 + $0x104] ss:$24 sps:$4 sm:$0xff]   ;;  %v9478_v34 = vld [vmem:[#allocation10 + $0xf8] ss:$24 sps:$4 sm:$0xff]  }
  0x82   :  { %1522 = vmatprep.subr.bf16.mxu1 %v8389_v35  ;;  %v8465_v35 = vld [vmem:[#allocation10 + $0x100] ss:$24 sps:$4 sm:$0xff]  }
  0x84   :  { %891 = vmatpush1.bf16.msra.mxu0 %v8384_v37  ;;  %v8473_v37 = vld [vmem:[#allocation10 + $0xd4] ss:$24 sps:$4 sm:$0xff]  }
  0x85   :  { %1523 = vmatpush1.bf16.msra.mxu1 %v8387_v38  ;;  %892 = vmatprep.subr.bf16.mxu0 %v8392_v39  ;;  %v9486_v38 = vld [vmem:[#allocation10 + $0xc8] ss:$24 sps:$4 sm:$0xff]  }
  0x86   :  { %1524 = vmatprep.subr.bf16.mxu1 %v8395_v41  ;;  %v8471_v39 = vld [vmem:[#allocation10 + $0xd0] ss:$24 sps:$4 sm:$0xff]   ;;  %v9488_v41 = vld [vmem:[#allocation10 + $0x9c] ss:$24 sps:$4 sm:$0xff]  }
  0x88   :  { %893 = vmatpush1.bf16.msra.mxu0 %v8390_v43  ;;  %v8479_v43 = vld [vmem:[#allocation10 + $0xa4] ss:$24 sps:$4 sm:$0xff]  }
  0x89   :  { %1525 = vmatpush1.bf16.msra.mxu1 %v8393_v44  ;;  %894 = vmatprep.subr.bf16.mxu0 %v8398_v46  ;;  %v9492_v44 = vld [vmem:[#allocation10 + $0x98] ss:$24 sps:$4 sm:$0xff]  }
  0x8a   :  { %1526 = vmatprep.subr.bf16.mxu1 %v8401_v40  ;;  %v8477_v46 = vld [vmem:[#allocation10 + $0xa0] ss:$24 sps:$4 sm:$0xff]   ;;  %v9494_v40 = vld [vmem:[#allocation10 + $0x6c] ss:$24 sps:$4 sm:$0xff]  }
  0x8c   :  { %895 = vmatpush1.bf16.msra.mxu0 %v8396_v48  ;;  %v9498_v48 = vld [vmem:[#allocation10 + $0x68] ss:$24 sps:$4 sm:$0xff]  }
  0x8d   :  { %1527 = vmatpush1.bf16.msra.mxu1 %v8399_v49  ;;  %896 = vmatprep.subr.bf16.mxu0 %v8404_v51  ;;  %v8483_v49 = vld [vmem:[#allocation10 + $0x70] ss:$24 sps:$4 sm:$0xff]   ;;  %v9500_v51 = vld [vmem:[#allocation10 + $0x3c] ss:$24 sps:$4 sm:$0xff]  }
  0x8e   :  { %1528 = vmatprep.subr.bf16.mxu1 %v8407_v52  ;;  %v8491_v52 = vld [vmem:[#allocation10 + $0x44] ss:$24 sps:$4 sm:$0xff]  }
  0x90   :  { %897 = vmatpush2.bf16.msra.mxu0 %v8402_v54  ;;  %v9506_v54 = vld [vmem:[#allocation10 + $0x40] ss:$24 sps:$4 sm:$0xff]  }
  0x91   :  { %1529 = vmatpush2.bf16.msra.mxu1 %v8405_v55  ;;  %898 = vmatprep.subr.bf16.mxu0 %v8410_v56  ;;  %v9508_v55 = vld [vmem:[#allocation10 + $0xc] ss:$24 sps:$4 sm:$0xff]  }
  0x92   :  { %1530 = vmatprep.subr.bf16.mxu1 %v8413_v57  ;;  %v9510_v56 = vld [vmem:[#allocation10 + $0x14] ss:$24 sps:$4 sm:$0xff]   ;;  %v9514_v57 = vld [vmem:[#allocation10 + $0x8] ss:$24 sps:$4 sm:$0xff]  }
  0x94   :  { %899 = vmatpush2.bf16.msra.mxu0 %v8408_v58  ;;  %v9516_v58 = vld [vmem:[#allocation10 + $0x10] ss:$24 sps:$4 sm:$0xff]  }
  0x95   :  { %1531 = vmatpush2.bf16.msra.mxu1 %v8411_v59  ;;  %900 = vmatprep.subr.bf16.mxu0 %v8416_v60  ;;  %v9518_v59 = vld [vmem:[#allocation10 + $0x2dc] ss:$24 sps:$4 sm:$0xff]  }
  0x96   :  { %1532 = vmatprep.subr.bf16.mxu1 %v8419_v61  ;;  %v9520_v60 = vld [vmem:[#allocation10 + $0x2e4] ss:$24 sps:$4 sm:$0xff]   ;;  %v9526_v61 = vld [vmem:[#allocation10 + $0x2d8] ss:$24 sps:$4 sm:$0xff]  }
  0x98   :  { %901 = vmatpush2.bf16.msra.mxu0 %v8414_v62  ;;  %v9528_v62 = vld [vmem:[#allocation10 + $0x2e0] ss:$24 sps:$4 sm:$0xff]  }
  0x99   :  { %1533 = vmatpush2.bf16.msra.mxu1 %v8417_v63  ;;  %902 = vmatprep.subr.bf16.mxu0 %v8422_v0  ;;  %v9530_v63 = vld [vmem:[#allocation10 + $0x2ac] ss:$24 sps:$4 sm:$0xff]  }
  0x9a   :  { %1534 = vmatprep.subr.bf16.mxu1 %v8425_v1  ;;  %v9532_v0 = vld [vmem:[#allocation10 + $0x2b4] ss:$24 sps:$4 sm:$0xff]   ;;  %v9538_v1 = vld [vmem:[#allocation10 + $0x2a8] ss:$24 sps:$4 sm:$0xff]  }
  0x9c   :  { %903 = vmatpush2.bf16.msra.mxu0 %v8420_v2  ;;  %v9540_v2 = vld [vmem:[#allocation10 + $0x2b0] ss:$24 sps:$4 sm:$0xff]  }
  0x9d   :  { %1535 = vmatpush2.bf16.msra.mxu1 %v8423_v3  ;;  %904 = vmatprep.subr.bf16.mxu0 %v8428_v4  ;;  %v9542_v3 = vld [vmem:[#allocation10 + $0x27c] ss:$24 sps:$4 sm:$0xff]  }
  0x9e   :  { %1536 = vmatprep.subr.bf16.mxu1 %v8431_v5  ;;  %v9544_v4 = vld [vmem:[#allocation10 + $0x284] ss:$24 sps:$4 sm:$0xff]   ;;  %v9550_v5 = vld [vmem:[#allocation10 + $0x278] ss:$24 sps:$4 sm:$0xff]  }
  0xa0   :  { %905 = vmatpush2.bf16.msra.mxu0 %v8426_v6  ;;  %v9552_v6 = vld [vmem:[#allocation10 + $0x280] ss:$24 sps:$4 sm:$0xff]  }
  0xa1   :  { %1537 = vmatpush2.bf16.msra.mxu1 %v8429_v7  ;;  %906 = vmatprep.subr.bf16.mxu0 %v8434_v8  ;;  %v9554_v7 = vld [vmem:[#allocation10 + $0x24c] ss:$24 sps:$4 sm:$0xff]  }
  0xa2   :  { %1538 = vmatprep.subr.bf16.mxu1 %v8437_v9  ;;  %v9556_v8 = vld [vmem:[#allocation10 + $0x254] ss:$24 sps:$4 sm:$0xff]   ;;  %v9562_v9 = vld [vmem:[#allocation10 + $0x248] ss:$24 sps:$4 sm:$0xff]  }
  0xa4   :  { %907 = vmatpush2.bf16.msra.mxu0 %v8432_v10  ;;  %v9564_v10 = vld [vmem:[#allocation10 + $0x250] ss:$24 sps:$4 sm:$0xff]  }
  0xa5   :  { %1539 = vmatpush2.bf16.msra.mxu1 %v8435_v11  ;;  %908 = vmatprep.subr.bf16.mxu0 %v8440_v12  ;;  %v9566_v11 = vld [vmem:[#allocation10 + $0x21c] ss:$24 sps:$4 sm:$0xff]  }
  0xa6   :  { %1540 = vmatprep.subr.bf16.mxu1 %v8443_v13  ;;  %v9568_v12 = vld [vmem:[#allocation10 + $0x224] ss:$24 sps:$4 sm:$0xff]   ;;  %v9574_v13 = vld [vmem:[#allocation10 + $0x218] ss:$24 sps:$4 sm:$0xff]  }
  0xa8   :  { %909 = vmatpush2.bf16.msra.mxu0 %v8438_v14  ;;  %v9576_v14 = vld [vmem:[#allocation10 + $0x220] ss:$24 sps:$4 sm:$0xff]  }
  0xa9   :  { %1541 = vmatpush2.bf16.msra.mxu1 %v8441_v16  ;;  %910 = vmatprep.subr.bf16.mxu0 %v8446_v18  ;;  %v9578_v16 = vld [vmem:[#allocation10 + $0x1ec] ss:$24 sps:$4 sm:$0xff]  }
  0xaa   :  { %1542 = vmatprep.subr.bf16.mxu1 %v8449_v19  ;;  %v9580_v18 = vld [vmem:[#allocation10 + $0x1f4] ss:$24 sps:$4 sm:$0xff]   ;;  %v9586_v19 = vld [vmem:[#allocation10 + $0x1e8] ss:$24 sps:$4 sm:$0xff]  }
  0xac   :  { %911 = vmatpush2.bf16.msra.mxu0 %v8444_v20  ;;  %v9588_v20 = vld [vmem:[#allocation10 + $0x1f0] ss:$24 sps:$4 sm:$0xff]  }
  0xad   :  { %1543 = vmatpush2.bf16.msra.mxu1 %v9449_v21  ;;  %1553 = vmatprep.subr.bf16.mxu0 %v9455_v23 }
  0xae   :  { %1594 = vmatprep.subr.bf16.mxu1 %v9457_v24 }
  0xaf   :  { %913 = vmatmul.mubr.bf16.vlgmr.msra.gmra.mxu0 %v9422_v15  ;;  %v9482_v15 = vld [vmem:[#allocation10 + $0xcc] ss:$24 sps:$4 sm:$0xff]  }
  0xb0   :  { %1545 = vmatmul.mubr.bf16.vlgmr.msra.gmra.mxu1 %v9461_v25  ;;  %1554 = vmatpush1.bf16.msra.mxu0 %v9463_v26 }
  0xb1   :  { %1595 = vmatpush1.bf16.msra.mxu1 %v8453_v27  ;;  %1555 = vmatprep.subr.bf16.mxu0 %v9466_v28  ;;  %v9590_v27 = vld [vmem:[#allocation10 + $0x1bc] ss:$24 sps:$4 sm:$0xff]  }
  0xb2   :  { %1596 = vmatprep.subr.bf16.mxu1 %v8461_v29  ;;  %1585 = vmatprep.mubr.bf16.mxu0 %v9443_v53  ;;  %v9592_v29 = vld [vmem:[#allocation10 + $0x1c4] ss:$24 sps:$4 sm:$0xff]  }
  0xb3   :  { %1626 = vmatprep.mubr.bf16.mxu1 %v9443_v53  ;;  %v9504_v53 = vld [vmem:[#allocation10 + $0x38] ss:$24 sps:$4 sm:$0xff]  }
  0xb4   :  { %1556 = vmatpush1.bf16.msra.mxu0 %v9472_v30 }
  0xb5   :  { %1597 = vmatpush1.bf16.msra.mxu1 %v8459_v31  ;;  %1557 = vmatprep.subr.bf16.mxu0 %v9476_v32  ;;  %v9598_v31 = vld [vmem:[#allocation10 + $0x1b8] ss:$24 sps:$4 sm:$0xff]  }
  0xb6   :  { %1598 = vmatprep.subr.bf16.mxu1 %v8467_v33  ;;  %v9600_v33 = vld [vmem:[#allocation10 + $0x1c0] ss:$24 sps:$4 sm:$0xff]  }
  0xb8   :  { %1558 = vmatpush1.bf16.msra.mxu0 %v9478_v34 }
  0xb9   :  { %1599 = vmatpush1.bf16.msra.mxu1 %v8465_v35  ;;  %1559 = vmatprep.subr.bf16.mxu0 %v9482_v15  ;;  %v9602_v35 = vld [vmem:[#allocation10 + $0x18c] ss:$24 sps:$4 sm:$0xff]  }
  0xba   :  { %1600 = vmatprep.subr.bf16.mxu1 %v8473_v37  ;;  %v9604_v37 = vld [vmem:[#allocation10 + $0x194] ss:$24 sps:$4 sm:$0xff]  }
  0xbc   :  { %1560 = vmatpush1.bf16.msra.mxu0 %v9486_v38 }
  0xbd   :  { %1601 = vmatpush1.bf16.msra.mxu1 %v8471_v39  ;;  %1561 = vmatprep.subr.bf16.mxu0 %v9488_v41  ;;  %v9610_v39 = vld [vmem:[#allocation10 + $0x188] ss:$24 sps:$4 sm:$0xff]  }
  0xbe   :  { %1602 = vmatprep.subr.bf16.mxu1 %v8479_v43  ;;  %v9612_v43 = vld [vmem:[#allocation10 + $0x190] ss:$24 sps:$4 sm:$0xff]  }
  0xbf   :  { %11169 = vst [vmem:[#allocation16_spill] sm:$0xff] %v9612_v43 }
  0xc0   :  { %1562 = vmatpush1.bf16.msra.mxu0 %v9492_v44 }
  0xc1   :  { %1603 = vmatpush1.bf16.msra.mxu1 %v8477_v46  ;;  %1563 = vmatprep.subr.bf16.mxu0 %v9494_v40  ;;  %v9138_v46 = vld [vmem:[#allocation10 + $0x154] ss:$24 sps:$4 sm:$0xff]  }
  0xc2   :  { %1604 = vmatprep.subr.bf16.mxu1 %v8485_v47  ;;  %v9139_v47 = vld [vmem:[#allocation10 + $0x150] ss:$24 sps:$4 sm:$0xff]  }
  0xc4   :  { %1564 = vmatpush1.bf16.msra.mxu0 %v9498_v48 }
  0xc5   :  { %1605 = vmatpush1.bf16.msra.mxu1 %v8483_v49  ;;  %1565 = vmatprep.subr.bf16.mxu0 %v9500_v51  ;;  %v9140_v49 = vld [vmem:[#allocation10 + $0x124] ss:$24 sps:$4 sm:$0xff]  }
  0xc6   :  { %1606 = vmatprep.subr.bf16.mxu1 %v8491_v52  ;;  %v9141_v52 = vld [vmem:[#allocation10 + $0x120] ss:$24 sps:$4 sm:$0xff]  }
  0xc8   :  { %1566 = vmatpush1.bf16.msra.mxu0 %v9504_v53 }
  0xc9   :  { %1607 = vmatpush1.bf16.msra.mxu1 %v9506_v54  ;;  %1567 = vmatprep.subr.bf16.mxu0 %v9508_v55 }
  0xca   :  { %1608 = vmatprep.subr.bf16.mxu1 %v9510_v56 }
  0xcc   :  { %1568 = vmatpush1.bf16.msra.mxu0 %v9514_v57 }
  0xcd   :  { %1609 = vmatpush1.bf16.msra.mxu1 %v9516_v58  ;;  %1569 = vmatprep.subr.bf16.mxu0 %v9518_v59 }
  0xce   :  { %1610 = vmatprep.subr.bf16.mxu1 %v9520_v60 }
  0xd0   :  { %1570 = vmatpush2.bf16.msra.mxu0 %v9526_v61 }
  0xd1   :  { %1611 = vmatpush2.bf16.msra.mxu1 %v9528_v62  ;;  %1571 = vmatprep.subr.bf16.mxu0 %v9530_v63 }
  0xd2   :  { %1612 = vmatprep.subr.bf16.mxu1 %v9532_v0 }
  0xd4   :  { %1572 = vmatpush2.bf16.msra.mxu0 %v9538_v1 }
  0xd5   :  { %1613 = vmatpush2.bf16.msra.mxu1 %v9540_v2  ;;  %1573 = vmatprep.subr.bf16.mxu0 %v9542_v3 }
  0xd6   :  { %1614 = vmatprep.subr.bf16.mxu1 %v9544_v4 }
  0xd8   :  { %1574 = vmatpush2.bf16.msra.mxu0 %v9550_v5 }
  0xd9   :  { %1615 = vmatpush2.bf16.msra.mxu1 %v9552_v6  ;;  %1575 = vmatprep.subr.bf16.mxu0 %v9554_v7 }
  0xda   :  { %1616 = vmatprep.subr.bf16.mxu1 %v9556_v8 }
  0xdc   :  { %1576 = vmatpush2.bf16.msra.mxu0 %v9562_v9 }
  0xdd   :  { %1617 = vmatpush2.bf16.msra.mxu1 %v9564_v10  ;;  %1577 = vmatprep.subr.bf16.mxu0 %v9566_v11 }
  0xde   :  { %1618 = vmatprep.subr.bf16.mxu1 %v9568_v12 }
  0xe0   :  { %1578 = vmatpush2.bf16.msra.mxu0 %v9574_v13 }
  0xe1   :  { %1619 = vmatpush2.bf16.msra.mxu1 %v9576_v14  ;;  %1579 = vmatprep.subr.bf16.mxu0 %v9578_v16 }
  0xe2   :  { %1620 = vmatprep.subr.bf16.mxu1 %v9580_v18 }
  0xe4   :  { %1580 = vmatpush2.bf16.msra.mxu0 %v9586_v19 }
  0xe5   :  { %1621 = vmatpush2.bf16.msra.mxu1 %v9588_v20  ;;  %1581 = vmatprep.subr.bf16.mxu0 %v9590_v27 }
  0xe6   :  { %1622 = vmatprep.subr.bf16.mxu1 %v9592_v29 }
  0xe8   :  { %1582 = vmatpush2.bf16.msra.mxu0 %v9598_v31 }
  0xe9   :  { %1623 = vmatpush2.bf16.msra.mxu1 %v9600_v33  ;;  %1583 = vmatprep.subr.bf16.mxu0 %v9602_v35 }
  0xea   :  { %1624 = vmatprep.subr.bf16.mxu1 %v9604_v37 }
  0xec   :  { %1584 = vmatpush2.bf16.msra.mxu0 %v9610_v39 }
  0xed   :  { %1625 = vmatpush2.bf16.msra.mxu1 %v9612_v43  ;;  %2288 = vmatprep.subr.bf16.mxu0 %v9138_v46  ;;  %v9142_v43 = vld [vmem:[#allocation10 + $0xf4] ss:$24 sps:$4 sm:$0xff]  }
  0xee   :  { %2329 = vmatprep.subr.bf16.mxu1 %v9455_v23  ;;  %v9143_v23 = vld [vmem:[#allocation10 + $0xf0] ss:$24 sps:$4 sm:$0xff]  }
  0xef   :  { %1586 = vmatmul.mubr.bf16.vlgmr.msra.gmra.mxu0 %v9461_v25 }
  0xf0   :  { %1627 = vmatmul.mubr.bf16.vlgmr.msra.gmra.mxu1 %v9461_v25  ;;  %2289 = vmatpush1.bf16.msra.mxu0 %v9139_v47  ;;  %v9144_v25 = vld [vmem:[#allocation10 + $0xc4] ss:$24 sps:$4 sm:$0xff]  }
  0xf1   :  { %2330 = vmatpush1.bf16.msra.mxu1 %v9463_v26  ;;  %2290 = vmatprep.subr.bf16.mxu0 %v9140_v49  ;;  %v9145_v26 = vld [vmem:[#allocation10 + $0xc0] ss:$24 sps:$4 sm:$0xff]  }
  0xf2   :  { %2331 = vmatprep.subr.bf16.mxu1 %v9466_v28  ;;  %v9146_v28 = vld [vmem:[#allocation10 + $0x94] ss:$24 sps:$4 sm:$0xff]  }
  0xf4   :  { %2291 = vmatpush1.bf16.msra.mxu0 %v9141_v52 }
  0xf5   :  { %2332 = vmatpush1.bf16.msra.mxu1 %v9472_v30  ;;  %2292 = vmatprep.subr.bf16.mxu0 %v9142_v43  ;;  %v9147_v30 = vld [vmem:[#allocation10 + $0x90] ss:$24 sps:$4 sm:$0xff]  }
  0xf6   :  { %2333 = vmatprep.subr.bf16.mxu1 %v9476_v32  ;;  %v9148_v32 = vld [vmem:[#allocation10 + $0x64] ss:$24 sps:$4 sm:$0xff]  }
  0xf8   :  { %2293 = vmatpush1.bf16.msra.mxu0 %v9143_v23 }
  0xf9   :  { %2334 = vmatpush1.bf16.msra.mxu1 %v9478_v34  ;;  %2294 = vmatprep.subr.bf16.mxu0 %v9144_v25  ;;  %v9149_v34 = vld [vmem:[#allocation10 + $0x60] ss:$24 sps:$4 sm:$0xff]  }
  0xfa   :  { %2335 = vmatprep.subr.bf16.mxu1 %v9482_v15  ;;  %v9150_v15 = vld [vmem:[#allocation10 + $0x34] ss:$24 sps:$4 sm:$0xff]  }
  0xfc   :  { %2295 = vmatpush1.bf16.msra.mxu0 %v9145_v26 }
  0xfd   :  { %2336 = vmatpush1.bf16.msra.mxu1 %v9486_v38  ;;  %2296 = vmatprep.subr.bf16.mxu0 %v9146_v28  ;;  %v9151_v38 = vld [vmem:[#allocation10 + $0x30] ss:$24 sps:$4 sm:$0xff]  }
  0xfe   :  { %2337 = vmatprep.subr.bf16.mxu1 %v9488_v41  ;;  %v9152_v41 = vld [vmem:[#allocation10 + $0x4] ss:$24 sps:$4 sm:$0xff]  }
 0x100   :  { %2297 = vmatpush1.bf16.msra.mxu0 %v9147_v30 }
 0x101   :  { %2338 = vmatpush1.bf16.msra.mxu1 %v9492_v44  ;;  %2298 = vmatprep.subr.bf16.mxu0 %v9148_v32  ;;  %v9153_v44 = vld [vmem:[#allocation10] ss:$24 sps:$4 sm:$0xff]  }
 0x102   :  { %2339 = vmatprep.subr.bf16.mxu1 %v9494_v40  ;;  %v9154_v40 = vld [vmem:[#allocation10 + $0x2d4] ss:$24 sps:$4 sm:$0xff]  }
 0x104   :  { %2299 = vmatpush1.bf16.msra.mxu0 %v9149_v34 }
 0x105   :  { %2340 = vmatpush1.bf16.msra.mxu1 %v9498_v48  ;;  %2300 = vmatprep.subr.bf16.mxu0 %v9150_v15  ;;  %v9155_v48 = vld [vmem:[#allocation10 + $0x2d0] ss:$24 sps:$4 sm:$0xff]  }
 0x106   :  { %2341 = vmatprep.subr.bf16.mxu1 %v9500_v51  ;;  %v9156_v51 = vld [vmem:[#allocation10 + $0x2a4] ss:$24 sps:$4 sm:$0xff]  }
 0x108   :  { %2301 = vmatpush1.bf16.msra.mxu0 %v9151_v38 }
 0x109   :  { %2342 = vmatpush1.bf16.msra.mxu1 %v9504_v53  ;;  %2302 = vmatprep.subr.bf16.mxu0 %v9152_v41  ;;  %v9157_v53 = vld [vmem:[#allocation10 + $0x2a0] ss:$24 sps:$4 sm:$0xff]  }
 0x10a   :  { %2343 = vmatprep.subr.bf16.mxu1 %v9508_v55  ;;  %v9158_v55 = vld [vmem:[#allocation10 + $0x274] ss:$24 sps:$4 sm:$0xff]  }
 0x10c   :  { %2303 = vmatpush1.bf16.msra.mxu0 %v9153_v44 }
 0x10d   :  { %2344 = vmatpush1.bf16.msra.mxu1 %v9514_v57  ;;  %2304 = vmatprep.subr.bf16.mxu0 %v9154_v40  ;;  %v9159_v57 = vld [vmem:[#allocation10 + $0x270] ss:$24 sps:$4 sm:$0xff]   ;;  %v298_v40 = vsub.s32 2, %v9427_v36 }
 0x10e   :  { %2345 = vmatprep.subr.bf16.mxu1 %v9518_v59  ;;  %v9160_v59 = vld [vmem:[#allocation10 + $0x244] ss:$24 sps:$4 sm:$0xff]  }
 0x110   :  { %2305 = vmatpush2.bf16.msra.mxu0 %v9155_v48  ;;  %v302_v48 = vsub.s32 3, %v9427_v36 }
 0x111   :  { %2346 = vmatpush2.bf16.msra.mxu1 %v9526_v61  ;;  %2306 = vmatprep.subr.bf16.mxu0 %v9156_v51  ;;  %v9161_v61 = vld [vmem:[#allocation10 + $0x240] ss:$24 sps:$4 sm:$0xff]  }
 0x112   :  { %2347 = vmatprep.subr.bf16.mxu1 %v9530_v63  ;;  %v9162_v63 = vld [vmem:[#allocation10 + $0x214] ss:$24 sps:$4 sm:$0xff]  }
 0x114   :  { %2307 = vmatpush2.bf16.msra.mxu0 %v9157_v53 }
 0x115   :  { %2348 = vmatpush2.bf16.msra.mxu1 %v9538_v1  ;;  %2308 = vmatprep.subr.bf16.mxu0 %v9158_v55  ;;  %v9163_v1 = vld [vmem:[#allocation10 + $0x210] ss:$24 sps:$4 sm:$0xff]  }
 0x116   :  { %2349 = vmatprep.subr.bf16.mxu1 %v9542_v3  ;;  %v9164_v3 = vld [vmem:[#allocation10 + $0x1e4] ss:$24 sps:$4 sm:$0xff]  }
 0x118   :  { %2309 = vmatpush2.bf16.msra.mxu0 %v9159_v57 }
 0x119   :  { %2350 = vmatpush2.bf16.msra.mxu1 %v9550_v5  ;;  %2310 = vmatprep.subr.bf16.mxu0 %v9160_v59  ;;  %v9165_v5 = vld [vmem:[#allocation10 + $0x1e0] ss:$24 sps:$4 sm:$0xff]  }
 0x11a   :  { %2351 = vmatprep.subr.bf16.mxu1 %v9554_v7  ;;  %v9166_v7 = vld [vmem:[#allocation10 + $0x1b4] ss:$24 sps:$4 sm:$0xff]  }
 0x11c   :  { %2311 = vmatpush2.bf16.msra.mxu0 %v9161_v61 }
 0x11d   :  { %2352 = vmatpush2.bf16.msra.mxu1 %v9562_v9  ;;  %2312 = vmatprep.subr.bf16.mxu0 %v9162_v63  ;;  %v9167_v9 = vld [vmem:[#allocation10 + $0x1b0] ss:$24 sps:$4 sm:$0xff]  }
 0x11e   :  { %2353 = vmatprep.subr.bf16.mxu1 %v9566_v11  ;;  %v9655_v11 = vld [vmem:[%s11072_s4] sm:$0x3f] }
 0x11f   :  { %v299_v53 = vrot.slane %v9655_v11, %v298_v40  ;;  %v303_v57 = vrot.slane %v9655_v11, %v302_v48 }
 0x120   :  { %2313 = vmatpush2.bf16.msra.mxu0 %v9163_v1 }
 0x121   :  { %2354 = vmatpush2.bf16.msra.mxu1 %v9574_v13  ;;  %2314 = vmatprep.subr.bf16.mxu0 %v9164_v3  ;;  %v9168_v13 = vld [vmem:[#allocation10 + $0x184] ss:$24 sps:$4 sm:$0xff]  }
 0x122   :  { %2355 = vmatprep.subr.bf16.mxu1 %v9578_v16  ;;  %v291_v16 = vrot.slane %v9655_v11, %v9447_v17 }
 0x124   :  { %2315 = vmatpush2.bf16.msra.mxu0 %v9165_v5 }
 0x125   :  { %2356 = vmatpush2.bf16.msra.mxu1 %v9586_v19  ;;  %2316 = vmatprep.subr.bf16.mxu0 %v9166_v7  ;;  %v295_v19 = vrot.slane %v9655_v11, %v9430_v42 }
 0x126   :  { %2357 = vmatprep.subr.bf16.mxu1 %v9590_v27 }
 0x128   :  { %2317 = vmatpush2.bf16.msra.mxu0 %v9167_v9 }
 0x129   :  { %2358 = vmatpush2.bf16.msra.mxu1 %v9598_v31  ;;  %2318 = vmatprep.subr.bf16.mxu0 %v9168_v13 }
 0x12a   :  { %2359 = vmatprep.subr.bf16.mxu1 %v9602_v35 }
 0x12c   :  { %2319 = vmatpush2.bf16.msra.mxu0 %v9449_v21 }
 0x12d   :  { %2360 = vmatpush2.bf16.msra.mxu1 %v9610_v39  ;;  %2370 = vmatprep.subr.bf16.mxu0 %v9457_v24 }
 0x12f   :  { %v832_v27 = vpop.f32.mrf.mxu0 }
 0x130   :  { %v873_v31 = vpop.f32.mrf.mxu1  ;;  %v9665_v43 = vadd.f32 %v832_v27, %v291_v16  ;;  %v921_v27 = vld [vmem:[%s11073_s5] sm:$0x3]  ;;  %s9286_s5 = smov [#allocation11]  }
 0x131   :  { %v834_v46 = vpop.f32.mrf.mxu0  ;;  %v9675_v61 = vadd.f32 %v873_v31, %v299_v53  ;;  %s7286_s19 = sshll.u32 %s9286_s5, 4  ;;  %s7287_s19 = int_to_ptr.vmem [resolvable:$true] %s7286_s19 }
 0x132   :  { %v875_v47 = vpop.f32.mrf.mxu1  ;;  %v9667_v49 = vadd.f32 %v834_v46, %v295_v19  ;;  %s9249_s20 = scalar_lea.vmem %s7287_s19, 256  ;;  %p9254_p2 = scmp.lt.s32.totalorder %s7287_s19, %s7287_s19 }
 0x133   :  { %v836_v35 = vpop.f32.mrf.mxu0  ;;  %v9677_v5 = vadd.f32 %v875_v47, %v303_v57  ;;  %p9250_p1 = scmp.ne.s32.totalorder %s7287_s19, %s9249_s20  ;;  %p9255_p3 = scmp.lt.s32.totalorder %s9249_s20, %s9249_s20 }
 0x134   :  { %v877_v52 = vpop.f32.mrf.mxu1 }
 0x135   :  { %v837_v23 = vpop.f32.mrf.mxu0  ;;  %p9256_p4 = por %p9255_p3, %p9254_p2 }
 0x136   :  { %v878_v25 = vpop.f32.mrf.mxu1  ;;  %v9685_v23 = vrot.slane %v921_v27, %v9447_v17 }
 0x137   :  { %v306_v25 = vsub.s32 4, %v9427_v36  ;;  %p9257_p5 = pnand %p9256_p4, %p9250_p1 }
 0x16f   :  { %v914_v21 = vpop.f32.mrf.mxu0 }
 0x170   :  { %v1546_v26 = vpop.f32.mrf.mxu1 }
 0x171   :  { %v916_v39 = vpop.f32.mrf.mxu0  ;;  %v1635_v15 = vadd.f32 %v1546_v26, %v9665_v43  ;;  %v9689_v26 = vrot.slane %v921_v27, %v9430_v42 }
 0x172   :  { %v1548_v28 = vpop.f32.mrf.mxu1 }
 0x173   :  { %v918_v24 = vpop.f32.mrf.mxu0  ;;  %v1636_v38 = vadd.f32 %v1548_v28, %v9667_v49  ;;  %v7536_v41 = vmul.f32 -1.442695, %v1635_v15 }
 0x174   :  { %v1550_v30 = vpop.f32.mrf.mxu1  ;;  %v310_v24 = vsub.s32 5, %v9427_v36 }
 0x175   :  { %v919_v32 = vpop.f32.mrf.mxu0  ;;  %v7537_v44 = vmul.f32 -1.442695, %v1636_v38  ;;  %8978 = vpow2.f32 %v7536_v41  ;;  %v307_v30 = vrot.slane %v9655_v11, %v306_v25 }
 0x176   :  { %v1551_v34 = vpop.f32.mrf.mxu1  ;;  %v311_v38 = vrot.slane %v9655_v11, %v310_v24  ;;  %v9285_v11 = vmov 1966171168   ;;  %v9171_v24 = vld [vmem:[#allocation10 + $0x130] ss:$24 sps:$4 sm:$0xff]  }
 0x177   :  { %8980 = vpow2.f32 %v7537_v44  ;;  %v9696_v41 = vadd.f32 %v914_v21, %v307_v30  ;;  %v9172_v30 = vld [vmem:[#allocation10 + $0x104] ss:$24 sps:$4 sm:$0xff]  }
 0x182   :  { %v8979_v51 = vpop.eup %8978 }
 0x183   :  { %v1643_v59 = vadd.f32 1.0, %v8979_v51  ;;  %v9699_v51 = vadd.f32 %v916_v39, %v311_v38  ;;  %v9176_v38 = vld [vmem:[#allocation10 + $0xa4] ss:$24 sps:$4 sm:$0xff]  }
 0x184   :  { %v8981_v55 = vpop.eup %8980 }
 0x185   :  { %v1644_v63 = vadd.f32 1.0, %v8981_v55  ;;  %8982 = vrcp.f32 %v1643_v59 }
 0x187   :  { %8984 = vrcp.f32 %v1644_v63  ;;  %v1694_v63 = vunpack.c.l.s4 %v9285_v11  ;;  %v9803_v11 = vld [vmem:[#allocation10 + $0x60] ss:$24 sps:$4 sm:$0xff]  }
 0x192   :  { %v8983_v32 = vpop.eup %8982 }
 0x194   :  { %v8985_v17 = vpop.eup %8984 }
 0x1af   :  { %v1587_v1 = vpop.f32.mrf.mxu0 }
 0x1b0   :  { %v1628_v3 = vpop.f32.mrf.mxu1  ;;  %v1649_v7 = vadd.f32 %v1587_v1, %v9675_v61 }
 0x1b1   :  { %v1589_v9 = vpop.f32.mrf.mxu0  ;;  %v1674_v28 = vadd.f32 %v9685_v23, %v1628_v3 }
 0x1b2   :  { %v1630_v13 = vpop.f32.mrf.mxu1  ;;  %v7538_v16 = vmul.f32 -1.442695, %v1649_v7  ;;  %v1650_v19 = vadd.f32 %v1589_v9, %v9677_v5  ;;  %v1695_v9 = vunpack.c.0.s8 %v1694_v63  ;;  %v9807_v63 = vld [vmem:[#allocation10 + $0x68] ss:$24 sps:$4 sm:$0xff]  }
 0x1b3   :  { %v1591_v31 = vpop.f32.mrf.mxu0  ;;  %v1675_v34 = vadd.f32 %v9689_v26, %v1630_v13  ;;  %v1676_v15 = vmul.f32 %v8983_v32, %v1674_v28  ;;  %v9170_v28 = vld [vmem:[#allocation10 + $0x134] ss:$24 sps:$4 sm:$0xff]   ;;  %v9173_v32 = vld [vmem:[#allocation10 + $0x100] ss:$24 sps:$4 sm:$0xff]   ;;  %11180 = vst [vmem:[#allocation25_spill] sm:$0xff] %v9807_v63 }
 0x1b4   :  { %v1632_v46 = vpop.f32.mrf.mxu1  ;;  %8986 = vpow2.f32 %v7538_v16  ;;  %v7539_v35 = vmul.f32 -1.442695, %v1650_v19 }
 0x1b5   :  { %v1592_v52 = vpop.f32.mrf.mxu0  ;;  %v1677_v40 = vmul.f32 %v8985_v17, %v1675_v34  ;;  %v1678_v42 = vadd.f32 %v1676_v15, %v9696_v41  ;;  %v9707_v46 = vsub.s32 %v1695_v9, %v9427_v36  ;;  %v9174_v34 = vld [vmem:[#allocation10 + $0xd4] ss:$24 sps:$4 sm:$0xff]   ;;  %v9175_v15 = vld [vmem:[#allocation10 + $0xd0] ss:$24 sps:$4 sm:$0xff]   ;;  %v9177_v17 = vld [vmem:[#allocation10 + $0xa0] ss:$24 sps:$4 sm:$0xff]  }
 0x1b6   :  { %v1633_v47 = vpop.f32.mrf.mxu1  ;;  %8988 = vpow2.f32 %v7539_v35  ;;  %v9821_v9 = vld [vmem:[#allocation10 + $0x4] ss:$24 sps:$4 sm:$0xff]  }
 0x1b7   :  { %v1679_v57 = vadd.f32 %v1677_v40, %v9699_v51  ;;  %v9179_v40 = vld [vmem:[#allocation10 + $0x70] ss:$24 sps:$4 sm:$0xff]  }
 0x1c1   :  { %v8987_v44 = vpop.eup %8986 }
 0x1c2   :  { %v1657_v48 = vadd.f32 1.0, %v8987_v44  ;;  %v9178_v44 = vld [vmem:[#allocation10 + $0x74] ss:$24 sps:$4 sm:$0xff]  }
 0x1c3   :  { %v8989_v53 = vpop.eup %8988 }
 0x1c4   :  { %8990 = vrcp.f32 %v1657_v48  ;;  %v1658_v55 = vadd.f32 1.0, %v8989_v53  ;;  %v9180_v48 = vld [vmem:[#allocation10 + $0x44] ss:$24 sps:$4 sm:$0xff]   ;;  %v9791_v53 = vld [vmem:[#allocation10 + $0x90] ss:$24 sps:$4 sm:$0xff]  }
 0x1c5   :  { %8992 = vtanh.f32 %v1678_v42  ;;  %v9788_v42 = vld [vmem:[#allocation10 + $0x9c] ss:$24 sps:$4 sm:$0xff]  }
 0x1c6   :  { %8994 = vrcp.f32 %v1658_v55  ;;  %11177 = vst [vmem:[#allocation22_spill] sm:$0xff] %v9788_v42  ;;  %v9795_v55 = vld [vmem:[#allocation10 + $0x98] ss:$24 sps:$4 sm:$0xff]  }
 0x1c7   :  { %8996 = vtanh.f32 %v1679_v57  ;;  %11178 = vst [vmem:[#allocation23_spill] sm:$0xff] %v9795_v55  ;;  %v9797_v57 = vld [vmem:[#allocation10 + $0x64] ss:$24 sps:$4 sm:$0xff]  }
 0x1d1   :  { %v8991_v59 = vpop.eup %8990 }
 0x1d2   :  { %v1682_v21 = vsub.f32 1.0, %v8991_v59  ;;  %v8993_v1 = vpop.eup %8992  ;;  %v1686_v39 = vmul.f32 %v8991_v59, %v9453_v22  ;;  %v9169_v22 = vld [vmem:[#allocation10 + $0x160] ss:$24 sps:$4 sm:$0xff]   ;;  %v9800_v59 = vld [vmem:[#allocation10 + $0x6c] ss:$24 sps:$4 sm:$0xff]  }
 0x1d3   :  { %v8995_v3 = vpop.eup %8994  ;;  %11179 = vst [vmem:[#allocation24_spill] sm:$0xff] %v9800_v59 }
 0x1d4   :  { %v1684_v7 = vmul.f32 %v8993_v1, %v1682_v21  ;;  %v1683_v13 = vsub.f32 1.0, %v8995_v3  ;;  %v8997_v16 = vpop.eup %8996  ;;  %v1687_v27 = vmul.f32 %v8995_v3, %v9439_v50  ;;  %v9809_v21 = vld [vmem:[#allocation10 + $0x34] ss:$24 sps:$4 sm:$0xff]   ;;  %v9815_v3 = vld [vmem:[#allocation10 + $0x30] ss:$24 sps:$4 sm:$0xff]  }
 0x1d5   :  { %v9812_v1 = vld [vmem:[#allocation10 + $0x3c] ss:$24 sps:$4 sm:$0xff]  }
 0x1d6   :  { %v1685_v19 = vmul.f32 %v8997_v16, %v1683_v13  ;;  %v9704_v31 = vadd.f32 %v1686_v39, %v1684_v7  ;;  %11181 = vst [vmem:[#allocation26_spill] sm:$0xff] %v9812_v1  ;;  %v9819_v7 = vld [vmem:[#allocation10 + $0x38] ss:$24 sps:$4 sm:$0xff]   ;;  %v9824_v13 = vld [vmem:[#allocation10 + $0xc] ss:$24 sps:$4 sm:$0xff]  }
 0x1d7   :  { %11182 = vst [vmem:[#allocation27_spill] sm:$0xff] %v9819_v7  ;;  %11183 = vst [vmem:[#allocation28_spill] sm:$0xff] %v9824_v13  ;;  %v9827_v16 = vld [vmem:[#allocation10] ss:$24 sps:$4 sm:$0xff]  }
 0x1d8   :  { %v9709_v35 = vadd.f32 %v1687_v27, %v1685_v19  ;;  %v1710_v25 = vpack.c.bf16 %v9704_v31, %v9704_v31  ;;  %v9831_v39 = vld [vmem:[#allocation10 + $0x8] ss:$24 sps:$4 sm:$0xff]   ;;  %v9836_v19 = vld [vmem:[#allocation10 + $0x2d4] ss:$24 sps:$4 sm:$0xff]  }
 0x1d9   :  { %11184 = vst [vmem:[#allocation29_spill] sm:$0xff] %v9831_v39  ;;  %v9838_v27 = vld [vmem:[#allocation10 + $0x2d0] ss:$24 sps:$4 sm:$0xff]  }
 0x1da   :  { %v1711_v52 = vpack.c.bf16 %v9709_v35, %v9709_v35  ;;  %v1692_v47 = vcombine.low %v9704_v31, %v9709_v35 }
 0x1dc   :  { %2320 = vmatprep.mubr.bf16.mxu0 %v1711_v52  ;;  %2361 = vmatprep.mubr.bf16.mxu1 %v1711_v52  ;;  %v1699_v50 = vrot.slane %v1692_v47, %v9707_v46  ;;  %v9843_v47 = vld [vmem:[#allocation10 + $0x2d8] ss:$24 sps:$4 sm:$0xff]  }
 0x1dd   :  { %2321 = vmatmul.mubr.bf16.vlgmr.msra.gmra.mxu0 %v1710_v25  ;;  %2362 = vmatmul.mubr.bf16.vlgmr.msra.gmra.mxu1 %v1710_v25  ;;  %11186 = vst [vmem:[#allocation31_spill] sm:$0xff] %v9843_v47 }
 0x1de   :  { %v1706_v36 = vrot.slane %v1699_v50, %v9707_v46  ;;  %2371 = vmatpush1.bf16.msra.mxu0 %v9169_v22  ;;  %2402 = vmatprep.mubr.bf16.mxu0 %v1711_v52  ;;  %v9840_v52 = vld [vmem:[#allocation10 + $0x2dc] ss:$24 sps:$4 sm:$0xff]   ;;  %v9850_v50 = vld [vmem:[#allocation10 + $0x2a0] ss:$24 sps:$4 sm:$0xff]  }
 0x1df   :  { %2372 = vmatprep.subr.bf16.mxu0 %v9170_v28  ;;  %11185 = vst [vmem:[#allocation30_spill] sm:$0xff] %v9840_v52  ;;  %v9855_v22 = vld [vmem:[#allocation10 + $0x2a8] ss:$24 sps:$4 sm:$0xff]   ;;  %v9860_v28 = vld [vmem:[#allocation10 + $0x274] ss:$24 sps:$4 sm:$0xff]  }
 0x1e0   :  { %1708 = vst.msk [vmem:[#allocation11] ss:$8 sm:$0x3] %vm9390_vm0, %v1706_v36  ;;  %v9852_v36 = vld [vmem:[#allocation10 + $0x2ac] ss:$24 sps:$4 sm:$0xff]   ;;  %11188 = vst [vmem:[#allocation33_spill] sm:$0xff] %v9855_v22 }
 0x1e1   :  { %11187 = vst [vmem:[#allocation32_spill] sm:$0xff] %v9852_v36 }
 0x1e2   :  { %2373 = vmatpush1.bf16.msra.mxu0 %v9171_v24  ;;  %v9862_v24 = vld [vmem:[#allocation10 + $0x270] ss:$24 sps:$4 sm:$0xff]  }
 0x1e3   :  { %2374 = vmatprep.subr.bf16.mxu0 %v9172_v30  ;;  %v9864_v30 = vld [vmem:[#allocation10 + $0x27c] ss:$24 sps:$4 sm:$0xff]  }
 0x1e4   :  { %11189 = vst [vmem:[#allocation34_spill] sm:$0xff] %v9864_v30 }
 0x1e6   :  { %2375 = vmatpush1.bf16.msra.mxu0 %v9173_v32  ;;  %v9867_v32 = vld [vmem:[#allocation10 + $0x278] ss:$24 sps:$4 sm:$0xff]  }
 0x1e7   :  { %2376 = vmatprep.subr.bf16.mxu0 %v9174_v34  ;;  %11190 = vst [vmem:[#allocation35_spill] sm:$0xff] %v9867_v32  ;;  %v9872_v34 = vld [vmem:[#allocation10 + $0x240] ss:$24 sps:$4 sm:$0xff]  }
 0x1ea   :  { %2377 = vmatpush1.bf16.msra.mxu0 %v9175_v15  ;;  %v9874_v15 = vld [vmem:[#allocation10 + $0x244] ss:$24 sps:$4 sm:$0xff]  }
 0x1eb   :  { %2378 = vmatprep.subr.bf16.mxu0 %v9176_v38  ;;  %v9876_v38 = vld [vmem:[#allocation10 + $0x248] ss:$24 sps:$4 sm:$0xff]  }
 0x1ec   :  { %11191 = vst [vmem:[#allocation36_spill] sm:$0xff] %v9876_v38 }
 0x1ee   :  { %2379 = vmatpush1.bf16.msra.mxu0 %v9177_v17  ;;  %v9878_v17 = vld [vmem:[#allocation10 + $0x24c] ss:$24 sps:$4 sm:$0xff]  }
 0x1ef   :  { %2380 = vmatprep.subr.bf16.mxu0 %v9178_v44  ;;  %11192 = vst [vmem:[#allocation37_spill] sm:$0xff] %v9878_v17  ;;  %v9880_v44 = vld [vmem:[#allocation10 + $0x214] ss:$24 sps:$4 sm:$0xff]  }
 0x1f2   :  { %2381 = vmatpush1.bf16.msra.mxu0 %v9179_v40  ;;  %v9883_v40 = vld [vmem:[#allocation10 + $0x21c] ss:$24 sps:$4 sm:$0xff]  }
 0x1f3   :  { %2382 = vmatprep.subr.bf16.mxu0 %v9180_v48  ;;  %11193 = vst [vmem:[#allocation38_spill] sm:$0xff] %v9883_v40  ;;  %v9887_v48 = vld [vmem:[#allocation10 + $0x210] ss:$24 sps:$4 sm:$0xff]  }
 0x1f6   :  { %2383 = vmatpush1.bf16.msra.mxu0 %v9506_v54  ;;  %v11170_v54 = vld [vmem:[#allocation16_spill] sm:$0xff] }
 0x1f7   :  { %2384 = vmatprep.subr.bf16.mxu0 %v9510_v56  ;;  %v9740_v56 = vld [vmem:[#allocation10 + $0x150] ss:$24 sps:$4 sm:$0xff]  }
 0x1fa   :  { %2385 = vmatpush1.bf16.msra.mxu0 %v9516_v58  ;;  %v9742_v58 = vld [vmem:[#allocation10 + $0x154] ss:$24 sps:$4 sm:$0xff]  }
 0x1fb   :  { %2386 = vmatprep.subr.bf16.mxu0 %v9520_v60  ;;  %v9744_v60 = vld [vmem:[#allocation10 + $0x158] ss:$24 sps:$4 sm:$0xff]   ;;  %3085 = vmatprep.subr.bf16.mxu1 %v9742_v58 }
 0x1fc   :  { %3086 = vmatpush1.bf16.msra.mxu1 %v9740_v56 }
 0x1fe   :  { %2387 = vmatpush2.bf16.msra.mxu0 %v9528_v62  ;;  %v9746_v62 = vld [vmem:[#allocation10 + $0x15c] ss:$24 sps:$4 sm:$0xff]  }
 0x1ff   :  { %2388 = vmatprep.subr.bf16.mxu0 %v9532_v0  ;;  %v9748_v0 = vld [vmem:[#allocation10 + $0x124] ss:$24 sps:$4 sm:$0xff]  }
 0x200   :  { %3087 = vmatprep.subr.bf16.mxu1 %v9748_v0 }
 0x202   :  { %2389 = vmatpush2.bf16.msra.mxu0 %v9540_v2  ;;  %v9751_v2 = vld [vmem:[#allocation10 + $0x12c] ss:$24 sps:$4 sm:$0xff]  }
 0x203   :  { %2390 = vmatprep.subr.bf16.mxu0 %v9544_v4  ;;  %11171 = vst [vmem:[#allocation16_spill] sm:$0xff] %v9751_v2  ;;  %v9755_v4 = vld [vmem:[#allocation10 + $0x120] ss:$24 sps:$4 sm:$0xff]  }
 0x204   :  { %3088 = vmatpush1.bf16.msra.mxu1 %v9755_v4 }
 0x206   :  { %2391 = vmatpush2.bf16.msra.mxu0 %v9552_v6  ;;  %v9759_v6 = vld [vmem:[#allocation10 + $0x128] ss:$24 sps:$4 sm:$0xff]  }
 0x207   :  { %2392 = vmatprep.subr.bf16.mxu0 %v9556_v8  ;;  %11172 = vst [vmem:[#allocation17_spill] sm:$0xff] %v9759_v6  ;;  %v9761_v8 = vld [vmem:[#allocation10 + $0xf4] ss:$24 sps:$4 sm:$0xff]  }
 0x208   :  { %3089 = vmatprep.subr.bf16.mxu1 %v9761_v8 }
 0x20a   :  { %2393 = vmatpush2.bf16.msra.mxu0 %v9564_v10  ;;  %v9764_v10 = vld [vmem:[#allocation10 + $0xfc] ss:$24 sps:$4 sm:$0xff]  }
 0x20b   :  { %2394 = vmatprep.subr.bf16.mxu0 %v9568_v12  ;;  %11173 = vst [vmem:[#allocation18_spill] sm:$0xff] %v9764_v10  ;;  %v9767_v12 = vld [vmem:[#allocation10 + $0xf0] ss:$24 sps:$4 sm:$0xff]  }
 0x20c   :  { %3090 = vmatpush1.bf16.msra.mxu1 %v9767_v12 }
 0x20e   :  { %2395 = vmatpush2.bf16.msra.mxu0 %v9576_v14  ;;  %v9771_v14 = vld [vmem:[#allocation10 + $0xf8] ss:$24 sps:$4 sm:$0xff]  }
 0x20f   :  { %2396 = vmatprep.subr.bf16.mxu0 %v9580_v18  ;;  %11174 = vst [vmem:[#allocation19_spill] sm:$0xff] %v9771_v14  ;;  %v9773_v18 = vld [vmem:[#allocation10 + $0xc4] ss:$24 sps:$4 sm:$0xff]  }
 0x210   :  { %3091 = vmatprep.subr.bf16.mxu1 %v9773_v18 }
 0x212   :  { %2397 = vmatpush2.bf16.msra.mxu0 %v9588_v20  ;;  %v9776_v20 = vld [vmem:[#allocation10 + $0xcc] ss:$24 sps:$4 sm:$0xff]  }
 0x213   :  { %2398 = vmatprep.subr.bf16.mxu0 %v9592_v29  ;;  %11175 = vst [vmem:[#allocation20_spill] sm:$0xff] %v9776_v20  ;;  %v9779_v29 = vld [vmem:[#allocation10 + $0xc0] ss:$24 sps:$4 sm:$0xff]  }
 0x214   :  { %3092 = vmatpush1.bf16.msra.mxu1 %v9779_v29 }
 0x216   :  { %2399 = vmatpush2.bf16.msra.mxu0 %v9600_v33  ;;  %v9783_v33 = vld [vmem:[#allocation10 + $0xc8] ss:$24 sps:$4 sm:$0xff]  }
 0x217   :  { %2400 = vmatprep.subr.bf16.mxu0 %v9604_v37  ;;  %11176 = vst [vmem:[#allocation21_spill] sm:$0xff] %v9783_v33  ;;  %v9785_v37 = vld [vmem:[#allocation10 + $0x94] ss:$24 sps:$4 sm:$0xff]  }
 0x218   :  { %3093 = vmatprep.subr.bf16.mxu1 %v9785_v37 }
 0x219   :  { %3094 = vmatpush1.bf16.msra.mxu1 %v9791_v53 }
 0x21a   :  { %2401 = vmatpush2.bf16.msra.mxu0 %v11170_v54  ;;  %3095 = vmatprep.subr.bf16.mxu1 %v9797_v57  ;;  %v9891_v54 = vld [vmem:[#allocation10 + $0x218] ss:$24 sps:$4 sm:$0xff]  }
 0x21b   :  { %3126 = vmatprep.subr.bf16.mxu0 %v9746_v62  ;;  %11194 = vst [vmem:[#allocation39_spill] sm:$0xff] %v9891_v54 }
 0x21d   :  { %2403 = vmatmul.mubr.bf16.vlgmr.msra.gmra.mxu0 %v1710_v25  ;;  %3096 = vmatpush1.bf16.msra.mxu1 %v9803_v11  ;;  %v9848_v25 = vld [vmem:[#allocation10 + $0x2a4] ss:$24 sps:$4 sm:$0xff]  }
 0x21e   :  { %3127 = vmatpush1.bf16.msra.mxu0 %v9744_v60  ;;  %3097 = vmatprep.subr.bf16.mxu1 %v9809_v21 }
 0x21f   :  { %3128 = vmatprep.subr.bf16.mxu0 %v9751_v2 }
 0x221   :  { %3098 = vmatpush1.bf16.msra.mxu1 %v9815_v3 }
 0x222   :  { %3129 = vmatpush1.bf16.msra.mxu0 %v9759_v6  ;;  %3099 = vmatprep.subr.bf16.mxu1 %v9821_v9 }
 0x223   :  { %3130 = vmatprep.subr.bf16.mxu0 %v9764_v10 }
 0x225   :  { %3100 = vmatpush1.bf16.msra.mxu1 %v9827_v16 }
 0x226   :  { %3131 = vmatpush1.bf16.msra.mxu0 %v9771_v14  ;;  %3101 = vmatprep.subr.bf16.mxu1 %v9836_v19 }
 0x227   :  { %3132 = vmatprep.subr.bf16.mxu0 %v9776_v20 }
 0x229   :  { %3102 = vmatpush2.bf16.msra.mxu1 %v9838_v27 }
 0x22a   :  { %3133 = vmatpush1.bf16.msra.mxu0 %v9783_v33  ;;  %3103 = vmatprep.subr.bf16.mxu1 %v9848_v25 }
 0x22b   :  { %3134 = vmatprep.subr.bf16.mxu0 %v9788_v42 }
 0x22d   :  { %3104 = vmatpush2.bf16.msra.mxu1 %v9850_v50 }
 0x22e   :  { %3135 = vmatpush1.bf16.msra.mxu0 %v9795_v55  ;;  %3105 = vmatprep.subr.bf16.mxu1 %v9860_v28 }
 0x22f   :  { %3136 = vmatprep.subr.bf16.mxu0 %v9800_v59 }
 0x231   :  { %3106 = vmatpush2.bf16.msra.mxu1 %v9862_v24 }
 0x232   :  { %3137 = vmatpush1.bf16.msra.mxu0 %v9807_v63  ;;  %3107 = vmatprep.subr.bf16.mxu1 %v9874_v15 }
 0x233   :  { %3138 = vmatprep.subr.bf16.mxu0 %v9812_v1 }
 0x235   :  { %3108 = vmatpush2.bf16.msra.mxu1 %v9872_v34 }
 0x236   :  { %3139 = vmatpush1.bf16.msra.mxu0 %v9819_v7  ;;  %3109 = vmatprep.subr.bf16.mxu1 %v9880_v44 }
 0x237   :  { %3140 = vmatprep.subr.bf16.mxu0 %v9824_v13 }
 0x239   :  { %3110 = vmatpush2.bf16.msra.mxu1 %v9887_v48 }
 0x23a   :  { %3141 = vmatpush1.bf16.msra.mxu0 %v9831_v39  ;;  %v9927_v39 = vld [vmem:[#allocation10 + $0x188] ss:$24 sps:$4 sm:$0xff]  }
 0x23b   :  { %3142 = vmatprep.subr.bf16.mxu0 %v9840_v52  ;;  %v9920_v52 = vld [vmem:[#allocation10 + $0x18c] ss:$24 sps:$4 sm:$0xff]   ;;  %11200 = vst [vmem:[#allocation45_spill] sm:$0xff] %v9927_v39 }
 0x23c   :  { %11199 = vst [vmem:[#allocation44_spill] sm:$0xff] %v9920_v52 }
 0x23e   :  { %3143 = vmatpush2.bf16.msra.mxu0 %v9843_v47  ;;  %v9915_v47 = vld [vmem:[#allocation10 + $0x1b8] ss:$24 sps:$4 sm:$0xff]  }
 0x23f   :  { %3144 = vmatprep.subr.bf16.mxu0 %v9852_v36  ;;  %v9908_v36 = vld [vmem:[#allocation10 + $0x1bc] ss:$24 sps:$4 sm:$0xff]   ;;  %11198 = vst [vmem:[#allocation43_spill] sm:$0xff] %v9915_v47 }
 0x240   :  { %11197 = vst [vmem:[#allocation42_spill] sm:$0xff] %v9908_v36 }
 0x242   :  { %3145 = vmatpush2.bf16.msra.mxu0 %v9855_v22  ;;  %v9899_v22 = vld [vmem:[#allocation10 + $0x1e0] ss:$24 sps:$4 sm:$0xff]  }
 0x243   :  { %3146 = vmatprep.subr.bf16.mxu0 %v9864_v30  ;;  %v9896_v30 = vld [vmem:[#allocation10 + $0x1ec] ss:$24 sps:$4 sm:$0xff]  }
 0x244   :  { %11195 = vst [vmem:[#allocation40_spill] sm:$0xff] %v9896_v30 }
 0x246   :  { %3147 = vmatpush2.bf16.msra.mxu0 %v9867_v32  ;;  %v9893_v32 = vld [vmem:[#allocation10 + $0x1e4] ss:$24 sps:$4 sm:$0xff]  }
 0x247   :  { %3148 = vmatprep.subr.bf16.mxu0 %v9878_v17  ;;  %3111 = vmatprep.subr.bf16.mxu1 %v9893_v32  ;;  %v9903_v17 = vld [vmem:[#allocation10 + $0x1e8] ss:$24 sps:$4 sm:$0xff]  }
 0x248   :  { %11196 = vst [vmem:[#allocation41_spill] sm:$0xff] %v9903_v17  ;;  %3112 = vmatpush2.bf16.msra.mxu1 %v9899_v22 }
 0x24a   :  { %3149 = vmatpush2.bf16.msra.mxu0 %v9876_v38  ;;  %v9905_v38 = vld [vmem:[#allocation10 + $0x1b4] ss:$24 sps:$4 sm:$0xff]  }
 0x24b   :  { %3150 = vmatprep.subr.bf16.mxu0 %v9883_v40  ;;  %v9911_v40 = vld [vmem:[#allocation10 + $0x1b0] ss:$24 sps:$4 sm:$0xff]   ;;  %3113 = vmatprep.subr.bf16.mxu1 %v9905_v38 }
 0x24c   :  { %3114 = vmatpush2.bf16.msra.mxu1 %v9911_v40 }
 0x24e   :  { %3151 = vmatpush2.bf16.msra.mxu0 %v9891_v54  ;;  %v9917_v54 = vld [vmem:[#allocation10 + $0x184] ss:$24 sps:$4 sm:$0xff]  }
 0x24f   :  { %3152 = vmatprep.subr.bf16.mxu0 %v9896_v30  ;;  %v9923_v30 = vld [vmem:[#allocation10 + $0x180] ss:$24 sps:$4 sm:$0xff]   ;;  %3115 = vmatprep.subr.bf16.mxu1 %v9917_v54 }
 0x250   :  { %3116 = vmatpush2.bf16.msra.mxu1 %v9923_v30 }
 0x252   :  { %3153 = vmatpush2.bf16.msra.mxu0 %v9903_v17  ;;  %v9932_v17 = vld [vmem:[#allocation10 + $0x164] ss:$24 sps:$4 sm:$0xff]  }
 0x253   :  { %3154 = vmatprep.subr.bf16.mxu0 %v9908_v36  ;;  %3167 = vmatprep.subr.bf16.mxu1 %v9932_v17 }
 0x256   :  { %3155 = vmatpush2.bf16.msra.mxu0 %v9915_v47 }
 0x257   :  { %3156 = vmatprep.subr.bf16.mxu0 %v9920_v52 }
 0x25a   :  { %3157 = vmatpush2.bf16.msra.mxu0 %v9927_v39 }
 0x25b   :  { %3880 = vmatprep.subr.bf16.mxu0 %v9742_v58 }
 0x29d   :  { %v2322_v36 = vpop.f32.mrf.mxu0  ;;  %v2363_v13 = vpop.f32.mrf.mxu1 }
 0x29e   :  { %v2413_v42 = vrot.slane %v2322_v36, 7  ;;  %v2433_v58 = vrot.slane %v2363_v13, 7 }
 0x29f   :  { %v2324_v7 = vpop.f32.mrf.mxu0  ;;  %v2365_v47 = vpop.f32.mrf.mxu1 }
 0x2a0   :  { %v2414_v52 = vrot.slane %v2324_v7, 7  ;;  %v2417_v33 = vadd.f32 %v2413_v42, %v9665_v43  ;;  %v2434_v10 = vrot.slane %v2365_v47, 7  ;;  %v2437_v6 = vadd.f32 %v2433_v58, %v9675_v61 }
 0x2a1   :  { %v2326_v1 = vpop.f32.mrf.mxu0  ;;  %v2367_v63 = vpop.f32.mrf.mxu1 }
 0x2a2   :  { %v2418_v39 = vadd.f32 %v2414_v52, %v9667_v49  ;;  %v7636_v20 = vmul.f32 -1.442695, %v2417_v33  ;;  %v2438_v2 = vadd.f32 %v2434_v10, %v9677_v5  ;;  %v7638_v1 = vmul.f32 -1.442695, %v2437_v6 }
 0x2a3   :  { %v2327_v59 = vpop.f32.mrf.mxu0  ;;  %v2368_v55 = vpop.f32.mrf.mxu1 }
 0x2a4   :  { %v7637_v14 = vmul.f32 -1.442695, %v2418_v39  ;;  %8998 = vpow2.f32 %v7636_v20  ;;  %v7639_v63 = vmul.f32 -1.442695, %v2438_v2 }
 0x2a6   :  { %9000 = vpow2.f32 %v7637_v14 }
 0x2a7   :  { %9002 = vpow2.f32 %v7638_v1 }
 0x2a8   :  { %9004 = vpow2.f32 %v7639_v63 }
 0x2b1   :  { %v8999_v59 = vpop.eup %8998 }
 0x2b2   :  { %v2425_v7 = vadd.f32 1.0, %v8999_v59 }
 0x2b3   :  { %v9001_v55 = vpop.eup %9000 }
 0x2b4   :  { %v2426_v42 = vadd.f32 1.0, %v9001_v55  ;;  %9006 = vrcp.f32 %v2425_v7  ;;  %v9003_v33 = vpop.eup %9002 }
 0x2b5   :  { %v9005_v39 = vpop.eup %9004  ;;  %v2445_v13 = vadd.f32 1.0, %v9003_v33 }
 0x2b6   :  { %9008 = vrcp.f32 %v2426_v42  ;;  %v2446_v47 = vadd.f32 1.0, %v9005_v39 }
 0x2b7   :  { %9010 = vrcp.f32 %v2445_v13  ;;  %v2470_v13 = vrot.slane %v9709_v35, 7  ;;  %v9956_v35 = vld [vmem:[#allocation10 + $0x160] ss:$24 sps:$4 sm:$0xff]  }
 0x2b8   :  { %9012 = vrcp.f32 %v2446_v47 }
 0x2c1   :  { %v9007_v2 = vpop.eup %9006 }
 0x2c3   :  { %v9009_v63 = vpop.eup %9008 }
 0x2c4   :  { %v9011_v33 = vpop.eup %9010 }
 0x2c5   :  { %v9013_v39 = vpop.eup %9012 }
 0x2dd   :  { %v2404_v20 = vpop.f32.mrf.mxu0 }
 0x2de   :  { %v2451_v14 = vadd.f32 %v2404_v20, %v9685_v23  ;;  %v2465_v20 = vsub.f32 1.0, %v9011_v33 }
 0x2df   :  { %v2406_v52 = vpop.f32.mrf.mxu0 }
 0x2e0   :  { %v2455_v36 = vrot.slane %v2451_v14, 7  ;;  %v2452_v6 = vadd.f32 %v2406_v52, %v9689_v26  ;;  %v2469_v14 = vrot.slane %v9704_v31, 7 }
 0x2e1   :  { %v2408_v10 = vpop.f32.mrf.mxu0 }
 0x2e2   :  { %v2459_v58 = vmul.f32 %v9007_v2, %v2455_v36  ;;  %v2456_v1 = vrot.slane %v2452_v6, 7  ;;  %v2466_v10 = vsub.f32 1.0, %v9013_v39  ;;  %v2473_v6 = vmul.f32 %v9011_v33, %v2469_v14 }
 0x2e3   :  { %v2409_v59 = vpop.f32.mrf.mxu0 }
 0x2e4   :  { %v2461_v55 = vadd.f32 %v2459_v58, %v9696_v41  ;;  %v2460_v7 = vmul.f32 %v9009_v63, %v2456_v1  ;;  %v2474_v59 = vmul.f32 %v9013_v39, %v2470_v13  ;;  %v9961_v39 = vld [vmem:[#allocation10 + $0x134] ss:$24 sps:$4 sm:$0xff]   ;;  %v9977_v13 = vld [vmem:[#allocation10 + $0x100] ss:$24 sps:$4 sm:$0xff]  }
 0x2e6   :  { %9014 = vtanh.f32 %v2461_v55  ;;  %v2462_v42 = vadd.f32 %v2460_v7, %v9699_v51 }
 0x2e8   :  { %9016 = vtanh.f32 %v2462_v42 }
 0x2f3   :  { %v9015_v52 = vpop.eup %9014 }
 0x2f4   :  { %v2467_v36 = vmul.f32 %v9015_v52, %v2465_v20  ;;  %v9967_v52 = vld [vmem:[#allocation10 + $0x130] ss:$24 sps:$4 sm:$0xff]  }
 0x2f5   :  { %v9017_v2 = vpop.eup %9016 }
 0x2f6   :  { %v2468_v47 = vmul.f32 %v9017_v2, %v2466_v10  ;;  %v9946_v58 = vadd.f32 %v2473_v6, %v2467_v36  ;;  %v9970_v10 = vld [vmem:[#allocation10 + $0x104] ss:$24 sps:$4 sm:$0xff]   ;;  %v9980_v36 = vld [vmem:[#allocation10 + $0xd4] ss:$24 sps:$4 sm:$0xff]  }
 0x2f7   :  { %v9988_v6 = vld [vmem:[#allocation10 + $0xa4] ss:$24 sps:$4 sm:$0xff]  }
 0x2f8   :  { %v9948_v1 = vadd.f32 %v2474_v59, %v2468_v47  ;;  %v2499_v63 = vpack.c.bf16 %v9946_v58, %v9946_v58  ;;  %v11210_v2 = vld [vmem:[#allocation25_spill] sm:$0xff]  ;;  %v11212_v47 = vld [vmem:[#allocation27_spill] sm:$0xff]  ;;  %v11213_v59 = vld [vmem:[#allocation28_spill] sm:$0xff] }
 0x2fa   :  { %v2500_v55 = vpack.c.bf16 %v9948_v1, %v9948_v1  ;;  %v2479_v31 = vcombine.low %v9946_v58, %v9948_v1  ;;  %v9959_v33 = vshrl.u32 %v2499_v63, 16  ;;  %v11214_v63 = vld [vmem:[#allocation29_spill] sm:$0xff] }
 0x2fc   :  { %v2601_v7 = vshrl.u32 %v2500_v55, 16  ;;  %v2486_v42 = vrot.slane %v2479_v31, %v9707_v46  ;;  %v11215_v55 = vld [vmem:[#allocation30_spill] sm:$0xff]  ;;  %v11216_v31 = vld [vmem:[#allocation31_spill] sm:$0xff] }
 0x2fe   :  { %3117 = vmatprep.mubr.bf16.mxu1 %v2601_v7  ;;  %3158 = vmatprep.mubr.bf16.mxu0 %v2601_v7  ;;  %v2487_v20 = vcombine.high %v2486_v42, %v2486_v42  ;;  %v11218_v42 = vld [vmem:[#allocation33_spill] sm:$0xff] }
 0x2ff   :  { %3118 = vmatmul.mubr.bf16.vlgmr.msra.gmra.mxu1 %v9959_v33  ;;  %3159 = vmatmul.mubr.bf16.vlgmr.msra.gmra.mxu0 %v9959_v33 }
 0x300   :  { %v2494_v14 = vrot.slane %v2487_v20, %v9707_v46  ;;  %3168 = vmatpush1.bf16.msra.mxu1 %v9956_v35  ;;  %3199 = vmatprep.mubr.bf16.mxu1 %v2601_v7  ;;  %v11217_v7 = vld [vmem:[#allocation32_spill] sm:$0xff]  ;;  %v11220_v20 = vld [vmem:[#allocation35_spill] sm:$0xff] }
 0x301   :  { %3169 = vmatprep.subr.bf16.mxu1 %v9961_v39  ;;  %3881 = vmatpush1.bf16.msra.mxu0 %v9740_v56  ;;  %v9985_v56 = vld [vmem:[#allocation10 + $0xd0] ss:$24 sps:$4 sm:$0xff]  }
 0x302   :  { %2497 = vst.msk [vmem:[#allocation11 + $0x1] ss:$8 sm:$0x3] %vm9390_vm0, %v2494_v14  ;;  %3882 = vmatprep.subr.bf16.mxu0 %v9748_v0  ;;  %v9993_v0 = vld [vmem:[#allocation10 + $0xa0] ss:$24 sps:$4 sm:$0xff]  }
 0x303   :  { %v11221_v14 = vld [vmem:[#allocation37_spill] sm:$0xff] }
 0x304   :  { %3170 = vmatpush1.bf16.msra.mxu1 %v9967_v52 }
 0x305   :  { %3171 = vmatprep.subr.bf16.mxu1 %v9970_v10  ;;  %3883 = vmatpush1.bf16.msra.mxu0 %v9755_v4  ;;  %v9996_v4 = vld [vmem:[#allocation10 + $0x74] ss:$24 sps:$4 sm:$0xff]  }
 0x306   :  { %3884 = vmatprep.subr.bf16.mxu0 %v9761_v8  ;;  %v10001_v8 = vld [vmem:[#allocation10 + $0x70] ss:$24 sps:$4 sm:$0xff]  }
 0x308   :  { %3172 = vmatpush1.bf16.msra.mxu1 %v9977_v13 }
 0x309   :  { %3173 = vmatprep.subr.bf16.mxu1 %v9980_v36  ;;  %3885 = vmatpush1.bf16.msra.mxu0 %v9767_v12  ;;  %v10004_v12 = vld [vmem:[#allocation10 + $0x44] ss:$24 sps:$4 sm:$0xff]  }
 0x30a   :  { %3886 = vmatprep.subr.bf16.mxu0 %v9773_v18  ;;  %v10009_v18 = vld [vmem:[#allocation10 + $0x40] ss:$24 sps:$4 sm:$0xff]  }
 0x30c   :  { %3174 = vmatpush1.bf16.msra.mxu1 %v9985_v56 }
 0x30d   :  { %3175 = vmatprep.subr.bf16.mxu1 %v9988_v6  ;;  %3887 = vmatpush1.bf16.msra.mxu0 %v9779_v29  ;;  %v10012_v29 = vld [vmem:[#allocation10 + $0x14] ss:$24 sps:$4 sm:$0xff]  }
 0x30e   :  { %3888 = vmatprep.subr.bf16.mxu0 %v9785_v37  ;;  %v10017_v37 = vld [vmem:[#allocation10 + $0x10] ss:$24 sps:$4 sm:$0xff]  }
 0x310   :  { %3176 = vmatpush1.bf16.msra.mxu1 %v9993_v0 }
 0x311   :  { %3177 = vmatprep.subr.bf16.mxu1 %v9996_v4  ;;  %3889 = vmatpush1.bf16.msra.mxu0 %v9791_v53  ;;  %v10020_v53 = vld [vmem:[#allocation10 + $0x2e4] ss:$24 sps:$4 sm:$0xff]  }
 0x312   :  { %3890 = vmatprep.subr.bf16.mxu0 %v9797_v57  ;;  %v10025_v57 = vld [vmem:[#allocation10 + $0x2e0] ss:$24 sps:$4 sm:$0xff]  }
 0x314   :  { %3178 = vmatpush1.bf16.msra.mxu1 %v10001_v8 }
 0x315   :  { %3179 = vmatprep.subr.bf16.mxu1 %v10004_v12  ;;  %3891 = vmatpush1.bf16.msra.mxu0 %v9803_v11  ;;  %v10028_v11 = vld [vmem:[#allocation10 + $0x2b4] ss:$24 sps:$4 sm:$0xff]  }
 0x316   :  { %3892 = vmatprep.subr.bf16.mxu0 %v9809_v21  ;;  %v10033_v21 = vld [vmem:[#allocation10 + $0x2b0] ss:$24 sps:$4 sm:$0xff]  }
 0x318   :  { %3180 = vmatpush1.bf16.msra.mxu1 %v10009_v18 }
 0x319   :  { %3181 = vmatprep.subr.bf16.mxu1 %v10012_v29  ;;  %3893 = vmatpush1.bf16.msra.mxu0 %v9815_v3  ;;  %v10036_v3 = vld [vmem:[#allocation10 + $0x284] ss:$24 sps:$4 sm:$0xff]  }
 0x31a   :  { %3894 = vmatprep.subr.bf16.mxu0 %v9821_v9  ;;  %v10041_v9 = vld [vmem:[#allocation10 + $0x280] ss:$24 sps:$4 sm:$0xff]  }
 0x31c   :  { %3182 = vmatpush1.bf16.msra.mxu1 %v10017_v37 }
 0x31d   :  { %3183 = vmatprep.subr.bf16.mxu1 %v10020_v53  ;;  %3895 = vmatpush1.bf16.msra.mxu0 %v9827_v16  ;;  %v10044_v16 = vld [vmem:[#allocation10 + $0x254] ss:$24 sps:$4 sm:$0xff]  }
 0x31e   :  { %3896 = vmatprep.subr.bf16.mxu0 %v9836_v19  ;;  %v10049_v19 = vld [vmem:[#allocation10 + $0x250] ss:$24 sps:$4 sm:$0xff]  }
 0x320   :  { %3184 = vmatpush2.bf16.msra.mxu1 %v10025_v57 }
 0x321   :  { %3185 = vmatprep.subr.bf16.mxu1 %v10028_v11  ;;  %3897 = vmatpush2.bf16.msra.mxu0 %v9838_v27  ;;  %v10052_v27 = vld [vmem:[#allocation10 + $0x224] ss:$24 sps:$4 sm:$0xff]  }
 0x322   :  { %3898 = vmatprep.subr.bf16.mxu0 %v9848_v25  ;;  %v10057_v25 = vld [vmem:[#allocation10 + $0x220] ss:$24 sps:$4 sm:$0xff]  }
 0x324   :  { %3186 = vmatpush2.bf16.msra.mxu1 %v10033_v21 }
 0x325   :  { %3187 = vmatprep.subr.bf16.mxu1 %v10036_v3  ;;  %3899 = vmatpush2.bf16.msra.mxu0 %v9850_v50  ;;  %v10060_v50 = vld [vmem:[#allocation10 + $0x1f4] ss:$24 sps:$4 sm:$0xff]  }
 0x326   :  { %3900 = vmatprep.subr.bf16.mxu0 %v9860_v28  ;;  %v10065_v28 = vld [vmem:[#allocation10 + $0x1f0] ss:$24 sps:$4 sm:$0xff]  }
 0x328   :  { %3188 = vmatpush2.bf16.msra.mxu1 %v10041_v9 }
 0x329   :  { %3189 = vmatprep.subr.bf16.mxu1 %v10044_v16  ;;  %3901 = vmatpush2.bf16.msra.mxu0 %v9862_v24  ;;  %v10068_v24 = vld [vmem:[#allocation10 + $0x1c4] ss:$24 sps:$4 sm:$0xff]  }
 0x32a   :  { %3902 = vmatprep.subr.bf16.mxu0 %v9874_v15  ;;  %v10073_v15 = vld [vmem:[#allocation10 + $0x1c0] ss:$24 sps:$4 sm:$0xff]  }
 0x32c   :  { %3190 = vmatpush2.bf16.msra.mxu1 %v10049_v19 }
 0x32d   :  { %3191 = vmatprep.subr.bf16.mxu1 %v10052_v27  ;;  %3903 = vmatpush2.bf16.msra.mxu0 %v9872_v34  ;;  %v10076_v34 = vld [vmem:[#allocation10 + $0x194] ss:$24 sps:$4 sm:$0xff]  }
 0x32e   :  { %3904 = vmatprep.subr.bf16.mxu0 %v9880_v44  ;;  %v10081_v44 = vld [vmem:[#allocation10 + $0x190] ss:$24 sps:$4 sm:$0xff]  }
 0x330   :  { %3192 = vmatpush2.bf16.msra.mxu1 %v10057_v25 }
 0x331   :  { %3193 = vmatprep.subr.bf16.mxu1 %v10060_v50  ;;  %3905 = vmatpush2.bf16.msra.mxu0 %v9887_v48  ;;  %v11205_v48 = vld [vmem:[#allocation20_spill] sm:$0xff] }
 0x332   :  { %3906 = vmatprep.subr.bf16.mxu0 %v9893_v32  ;;  %v11202_v32 = vld [vmem:[#allocation17_spill] sm:$0xff] }
 0x334   :  { %3194 = vmatpush2.bf16.msra.mxu1 %v10065_v28 }
 0x335   :  { %3195 = vmatprep.subr.bf16.mxu1 %v10068_v24  ;;  %3907 = vmatpush2.bf16.msra.mxu0 %v9899_v22  ;;  %v11201_v22 = vld [vmem:[#allocation16_spill] sm:$0xff] }
 0x336   :  { %3908 = vmatprep.subr.bf16.mxu0 %v9905_v38  ;;  %v11203_v38 = vld [vmem:[#allocation18_spill] sm:$0xff] }
 0x338   :  { %3196 = vmatpush2.bf16.msra.mxu1 %v10073_v15 }
 0x339   :  { %3197 = vmatprep.subr.bf16.mxu1 %v10076_v34  ;;  %3909 = vmatpush2.bf16.msra.mxu0 %v9911_v40  ;;  %v11204_v40 = vld [vmem:[#allocation19_spill] sm:$0xff] }
 0x33a   :  { %3910 = vmatprep.subr.bf16.mxu0 %v9917_v54  ;;  %v11206_v54 = vld [vmem:[#allocation21_spill] sm:$0xff] }
 0x33c   :  { %3198 = vmatpush2.bf16.msra.mxu1 %v10081_v44 }
 0x33d   :  { %3921 = vmatprep.subr.bf16.mxu1 %v9746_v62  ;;  %3911 = vmatpush2.bf16.msra.mxu0 %v9923_v30  ;;  %v11207_v62 = vld [vmem:[#allocation22_spill] sm:$0xff]  ;;  %v11208_v30 = vld [vmem:[#allocation23_spill] sm:$0xff] }
 0x33e   :  { %3962 = vmatprep.subr.bf16.mxu0 %v9932_v17  ;;  %v11209_v17 = vld [vmem:[#allocation24_spill] sm:$0xff] }
 0x33f   :  { %3200 = vmatmul.mubr.bf16.vlgmr.msra.gmra.mxu1 %v9959_v33  ;;  %v11219_v33 = vld [vmem:[#allocation34_spill] sm:$0xff] }
 0x340   :  { %3922 = vmatpush1.bf16.msra.mxu1 %v9744_v60  ;;  %v11211_v60 = vld [vmem:[#allocation26_spill] sm:$0xff] }
 0x341   :  { %3923 = vmatprep.subr.bf16.mxu1 %v11201_v22  ;;  %v11222_v22 = vld [vmem:[#allocation36_spill] sm:$0xff] }
 0x344   :  { %3924 = vmatpush1.bf16.msra.mxu1 %v11202_v32  ;;  %v11223_v32 = vld [vmem:[#allocation38_spill] sm:$0xff] }
 0x345   :  { %3925 = vmatprep.subr.bf16.mxu1 %v11203_v38  ;;  %v11224_v38 = vld [vmem:[#allocation39_spill] sm:$0xff] }
 0x348   :  { %3926 = vmatpush1.bf16.msra.mxu1 %v11204_v40  ;;  %v11225_v40 = vld [vmem:[#allocation40_spill] sm:$0xff] }
 0x349   :  { %3927 = vmatprep.subr.bf16.mxu1 %v11205_v48  ;;  %v11226_v48 = vld [vmem:[#allocation41_spill] sm:$0xff] }
 0x34c   :  { %3928 = vmatpush1.bf16.msra.mxu1 %v11206_v54  ;;  %v11227_v54 = vld [vmem:[#allocation42_spill] sm:$0xff] }
 0x34d   :  { %3929 = vmatprep.subr.bf16.mxu1 %v11207_v62  ;;  %v11228_v62 = vld [vmem:[#allocation43_spill] sm:$0xff] }
 0x350   :  { %3930 = vmatpush1.bf16.msra.mxu1 %v11208_v30  ;;  %v11229_v30 = vld [vmem:[#allocation44_spill] sm:$0xff] }
 0x351   :  { %3931 = vmatprep.subr.bf16.mxu1 %v11209_v17  ;;  %v11230_v17 = vld [vmem:[#allocation45_spill] sm:$0xff] }
 0x354   :  { %3932 = vmatpush1.bf16.msra.mxu1 %v11210_v2 }
 0x355   :  { %3933 = vmatprep.subr.bf16.mxu1 %v11211_v60 }
 0x358   :  { %3934 = vmatpush1.bf16.msra.mxu1 %v11212_v47 }
 0x359   :  { %3935 = vmatprep.subr.bf16.mxu1 %v11213_v59 }
 0x35c   :  { %3936 = vmatpush1.bf16.msra.mxu1 %v11214_v63 }
 0x35d   :  { %3937 = vmatprep.subr.bf16.mxu1 %v11215_v55 }
 0x360   :  { %3938 = vmatpush2.bf16.msra.mxu1 %v11216_v31 }
 0x361   :  { %3939 = vmatprep.subr.bf16.mxu1 %v11217_v7 }
 0x364   :  { %3940 = vmatpush2.bf16.msra.mxu1 %v11218_v42 }
 0x365   :  { %3941 = vmatprep.subr.bf16.mxu1 %v11219_v33 }
 0x368   :  { %3942 = vmatpush2.bf16.msra.mxu1 %v11220_v20 }
 0x369   :  { %3943 = vmatprep.subr.bf16.mxu1 %v11221_v14 }
 0x36c   :  { %3944 = vmatpush2.bf16.msra.mxu1 %v11222_v22 }
 0x36d   :  { %3945 = vmatprep.subr.bf16.mxu1 %v11223_v32 }
 0x370   :  { %3946 = vmatpush2.bf16.msra.mxu1 %v11224_v38 }
 0x371   :  { %3947 = vmatprep.subr.bf16.mxu1 %v11225_v40 }
 0x374   :  { %3948 = vmatpush2.bf16.msra.mxu1 %v11226_v48 }
 0x375   :  { %3949 = vmatprep.subr.bf16.mxu1 %v11227_v54 }
 0x378   :  { %3950 = vmatpush2.bf16.msra.mxu1 %v11228_v62 }
 0x379   :  { %3951 = vmatprep.subr.bf16.mxu1 %v11229_v30 }
 0x37c   :  { %3952 = vmatpush2.bf16.msra.mxu1 %v11230_v17 }
 0x3bf   :  { %v3119_v2 = vpop.f32.mrf.mxu1  ;;  %v3160_v60 = vpop.f32.mrf.mxu0 }
 0x3c0   :  { %v3210_v42 = vrot.slane %v3119_v2, 6  ;;  %v3230_v38 = vrot.slane %v3160_v60, 6 }
 0x3c1   :  { %v3121_v47 = vpop.f32.mrf.mxu1  ;;  %v3162_v59 = vpop.f32.mrf.mxu0 }
 0x3c2   :  { %v3211_v33 = vrot.slane %v3121_v47, 6  ;;  %v3214_v20 = vadd.f32 %v3210_v42, %v9665_v43  ;;  %v3231_v40 = vrot.slane %v3162_v59, 6  ;;  %v3234_v48 = vadd.f32 %v3230_v38, %v9675_v61 }
 0x3c3   :  { %v3123_v63 = vpop.f32.mrf.mxu1  ;;  %v3164_v55 = vpop.f32.mrf.mxu0 }
 0x3c4   :  { %v3215_v14 = vadd.f32 %v3211_v33, %v9667_v49  ;;  %v7736_v22 = vmul.f32 -1.442695, %v3214_v20  ;;  %v3235_v54 = vadd.f32 %v3231_v40, %v9677_v5  ;;  %v7738_v62 = vmul.f32 -1.442695, %v3234_v48 }
 0x3c5   :  { %v3124_v31 = vpop.f32.mrf.mxu1  ;;  %v3165_v7 = vpop.f32.mrf.mxu0 }
 0x3c6   :  { %v7737_v32 = vmul.f32 -1.442695, %v3215_v14  ;;  %9018 = vpow2.f32 %v7736_v22  ;;  %v7739_v30 = vmul.f32 -1.442695, %v3235_v54 }
 0x3c8   :  { %9020 = vpow2.f32 %v7737_v32 }
 0x3c9   :  { %9022 = vpow2.f32 %v7738_v62 }
 0x3ca   :  { %9024 = vpow2.f32 %v7739_v30 }
 0x3d3   :  { %v9019_v17 = vpop.eup %9018 }
 0x3d4   :  { %v3222_v47 = vadd.f32 1.0, %v9019_v17 }
 0x3d5   :  { %v9021_v2 = vpop.eup %9020 }
 0x3d6   :  { %v3223_v63 = vadd.f32 1.0, %v9021_v2  ;;  %9026 = vrcp.f32 %v3222_v47  ;;  %v9023_v55 = vpop.eup %9022 }
 0x3d7   :  { %v9025_v31 = vpop.eup %9024  ;;  %v3242_v60 = vadd.f32 1.0, %v9023_v55  ;;  %v3266_v55 = vrot.slane %v9946_v58, 7 }
 0x3d8   :  { %9028 = vrcp.f32 %v3223_v63  ;;  %v3243_v33 = vadd.f32 1.0, %v9025_v31 }
 0x3d9   :  { %9030 = vrcp.f32 %v3242_v60  ;;  %v3267_v60 = vrot.slane %v9948_v1, 7 }
 0x3da   :  { %9032 = vrcp.f32 %v3243_v33 }
 0x3e3   :  { %v9027_v22 = vpop.eup %9026 }
 0x3e5   :  { %v9029_v48 = vpop.eup %9028 }
 0x3e6   :  { %v9031_v2 = vpop.eup %9030 }
 0x3e7   :  { %v9033_v47 = vpop.eup %9032  ;;  %v3262_v63 = vsub.f32 1.0, %v9031_v2 }
 0x3ff   :  { %v3201_v7 = vpop.f32.mrf.mxu1 }
 0x400   :  { %v3248_v59 = vadd.f32 %v3201_v7, %v9685_v23  ;;  %v3263_v7 = vsub.f32 1.0, %v9033_v47 }
 0x401   :  { %v3203_v42 = vpop.f32.mrf.mxu1 }
 0x402   :  { %v3252_v20 = vrot.slane %v3248_v59, 6  ;;  %v3249_v14 = vadd.f32 %v3203_v42, %v9689_v26  ;;  %v3270_v42 = vmul.f32 %v9031_v2, %v3266_v55  ;;  %v10273_v2 = vld [vmem:[#allocation10 + $0x2d4] ss:$24 sps:$4 sm:$0xff]   ;;  %v10280_v55 = vld [vmem:[#allocation10 + $0x2d8] ss:$24 sps:$4 sm:$0xff]  }
 0x403   :  { %v3205_v32 = vpop.f32.mrf.mxu1  ;;  %11246 = vst [vmem:[#allocation31_spill] sm:$0xff] %v10280_v55 }
 0x404   :  { %v3256_v38 = vmul.f32 %v9027_v22, %v3252_v20  ;;  %v3253_v40 = vrot.slane %v3249_v14, 6  ;;  %v3271_v14 = vmul.f32 %v9033_v47, %v3267_v60  ;;  %v10275_v47 = vld [vmem:[#allocation10 + $0x2d0] ss:$24 sps:$4 sm:$0xff]   ;;  %v10289_v60 = vld [vmem:[#allocation10 + $0x2ac] ss:$24 sps:$4 sm:$0xff]  }
 0x405   :  { %v3206_v54 = vpop.f32.mrf.mxu1  ;;  %11247 = vst [vmem:[#allocation32_spill] sm:$0xff] %v10289_v60 }
 0x406   :  { %v3258_v62 = vadd.f32 %v3256_v38, %v9696_v41  ;;  %v3257_v30 = vmul.f32 %v9029_v48, %v3253_v40 }
 0x408   :  { %9034 = vtanh.f32 %v3258_v62  ;;  %v3259_v17 = vadd.f32 %v3257_v30, %v9699_v51 }
 0x40a   :  { %9036 = vtanh.f32 %v3259_v17  ;;  %v10269_v17 = vld [vmem:[#allocation10 + $0x8] ss:$24 sps:$4 sm:$0xff]  }
 0x40b   :  { %11244 = vst [vmem:[#allocation29_spill] sm:$0xff] %v10269_v17 }
 0x415   :  { %v9035_v31 = vpop.eup %9034 }
 0x416   :  { %v3264_v59 = vmul.f32 %v9035_v31, %v3262_v63  ;;  %v10277_v63 = vld [vmem:[#allocation10 + $0x2dc] ss:$24 sps:$4 sm:$0xff]  }
 0x417   :  { %v9037_v20 = vpop.eup %9036  ;;  %11245 = vst [vmem:[#allocation30_spill] sm:$0xff] %v10277_v63  ;;  %v10285_v31 = vld [vmem:[#allocation10 + $0x2a4] ss:$24 sps:$4 sm:$0xff]  }
 0x418   :  { %v3265_v33 = vmul.f32 %v9037_v20, %v3263_v7  ;;  %v10132_v22 = vadd.f32 %v3270_v42, %v3264_v59  ;;  %v10287_v7 = vld [vmem:[#allocation10 + $0x2a0] ss:$24 sps:$4 sm:$0xff]   ;;  %v10297_v42 = vld [vmem:[#allocation10 + $0x274] ss:$24 sps:$4 sm:$0xff]   ;;  %v10299_v20 = vld [vmem:[#allocation10 + $0x270] ss:$24 sps:$4 sm:$0xff]  }
 0x419   :  { %v10292_v59 = vld [vmem:[#allocation10 + $0x2a8] ss:$24 sps:$4 sm:$0xff]  }
 0x41a   :  { %v10134_v32 = vadd.f32 %v3271_v14, %v3265_v33  ;;  %v3296_v38 = vpack.c.bf16 %v10132_v22, %v10132_v22  ;;  %11248 = vst [vmem:[#allocation33_spill] sm:$0xff] %v10292_v59  ;;  %v10301_v33 = vld [vmem:[#allocation10 + $0x27c] ss:$24 sps:$4 sm:$0xff]   ;;  %v10304_v14 = vld [vmem:[#allocation10 + $0x278] ss:$24 sps:$4 sm:$0xff]  }
 0x41b   :  { %11249 = vst [vmem:[#allocation34_spill] sm:$0xff] %v10301_v33  ;;  %11250 = vst [vmem:[#allocation35_spill] sm:$0xff] %v10304_v14 }
 0x41c   :  { %v3297_v40 = vpack.c.bf16 %v10134_v32, %v10134_v32  ;;  %v3276_v58 = vcombine.low %v10132_v22, %v10134_v32  ;;  %v3396_v54 = vrot.slane %v3296_v38, 1  ;;  %v10306_v38 = vld [vmem:[#allocation10 + $0x244] ss:$24 sps:$4 sm:$0xff]  }
 0x41e   :  { %v3397_v48 = vrot.slane %v3297_v40, 1  ;;  %v3283_v1 = vrot.slane %v3276_v58, %v9707_v46  ;;  %v10310_v40 = vld [vmem:[#allocation10 + $0x240] ss:$24 sps:$4 sm:$0xff]   ;;  %v10312_v58 = vld [vmem:[#allocation10 + $0x24c] ss:$24 sps:$4 sm:$0xff]  }
 0x41f   :  { %11251 = vst [vmem:[#allocation37_spill] sm:$0xff] %v10312_v58 }
 0x420   :  { %3912 = vmatprep.mubr.bf16.mxu0 %v3397_v48  ;;  %3953 = vmatprep.mubr.bf16.mxu1 %v3397_v48  ;;  %v3290_v62 = vrot.slane %v3283_v1, %v9707_v46  ;;  %v10318_v1 = vld [vmem:[#allocation10 + $0x214] ss:$24 sps:$4 sm:$0xff]  }
 0x421   :  { %3913 = vmatmul.mubr.bf16.vlgmr.msra.gmra.mxu0 %v3396_v54  ;;  %3954 = vmatmul.mubr.bf16.vlgmr.msra.gmra.mxu1 %v3396_v54 }
 0x422   :  { %v3291_v30 = vcombine.high %v3290_v62, %v3290_v62  ;;  %3963 = vmatpush1.bf16.msra.mxu0 %v9956_v35  ;;  %3994 = vmatprep.mubr.bf16.mxu0 %v3397_v48  ;;  %v10177_v35 = vld [vmem:[#allocation10 + $0x150] ss:$24 sps:$4 sm:$0xff]  }
 0x423   :  { %3964 = vmatprep.subr.bf16.mxu0 %v9961_v39  ;;  %v10179_v39 = vld [vmem:[#allocation10 + $0x154] ss:$24 sps:$4 sm:$0xff]   ;;  %v10316_v48 = vld [vmem:[#allocation10 + $0x248] ss:$24 sps:$4 sm:$0xff]  }
 0x424   :  { %3294 = vst.msk [vmem:[#allocation11 + $0x2] ss:$8 sm:$0x3] %vm9390_vm0, %v3291_v30  ;;  %4680 = vmatprep.subr.bf16.mxu1 %v10179_v39  ;;  %11252 = vst [vmem:[#allocation36_spill] sm:$0xff] %v10316_v48  ;;  %v10324_v62 = vld [vmem:[#allocation10 + $0x210] ss:$24 sps:$4 sm:$0xff]  }
 0x425   :  { %4681 = vmatpush1.bf16.msra.mxu1 %v10177_v35  ;;  %v10328_v30 = vld [vmem:[#allocation10 + $0x218] ss:$24 sps:$4 sm:$0xff]  }
 0x426   :  { %3965 = vmatpush1.bf16.msra.mxu0 %v9967_v52  ;;  %v10181_v52 = vld [vmem:[#allocation10 + $0x158] ss:$24 sps:$4 sm:$0xff]   ;;  %11254 = vst [vmem:[#allocation39_spill] sm:$0xff] %v10328_v30 }
 0x427   :  { %3966 = vmatprep.subr.bf16.mxu0 %v9970_v10  ;;  %v10183_v10 = vld [vmem:[#allocation10 + $0x15c] ss:$24 sps:$4 sm:$0xff]  }
 0x42a   :  { %3967 = vmatpush1.bf16.msra.mxu0 %v9977_v13  ;;  %v10185_v13 = vld [vmem:[#allocation10 + $0x124] ss:$24 sps:$4 sm:$0xff]  }
 0x42b   :  { %3968 = vmatprep.subr.bf16.mxu0 %v9980_v36  ;;  %v10188_v36 = vld [vmem:[#allocation10 + $0x12c] ss:$24 sps:$4 sm:$0xff]   ;;  %4682 = vmatprep.subr.bf16.mxu1 %v10185_v13 }
 0x42c   :  { %11231 = vst [vmem:[#allocation16_spill] sm:$0xff] %v10188_v36 }
 0x42e   :  { %3969 = vmatpush1.bf16.msra.mxu0 %v9985_v56  ;;  %v10192_v56 = vld [vmem:[#allocation10 + $0x120] ss:$24 sps:$4 sm:$0xff]  }
 0x42f   :  { %3970 = vmatprep.subr.bf16.mxu0 %v9988_v6  ;;  %v10196_v6 = vld [vmem:[#allocation10 + $0x128] ss:$24 sps:$4 sm:$0xff]   ;;  %4683 = vmatpush1.bf16.msra.mxu1 %v10192_v56 }
 0x430   :  { %11232 = vst [vmem:[#allocation17_spill] sm:$0xff] %v10196_v6 }
 0x432   :  { %3971 = vmatpush1.bf16.msra.mxu0 %v9993_v0  ;;  %v10198_v0 = vld [vmem:[#allocation10 + $0xf4] ss:$24 sps:$4 sm:$0xff]  }
 0x433   :  { %3972 = vmatprep.subr.bf16.mxu0 %v9996_v4  ;;  %v10201_v4 = vld [vmem:[#allocation10 + $0xfc] ss:$24 sps:$4 sm:$0xff]   ;;  %4684 = vmatprep.subr.bf16.mxu1 %v10198_v0 }
 0x434   :  { %11233 = vst [vmem:[#allocation18_spill] sm:$0xff] %v10201_v4 }
 0x436   :  { %3973 = vmatpush1.bf16.msra.mxu0 %v10001_v8  ;;  %v10204_v8 = vld [vmem:[#allocation10 + $0xf0] ss:$24 sps:$4 sm:$0xff]  }
 0x437   :  { %3974 = vmatprep.subr.bf16.mxu0 %v10004_v12  ;;  %v10208_v12 = vld [vmem:[#allocation10 + $0xf8] ss:$24 sps:$4 sm:$0xff]   ;;  %4685 = vmatpush1.bf16.msra.mxu1 %v10204_v8 }
 0x438   :  { %11234 = vst [vmem:[#allocation19_spill] sm:$0xff] %v10208_v12 }
 0x43a   :  { %3975 = vmatpush1.bf16.msra.mxu0 %v10009_v18  ;;  %v10210_v18 = vld [vmem:[#allocation10 + $0xc4] ss:$24 sps:$4 sm:$0xff]  }
 0x43b   :  { %3976 = vmatprep.subr.bf16.mxu0 %v10012_v29  ;;  %v10213_v29 = vld [vmem:[#allocation10 + $0xcc] ss:$24 sps:$4 sm:$0xff]   ;;  %4686 = vmatprep.subr.bf16.mxu1 %v10210_v18 }
 0x43c   :  { %11235 = vst [vmem:[#allocation20_spill] sm:$0xff] %v10213_v29 }
 0x43e   :  { %3977 = vmatpush1.bf16.msra.mxu0 %v10017_v37  ;;  %v10216_v37 = vld [vmem:[#allocation10 + $0xc0] ss:$24 sps:$4 sm:$0xff]  }
 0x43f   :  { %3978 = vmatprep.subr.bf16.mxu0 %v10020_v53  ;;  %v10220_v53 = vld [vmem:[#allocation10 + $0xc8] ss:$24 sps:$4 sm:$0xff]   ;;  %4687 = vmatpush1.bf16.msra.mxu1 %v10216_v37 }
 0x440   :  { %11236 = vst [vmem:[#allocation21_spill] sm:$0xff] %v10220_v53 }
 0x442   :  { %3979 = vmatpush2.bf16.msra.mxu0 %v10025_v57  ;;  %v10222_v57 = vld [vmem:[#allocation10 + $0x94] ss:$24 sps:$4 sm:$0xff]  }
 0x443   :  { %3980 = vmatprep.subr.bf16.mxu0 %v10028_v11  ;;  %v10225_v11 = vld [vmem:[#allocation10 + $0x9c] ss:$24 sps:$4 sm:$0xff]   ;;  %4688 = vmatprep.subr.bf16.mxu1 %v10222_v57 }
 0x444   :  { %11237 = vst [vmem:[#allocation22_spill] sm:$0xff] %v10225_v11 }
 0x446   :  { %3981 = vmatpush2.bf16.msra.mxu0 %v10033_v21  ;;  %v10228_v21 = vld [vmem:[#allocation10 + $0x90] ss:$24 sps:$4 sm:$0xff]  }
 0x447   :  { %3982 = vmatprep.subr.bf16.mxu0 %v10036_v3  ;;  %v10232_v3 = vld [vmem:[#allocation10 + $0x98] ss:$24 sps:$4 sm:$0xff]   ;;  %4689 = vmatpush1.bf16.msra.mxu1 %v10228_v21 }
 0x448   :  { %11238 = vst [vmem:[#allocation23_spill] sm:$0xff] %v10232_v3 }
 0x44a   :  { %3983 = vmatpush2.bf16.msra.mxu0 %v10041_v9  ;;  %v10234_v9 = vld [vmem:[#allocation10 + $0x64] ss:$24 sps:$4 sm:$0xff]  }
 0x44b   :  { %3984 = vmatprep.subr.bf16.mxu0 %v10044_v16  ;;  %v10237_v16 = vld [vmem:[#allocation10 + $0x6c] ss:$24 sps:$4 sm:$0xff]   ;;  %4690 = vmatprep.subr.bf16.mxu1 %v10234_v9 }
 0x44c   :  { %11239 = vst [vmem:[#allocation24_spill] sm:$0xff] %v10237_v16 }
 0x44e   :  { %3985 = vmatpush2.bf16.msra.mxu0 %v10049_v19  ;;  %v10240_v19 = vld [vmem:[#allocation10 + $0x60] ss:$24 sps:$4 sm:$0xff]  }
 0x44f   :  { %3986 = vmatprep.subr.bf16.mxu0 %v10052_v27  ;;  %v10244_v27 = vld [vmem:[#allocation10 + $0x68] ss:$24 sps:$4 sm:$0xff]   ;;  %4691 = vmatpush1.bf16.msra.mxu1 %v10240_v19 }
 0x450   :  { %11240 = vst [vmem:[#allocation25_spill] sm:$0xff] %v10244_v27 }
 0x452   :  { %3987 = vmatpush2.bf16.msra.mxu0 %v10057_v25  ;;  %v10246_v25 = vld [vmem:[#allocation10 + $0x34] ss:$24 sps:$4 sm:$0xff]  }
 0x453   :  { %3988 = vmatprep.subr.bf16.mxu0 %v10060_v50  ;;  %v10249_v50 = vld [vmem:[#allocation10 + $0x3c] ss:$24 sps:$4 sm:$0xff]   ;;  %4692 = vmatprep.subr.bf16.mxu1 %v10246_v25 }
 0x454   :  { %11241 = vst [vmem:[#allocation26_spill] sm:$0xff] %v10249_v50 }
 0x456   :  { %3989 = vmatpush2.bf16.msra.mxu0 %v10065_v28  ;;  %v10252_v28 = vld [vmem:[#allocation10 + $0x30] ss:$24 sps:$4 sm:$0xff]  }
 0x457   :  { %3990 = vmatprep.subr.bf16.mxu0 %v10068_v24  ;;  %v10256_v24 = vld [vmem:[#allocation10 + $0x38] ss:$24 sps:$4 sm:$0xff]   ;;  %4693 = vmatpush1.bf16.msra.mxu1 %v10252_v28 }
 0x458   :  { %11242 = vst [vmem:[#allocation27_spill] sm:$0xff] %v10256_v24 }
 0x45a   :  { %3991 = vmatpush2.bf16.msra.mxu0 %v10073_v15  ;;  %v10258_v15 = vld [vmem:[#allocation10 + $0x4] ss:$24 sps:$4 sm:$0xff]  }
 0x45b   :  { %3992 = vmatprep.subr.bf16.mxu0 %v10076_v34  ;;  %v10262_v34 = vld [vmem:[#allocation10] ss:$24 sps:$4 sm:$0xff]   ;;  %4694 = vmatprep.subr.bf16.mxu1 %v10258_v15 }
 0x45c   :  { %4695 = vmatpush1.bf16.msra.mxu1 %v10262_v34 }
 0x45d   :  { %4696 = vmatprep.subr.bf16.mxu1 %v10273_v2 }
 0x45e   :  { %3993 = vmatpush2.bf16.msra.mxu0 %v10081_v44  ;;  %v10267_v44 = vld [vmem:[#allocation10 + $0xc] ss:$24 sps:$4 sm:$0xff]  }
 0x45f   :  { %4721 = vmatprep.subr.bf16.mxu0 %v10183_v10  ;;  %11243 = vst [vmem:[#allocation28_spill] sm:$0xff] %v10267_v44 }
 0x460   :  { %4697 = vmatpush2.bf16.msra.mxu1 %v10275_v47 }
 0x461   :  { %3995 = vmatmul.mubr.bf16.vlgmr.msra.gmra.mxu0 %v3396_v54  ;;  %4698 = vmatprep.subr.bf16.mxu1 %v10285_v31  ;;  %v10321_v54 = vld [vmem:[#allocation10 + $0x21c] ss:$24 sps:$4 sm:$0xff]  }
 0x462   :  { %4722 = vmatpush1.bf16.msra.mxu0 %v10181_v52  ;;  %11253 = vst [vmem:[#allocation38_spill] sm:$0xff] %v10321_v54 }
 0x463   :  { %4723 = vmatprep.subr.bf16.mxu0 %v10188_v36 }
 0x464   :  { %4699 = vmatpush2.bf16.msra.mxu1 %v10287_v7 }
 0x465   :  { %4700 = vmatprep.subr.bf16.mxu1 %v10297_v42 }
 0x466   :  { %4724 = vmatpush1.bf16.msra.mxu0 %v10196_v6 }
 0x467   :  { %4725 = vmatprep.subr.bf16.mxu0 %v10201_v4 }
 0x468   :  { %4701 = vmatpush2.bf16.msra.mxu1 %v10299_v20 }
 0x469   :  { %4702 = vmatprep.subr.bf16.mxu1 %v10306_v38 }
 0x46a   :  { %4726 = vmatpush1.bf16.msra.mxu0 %v10208_v12 }
 0x46b   :  { %4727 = vmatprep.subr.bf16.mxu0 %v10213_v29 }
 0x46c   :  { %4703 = vmatpush2.bf16.msra.mxu1 %v10310_v40 }
 0x46d   :  { %4704 = vmatprep.subr.bf16.mxu1 %v10318_v1 }
 0x46e   :  { %4728 = vmatpush1.bf16.msra.mxu0 %v10220_v53 }
 0x46f   :  { %4729 = vmatprep.subr.bf16.mxu0 %v10225_v11 }
 0x470   :  { %4705 = vmatpush2.bf16.msra.mxu1 %v10324_v62 }
 0x472   :  { %4730 = vmatpush1.bf16.msra.mxu0 %v10232_v3 }
 0x473   :  { %4731 = vmatprep.subr.bf16.mxu0 %v10237_v16 }
 0x476   :  { %4732 = vmatpush1.bf16.msra.mxu0 %v10244_v27 }
 0x477   :  { %4733 = vmatprep.subr.bf16.mxu0 %v10249_v50 }
 0x47a   :  { %4734 = vmatpush1.bf16.msra.mxu0 %v10256_v24 }
 0x47b   :  { %4735 = vmatprep.subr.bf16.mxu0 %v10267_v44 }
 0x47e   :  { %4736 = vmatpush1.bf16.msra.mxu0 %v10269_v17  ;;  %v10364_v17 = vld [vmem:[#allocation10 + $0x188] ss:$24 sps:$4 sm:$0xff]  }
 0x47f   :  { %4737 = vmatprep.subr.bf16.mxu0 %v10277_v63  ;;  %v10357_v63 = vld [vmem:[#allocation10 + $0x18c] ss:$24 sps:$4 sm:$0xff]   ;;  %11260 = vst [vmem:[#allocation45_spill] sm:$0xff] %v10364_v17 }
 0x480   :  { %11259 = vst [vmem:[#allocation44_spill] sm:$0xff] %v10357_v63 }
 0x482   :  { %4738 = vmatpush2.bf16.msra.mxu0 %v10280_v55  ;;  %v10352_v55 = vld [vmem:[#allocation10 + $0x1b8] ss:$24 sps:$4 sm:$0xff]  }
 0x483   :  { %4739 = vmatprep.subr.bf16.mxu0 %v10289_v60  ;;  %v10345_v60 = vld [vmem:[#allocation10 + $0x1bc] ss:$24 sps:$4 sm:$0xff]   ;;  %11258 = vst [vmem:[#allocation43_spill] sm:$0xff] %v10352_v55 }
 0x484   :  { %11257 = vst [vmem:[#allocation42_spill] sm:$0xff] %v10345_v60 }
 0x486   :  { %4740 = vmatpush2.bf16.msra.mxu0 %v10292_v59  ;;  %v10340_v59 = vld [vmem:[#allocation10 + $0x1e8] ss:$24 sps:$4 sm:$0xff]  }
 0x487   :  { %4741 = vmatprep.subr.bf16.mxu0 %v10301_v33  ;;  %v10333_v33 = vld [vmem:[#allocation10 + $0x1ec] ss:$24 sps:$4 sm:$0xff]   ;;  %11256 = vst [vmem:[#allocation41_spill] sm:$0xff] %v10340_v59 }
 0x488   :  { %11255 = vst [vmem:[#allocation40_spill] sm:$0xff] %v10333_v33 }
 0x48a   :  { %4742 = vmatpush2.bf16.msra.mxu0 %v10304_v14  ;;  %v10330_v14 = vld [vmem:[#allocation10 + $0x1e4] ss:$24 sps:$4 sm:$0xff]  }
 0x48b   :  { %4743 = vmatprep.subr.bf16.mxu0 %v10312_v58  ;;  %v10336_v58 = vld [vmem:[#allocation10 + $0x1e0] ss:$24 sps:$4 sm:$0xff]   ;;  %4706 = vmatprep.subr.bf16.mxu1 %v10330_v14 }
 0x48c   :  { %4707 = vmatpush2.bf16.msra.mxu1 %v10336_v58 }
 0x48e   :  { %4744 = vmatpush2.bf16.msra.mxu0 %v10316_v48  ;;  %v10342_v48 = vld [vmem:[#allocation10 + $0x1b4] ss:$24 sps:$4 sm:$0xff]  }
 0x48f   :  { %4745 = vmatprep.subr.bf16.mxu0 %v10321_v54  ;;  %v10348_v54 = vld [vmem:[#allocation10 + $0x1b0] ss:$24 sps:$4 sm:$0xff]   ;;  %4708 = vmatprep.subr.bf16.mxu1 %v10342_v48 }
 0x490   :  { %4709 = vmatpush2.bf16.msra.mxu1 %v10348_v54 }
 0x492   :  { %4746 = vmatpush2.bf16.msra.mxu0 %v10328_v30  ;;  %v10354_v30 = vld [vmem:[#allocation10 + $0x184] ss:$24 sps:$4 sm:$0xff]  }
 0x493   :  { %4747 = vmatprep.subr.bf16.mxu0 %v10333_v33  ;;  %v10360_v33 = vld [vmem:[#allocation10 + $0x180] ss:$24 sps:$4 sm:$0xff]   ;;  %4710 = vmatprep.subr.bf16.mxu1 %v10354_v30 }
 0x494   :  { %4711 = vmatpush2.bf16.msra.mxu1 %v10360_v33 }
 0x496   :  { %4748 = vmatpush2.bf16.msra.mxu0 %v10340_v59  ;;  %v10369_v59 = vld [vmem:[#allocation10 + $0x164] ss:$24 sps:$4 sm:$0xff]  }
 0x497   :  { %4749 = vmatprep.subr.bf16.mxu0 %v10345_v60  ;;  %4762 = vmatprep.subr.bf16.mxu1 %v10369_v59 }
 0x49a   :  { %4750 = vmatpush2.bf16.msra.mxu0 %v10352_v55 }
 0x49b   :  { %4751 = vmatprep.subr.bf16.mxu0 %v10357_v63 }
 0x49e   :  { %4752 = vmatpush2.bf16.msra.mxu0 %v10364_v17 }
 0x49f   :  { %5474 = vmatprep.subr.bf16.mxu0 %v10179_v39 }
 0x4e1   :  { %v3914_v60 = vpop.f32.mrf.mxu0  ;;  %v3955_v44 = vpop.f32.mrf.mxu1 }
 0x4e2   :  { %v4005_v11 = vrot.slane %v3914_v60, 5  ;;  %v4025_v39 = vrot.slane %v3955_v44, 5 }
 0x4e3   :  { %v3916_v24 = vpop.f32.mrf.mxu0  ;;  %v3957_v55 = vpop.f32.mrf.mxu1 }
 0x4e4   :  { %v4006_v63 = vrot.slane %v3916_v24, 5  ;;  %v4009_v53 = vadd.f32 %v4005_v11, %v9665_v43  ;;  %v4026_v4 = vrot.slane %v3957_v55, 5  ;;  %v4029_v6 = vadd.f32 %v4025_v39, %v9675_v61 }
 0x4e5   :  { %v3918_v50 = vpop.f32.mrf.mxu0  ;;  %v3959_v27 = vpop.f32.mrf.mxu1 }
 0x4e6   :  { %v4010_v17 = vadd.f32 %v4006_v63, %v9667_v49  ;;  %v7836_v29 = vmul.f32 -1.442695, %v4009_v53  ;;  %v4030_v36 = vadd.f32 %v4026_v4, %v9677_v5  ;;  %v7838_v50 = vmul.f32 -1.442695, %v4029_v6 }
 0x4e7   :  { %v3919_v16 = vpop.f32.mrf.mxu0  ;;  %v3960_v3 = vpop.f32.mrf.mxu1 }
 0x4e8   :  { %v7837_v12 = vmul.f32 -1.442695, %v4010_v17  ;;  %9038 = vpow2.f32 %v7836_v29  ;;  %v7839_v27 = vmul.f32 -1.442695, %v4030_v36 }
 0x4ea   :  { %9040 = vpow2.f32 %v7837_v12 }
 0x4eb   :  { %9042 = vpow2.f32 %v7838_v50 }
 0x4ec   :  { %9044 = vpow2.f32 %v7839_v27 }
 0x4f5   :  { %v9039_v16 = vpop.eup %9038 }
 0x4f6   :  { %v4017_v24 = vadd.f32 1.0, %v9039_v16 }
 0x4f7   :  { %v9041_v3 = vpop.eup %9040 }
 0x4f8   :  { %v4018_v11 = vadd.f32 1.0, %v9041_v3  ;;  %9046 = vrcp.f32 %v4017_v24  ;;  %v9043_v53 = vpop.eup %9042 }
 0x4f9   :  { %v9045_v17 = vpop.eup %9044  ;;  %v4037_v44 = vadd.f32 1.0, %v9043_v53 }
 0x4fa   :  { %9048 = vrcp.f32 %v4018_v11  ;;  %v4038_v55 = vadd.f32 1.0, %v9045_v17 }
 0x4fb   :  { %9050 = vrcp.f32 %v4037_v44  ;;  %v4062_v44 = vrot.slane %v10134_v32, 7 }
 0x4fc   :  { %9052 = vrcp.f32 %v4038_v55 }
 0x505   :  { %v9047_v36 = vpop.eup %9046 }
 0x507   :  { %v9049_v27 = vpop.eup %9048 }
 0x508   :  { %v9051_v53 = vpop.eup %9050 }
 0x509   :  { %v9053_v17 = vpop.eup %9052 }
 0x521   :  { %v3996_v29 = vpop.f32.mrf.mxu0 }
 0x522   :  { %v4043_v12 = vadd.f32 %v3996_v29, %v9685_v23  ;;  %v4057_v29 = vsub.f32 1.0, %v9051_v53 }
 0x523   :  { %v3998_v63 = vpop.f32.mrf.mxu0 }
 0x524   :  { %v4047_v60 = vrot.slane %v4043_v12, 5  ;;  %v4044_v6 = vadd.f32 %v3998_v63, %v9689_v26  ;;  %v4061_v12 = vrot.slane %v10132_v22, 7 }
 0x525   :  { %v4000_v4 = vpop.f32.mrf.mxu0 }
 0x526   :  { %v4051_v39 = vmul.f32 %v9047_v36, %v4047_v60  ;;  %v4048_v50 = vrot.slane %v4044_v6, 5  ;;  %v4058_v4 = vsub.f32 1.0, %v9053_v17  ;;  %v4065_v6 = vmul.f32 %v9051_v53, %v4061_v12 }
 0x527   :  { %v4001_v16 = vpop.f32.mrf.mxu0 }
 0x528   :  { %v4053_v3 = vadd.f32 %v4051_v39, %v9696_v41  ;;  %v4052_v24 = vmul.f32 %v9049_v27, %v4048_v50  ;;  %v4066_v16 = vmul.f32 %v9053_v17, %v4062_v44  ;;  %v10404_v44 = vld [vmem:[#allocation10 + $0x130] ss:$24 sps:$4 sm:$0xff]  }
 0x52a   :  { %9054 = vtanh.f32 %v4053_v3  ;;  %v4054_v11 = vadd.f32 %v4052_v24, %v9699_v51 }
 0x52c   :  { %9056 = vtanh.f32 %v4054_v11 }
 0x537   :  { %v9055_v63 = vpop.eup %9054 }
 0x538   :  { %v4059_v60 = vmul.f32 %v9055_v63, %v4057_v29  ;;  %v10394_v29 = vld [vmem:[#allocation10 + $0x160] ss:$24 sps:$4 sm:$0xff]   ;;  %v10398_v63 = vld [vmem:[#allocation10 + $0x134] ss:$24 sps:$4 sm:$0xff]  }
 0x539   :  { %v9057_v36 = vpop.eup %9056 }
 0x53a   :  { %v4060_v55 = vmul.f32 %v9057_v36, %v4058_v4  ;;  %v10383_v39 = vadd.f32 %v4065_v6, %v4059_v60  ;;  %v10407_v6 = vld [vmem:[#allocation10 + $0x104] ss:$24 sps:$4 sm:$0xff]   ;;  %v10414_v36 = vld [vmem:[#allocation10 + $0x100] ss:$24 sps:$4 sm:$0xff]  }
 0x53c   :  { %v10385_v50 = vadd.f32 %v4066_v16, %v4060_v55  ;;  %v4092_v27 = vpack.c.bf16 %v10383_v39, %v10383_v39  ;;  %v10417_v55 = vld [vmem:[#allocation10 + $0xd4] ss:$24 sps:$4 sm:$0xff]   ;;  %v10430_v16 = vld [vmem:[#allocation10 + $0xa0] ss:$24 sps:$4 sm:$0xff]  }
 0x53e   :  { %v4093_v3 = vpack.c.bf16 %v10385_v50, %v10385_v50  ;;  %v4071_v22 = vcombine.low %v10383_v39, %v10385_v50  ;;  %v4191_v24 = vshrl.u32 %v4092_v27, 16  ;;  %v11270_v27 = vld [vmem:[#allocation25_spill] sm:$0xff] }
 0x540   :  { %v4195_v32 = vshrl.u32 %v4093_v3, 16  ;;  %v4078_v11 = vrot.slane %v4071_v22, %v9707_v46  ;;  %v10396_v12 = vrot.slane %v4191_v24, 1  ;;  %v11272_v3 = vld [vmem:[#allocation27_spill] sm:$0xff]  ;;  %v11273_v22 = vld [vmem:[#allocation28_spill] sm:$0xff]  ;;  %v11274_v24 = vld [vmem:[#allocation29_spill] sm:$0xff] }
 0x542   :  { %v4197_v53 = vrot.slane %v4195_v32, 1  ;;  %v4079_v17 = vcombine.high %v4078_v11, %v4078_v11  ;;  %v11275_v32 = vld [vmem:[#allocation30_spill] sm:$0xff]  ;;  %v11276_v11 = vld [vmem:[#allocation31_spill] sm:$0xff] }
 0x544   :  { %4712 = vmatprep.mubr.bf16.mxu1 %v4197_v53  ;;  %4753 = vmatprep.mubr.bf16.mxu0 %v4197_v53  ;;  %v4086_v4 = vrot.slane %v4079_v17, %v9707_v46  ;;  %v11278_v17 = vld [vmem:[#allocation33_spill] sm:$0xff] }
 0x545   :  { %4713 = vmatmul.mubr.bf16.vlgmr.msra.gmra.mxu1 %v10396_v12  ;;  %4754 = vmatmul.mubr.bf16.vlgmr.msra.gmra.mxu0 %v10396_v12 }
 0x546   :  { %4763 = vmatpush1.bf16.msra.mxu1 %v10394_v29  ;;  %4794 = vmatprep.mubr.bf16.mxu1 %v4197_v53  ;;  %v4087_v60 = vcombine.high %v4086_v4, %v4086_v4  ;;  %v11277_v53 = vld [vmem:[#allocation32_spill] sm:$0xff]  ;;  %v11280_v4 = vld [vmem:[#allocation35_spill] sm:$0xff] }
 0x547   :  { %4764 = vmatprep.subr.bf16.mxu1 %v10398_v63  ;;  %5475 = vmatpush1.bf16.msra.mxu0 %v10177_v35  ;;  %v10422_v35 = vld [vmem:[#allocation10 + $0xd0] ss:$24 sps:$4 sm:$0xff]  }
 0x548   :  { %5476 = vmatprep.subr.bf16.mxu0 %v10185_v13  ;;  %4090 = vst.msk [vmem:[#allocation11 + $0x3] ss:$8 sm:$0x3] %vm9390_vm0, %v4087_v60  ;;  %v10425_v13 = vld [vmem:[#allocation10 + $0xa4] ss:$24 sps:$4 sm:$0xff]  }
 0x549   :  { %v11281_v60 = vld [vmem:[#allocation37_spill] sm:$0xff] }
 0x54a   :  { %4765 = vmatpush1.bf16.msra.mxu1 %v10404_v44 }
 0x54b   :  { %4766 = vmatprep.subr.bf16.mxu1 %v10407_v6  ;;  %5477 = vmatpush1.bf16.msra.mxu0 %v10192_v56  ;;  %v10433_v56 = vld [vmem:[#allocation10 + $0x74] ss:$24 sps:$4 sm:$0xff]  }
 0x54c   :  { %5478 = vmatprep.subr.bf16.mxu0 %v10198_v0  ;;  %v10438_v0 = vld [vmem:[#allocation10 + $0x70] ss:$24 sps:$4 sm:$0xff]  }
 0x54e   :  { %4767 = vmatpush1.bf16.msra.mxu1 %v10414_v36 }
 0x54f   :  { %4768 = vmatprep.subr.bf16.mxu1 %v10417_v55  ;;  %5479 = vmatpush1.bf16.msra.mxu0 %v10204_v8  ;;  %v10441_v8 = vld [vmem:[#allocation10 + $0x44] ss:$24 sps:$4 sm:$0xff]  }
 0x550   :  { %5480 = vmatprep.subr.bf16.mxu0 %v10210_v18  ;;  %v10446_v18 = vld [vmem:[#allocation10 + $0x40] ss:$24 sps:$4 sm:$0xff]  }
 0x552   :  { %4769 = vmatpush1.bf16.msra.mxu1 %v10422_v35 }
 0x553   :  { %4770 = vmatprep.subr.bf16.mxu1 %v10425_v13  ;;  %5481 = vmatpush1.bf16.msra.mxu0 %v10216_v37  ;;  %v10449_v37 = vld [vmem:[#allocation10 + $0x14] ss:$24 sps:$4 sm:$0xff]  }
 0x554   :  { %5482 = vmatprep.subr.bf16.mxu0 %v10222_v57  ;;  %v10454_v57 = vld [vmem:[#allocation10 + $0x10] ss:$24 sps:$4 sm:$0xff]  }
 0x556   :  { %4771 = vmatpush1.bf16.msra.mxu1 %v10430_v16 }
 0x557   :  { %4772 = vmatprep.subr.bf16.mxu1 %v10433_v56  ;;  %5483 = vmatpush1.bf16.msra.mxu0 %v10228_v21  ;;  %v10457_v21 = vld [vmem:[#allocation10 + $0x2e4] ss:$24 sps:$4 sm:$0xff]  }
 0x558   :  { %5484 = vmatprep.subr.bf16.mxu0 %v10234_v9  ;;  %v10462_v9 = vld [vmem:[#allocation10 + $0x2e0] ss:$24 sps:$4 sm:$0xff]  }
 0x55a   :  { %4773 = vmatpush1.bf16.msra.mxu1 %v10438_v0 }
 0x55b   :  { %4774 = vmatprep.subr.bf16.mxu1 %v10441_v8  ;;  %5485 = vmatpush1.bf16.msra.mxu0 %v10240_v19  ;;  %v10465_v19 = vld [vmem:[#allocation10 + $0x2b4] ss:$24 sps:$4 sm:$0xff]  }
 0x55c   :  { %5486 = vmatprep.subr.bf16.mxu0 %v10246_v25  ;;  %v10470_v25 = vld [vmem:[#allocation10 + $0x2b0] ss:$24 sps:$4 sm:$0xff]  }
 0x55e   :  { %4775 = vmatpush1.bf16.msra.mxu1 %v10446_v18 }
 0x55f   :  { %4776 = vmatprep.subr.bf16.mxu1 %v10449_v37  ;;  %5487 = vmatpush1.bf16.msra.mxu0 %v10252_v28  ;;  %v10473_v28 = vld [vmem:[#allocation10 + $0x284] ss:$24 sps:$4 sm:$0xff]  }
 0x560   :  { %5488 = vmatprep.subr.bf16.mxu0 %v10258_v15  ;;  %v10478_v15 = vld [vmem:[#allocation10 + $0x280] ss:$24 sps:$4 sm:$0xff]  }
 0x562   :  { %4777 = vmatpush1.bf16.msra.mxu1 %v10454_v57 }
 0x563   :  { %4778 = vmatprep.subr.bf16.mxu1 %v10457_v21  ;;  %5489 = vmatpush1.bf16.msra.mxu0 %v10262_v34  ;;  %v10481_v34 = vld [vmem:[#allocation10 + $0x254] ss:$24 sps:$4 sm:$0xff]  }
 0x564   :  { %5490 = vmatprep.subr.bf16.mxu0 %v10273_v2  ;;  %v10486_v2 = vld [vmem:[#allocation10 + $0x250] ss:$24 sps:$4 sm:$0xff]  }
 0x566   :  { %4779 = vmatpush2.bf16.msra.mxu1 %v10462_v9 }
 0x567   :  { %4780 = vmatprep.subr.bf16.mxu1 %v10465_v19  ;;  %5491 = vmatpush2.bf16.msra.mxu0 %v10275_v47  ;;  %v10489_v47 = vld [vmem:[#allocation10 + $0x224] ss:$24 sps:$4 sm:$0xff]  }
 0x568   :  { %5492 = vmatprep.subr.bf16.mxu0 %v10285_v31  ;;  %v10494_v31 = vld [vmem:[#allocation10 + $0x220] ss:$24 sps:$4 sm:$0xff]  }
 0x56a   :  { %4781 = vmatpush2.bf16.msra.mxu1 %v10470_v25 }
 0x56b   :  { %4782 = vmatprep.subr.bf16.mxu1 %v10473_v28  ;;  %5493 = vmatpush2.bf16.msra.mxu0 %v10287_v7  ;;  %v10497_v7 = vld [vmem:[#allocation10 + $0x1f4] ss:$24 sps:$4 sm:$0xff]  }
 0x56c   :  { %5494 = vmatprep.subr.bf16.mxu0 %v10297_v42  ;;  %v10502_v42 = vld [vmem:[#allocation10 + $0x1f0] ss:$24 sps:$4 sm:$0xff]  }
 0x56e   :  { %4783 = vmatpush2.bf16.msra.mxu1 %v10478_v15 }
 0x56f   :  { %4784 = vmatprep.subr.bf16.mxu1 %v10481_v34  ;;  %5495 = vmatpush2.bf16.msra.mxu0 %v10299_v20  ;;  %v10505_v20 = vld [vmem:[#allocation10 + $0x1c4] ss:$24 sps:$4 sm:$0xff]  }
 0x570   :  { %5496 = vmatprep.subr.bf16.mxu0 %v10306_v38  ;;  %v10510_v38 = vld [vmem:[#allocation10 + $0x1c0] ss:$24 sps:$4 sm:$0xff]  }
 0x572   :  { %4785 = vmatpush2.bf16.msra.mxu1 %v10486_v2 }
 0x573   :  { %4786 = vmatprep.subr.bf16.mxu1 %v10489_v47  ;;  %5497 = vmatpush2.bf16.msra.mxu0 %v10310_v40  ;;  %v10513_v40 = vld [vmem:[#allocation10 + $0x194] ss:$24 sps:$4 sm:$0xff]  }
 0x574   :  { %5498 = vmatprep.subr.bf16.mxu0 %v10318_v1  ;;  %v10518_v1 = vld [vmem:[#allocation10 + $0x190] ss:$24 sps:$4 sm:$0xff]  }
 0x576   :  { %4787 = vmatpush2.bf16.msra.mxu1 %v10494_v31 }
 0x577   :  { %4788 = vmatprep.subr.bf16.mxu1 %v10497_v7  ;;  %5499 = vmatpush2.bf16.msra.mxu0 %v10324_v62  ;;  %v11265_v62 = vld [vmem:[#allocation20_spill] sm:$0xff] }
 0x578   :  { %5500 = vmatprep.subr.bf16.mxu0 %v10330_v14  ;;  %v11261_v14 = vld [vmem:[#allocation16_spill] sm:$0xff] }
 0x57a   :  { %4789 = vmatpush2.bf16.msra.mxu1 %v10502_v42 }
 0x57b   :  { %4790 = vmatprep.subr.bf16.mxu1 %v10505_v20  ;;  %5501 = vmatpush2.bf16.msra.mxu0 %v10336_v58  ;;  %v11262_v58 = vld [vmem:[#allocation17_spill] sm:$0xff] }
 0x57c   :  { %5502 = vmatprep.subr.bf16.mxu0 %v10342_v48  ;;  %v11263_v48 = vld [vmem:[#allocation18_spill] sm:$0xff] }
 0x57e   :  { %4791 = vmatpush2.bf16.msra.mxu1 %v10510_v38 }
 0x57f   :  { %4792 = vmatprep.subr.bf16.mxu1 %v10513_v40  ;;  %5503 = vmatpush2.bf16.msra.mxu0 %v10348_v54  ;;  %v11264_v54 = vld [vmem:[#allocation19_spill] sm:$0xff] }
 0x580   :  { %5504 = vmatprep.subr.bf16.mxu0 %v10354_v30  ;;  %v11266_v30 = vld [vmem:[#allocation21_spill] sm:$0xff] }
 0x582   :  { %4793 = vmatpush2.bf16.msra.mxu1 %v10518_v1 }
 0x583   :  { %5515 = vmatprep.subr.bf16.mxu1 %v10183_v10  ;;  %5505 = vmatpush2.bf16.msra.mxu0 %v10360_v33  ;;  %v11267_v10 = vld [vmem:[#allocation22_spill] sm:$0xff]  ;;  %v11268_v33 = vld [vmem:[#allocation23_spill] sm:$0xff] }
 0x584   :  { %5556 = vmatprep.subr.bf16.mxu0 %v10369_v59  ;;  %v11269_v59 = vld [vmem:[#allocation24_spill] sm:$0xff] }
 0x585   :  { %4795 = vmatmul.mubr.bf16.vlgmr.msra.gmra.mxu1 %v10396_v12  ;;  %v11279_v12 = vld [vmem:[#allocation34_spill] sm:$0xff] }
 0x586   :  { %5516 = vmatpush1.bf16.msra.mxu1 %v10181_v52  ;;  %v11271_v52 = vld [vmem:[#allocation26_spill] sm:$0xff] }
 0x587   :  { %5517 = vmatprep.subr.bf16.mxu1 %v11261_v14  ;;  %v11282_v14 = vld [vmem:[#allocation36_spill] sm:$0xff] }
 0x58a   :  { %5518 = vmatpush1.bf16.msra.mxu1 %v11262_v58  ;;  %v11283_v58 = vld [vmem:[#allocation38_spill] sm:$0xff] }
 0x58b   :  { %5519 = vmatprep.subr.bf16.mxu1 %v11263_v48  ;;  %v11284_v48 = vld [vmem:[#allocation39_spill] sm:$0xff] }
 0x58e   :  { %5520 = vmatpush1.bf16.msra.mxu1 %v11264_v54  ;;  %v11285_v54 = vld [vmem:[#allocation40_spill] sm:$0xff] }
 0x58f   :  { %5521 = vmatprep.subr.bf16.mxu1 %v11265_v62  ;;  %v11286_v62 = vld [vmem:[#allocation41_spill] sm:$0xff] }
 0x592   :  { %5522 = vmatpush1.bf16.msra.mxu1 %v11266_v30  ;;  %v11287_v30 = vld [vmem:[#allocation42_spill] sm:$0xff] }
 0x593   :  { %5523 = vmatprep.subr.bf16.mxu1 %v11267_v10  ;;  %v11288_v10 = vld [vmem:[#allocation43_spill] sm:$0xff] }
 0x596   :  { %5524 = vmatpush1.bf16.msra.mxu1 %v11268_v33  ;;  %v11289_v33 = vld [vmem:[#allocation44_spill] sm:$0xff] }
 0x597   :  { %5525 = vmatprep.subr.bf16.mxu1 %v11269_v59  ;;  %v11290_v59 = vld [vmem:[#allocation45_spill] sm:$0xff] }
 0x59a   :  { %5526 = vmatpush1.bf16.msra.mxu1 %v11270_v27 }
 0x59b   :  { %5527 = vmatprep.subr.bf16.mxu1 %v11271_v52 }
 0x59e   :  { %5528 = vmatpush1.bf16.msra.mxu1 %v11272_v3 }
 0x59f   :  { %5529 = vmatprep.subr.bf16.mxu1 %v11273_v22 }
 0x5a2   :  { %5530 = vmatpush1.bf16.msra.mxu1 %v11274_v24 }
 0x5a3   :  { %5531 = vmatprep.subr.bf16.mxu1 %v11275_v32 }
 0x5a6   :  { %5532 = vmatpush2.bf16.msra.mxu1 %v11276_v11 }
 0x5a7   :  { %5533 = vmatprep.subr.bf16.mxu1 %v11277_v53 }
 0x5aa   :  { %5534 = vmatpush2.bf16.msra.mxu1 %v11278_v17 }
 0x5ab   :  { %5535 = vmatprep.subr.bf16.mxu1 %v11279_v12 }
 0x5ae   :  { %5536 = vmatpush2.bf16.msra.mxu1 %v11280_v4 }
 0x5af   :  { %5537 = vmatprep.subr.bf16.mxu1 %v11281_v60 }
 0x5b2   :  { %5538 = vmatpush2.bf16.msra.mxu1 %v11282_v14 }
 0x5b3   :  { %5539 = vmatprep.subr.bf16.mxu1 %v11283_v58 }
 0x5b6   :  { %5540 = vmatpush2.bf16.msra.mxu1 %v11284_v48 }
 0x5b7   :  { %5541 = vmatprep.subr.bf16.mxu1 %v11285_v54 }
 0x5ba   :  { %5542 = vmatpush2.bf16.msra.mxu1 %v11286_v62 }
 0x5bb   :  { %5543 = vmatprep.subr.bf16.mxu1 %v11287_v30 }
 0x5be   :  { %5544 = vmatpush2.bf16.msra.mxu1 %v11288_v10 }
 0x5bf   :  { %5545 = vmatprep.subr.bf16.mxu1 %v11289_v33 }
 0x5c2   :  { %5546 = vmatpush2.bf16.msra.mxu1 %v11290_v59 }
 0x605   :  { %v4714_v27 = vpop.f32.mrf.mxu1  ;;  %v4755_v52 = vpop.f32.mrf.mxu0 }
 0x606   :  { %v4805_v17 = vrot.slane %v4714_v27, 4  ;;  %v4825_v48 = vrot.slane %v4755_v52, 4 }
 0x607   :  { %v4716_v3 = vpop.f32.mrf.mxu1  ;;  %v4757_v22 = vpop.f32.mrf.mxu0 }
 0x608   :  { %v4806_v12 = vrot.slane %v4716_v3, 4  ;;  %v4809_v4 = vadd.f32 %v4805_v17, %v9665_v43  ;;  %v4826_v54 = vrot.slane %v4757_v22, 4  ;;  %v4829_v62 = vadd.f32 %v4825_v48, %v9675_v61 }
 0x609   :  { %v4718_v24 = vpop.f32.mrf.mxu1  ;;  %v4759_v32 = vpop.f32.mrf.mxu0 }
 0x60a   :  { %v4810_v60 = vadd.f32 %v4806_v12, %v9667_v49  ;;  %v7936_v14 = vmul.f32 -1.442695, %v4809_v4  ;;  %v4830_v30 = vadd.f32 %v4826_v54, %v9677_v5  ;;  %v7938_v10 = vmul.f32 -1.442695, %v4829_v62 }
 0x60b   :  { %v4719_v11 = vpop.f32.mrf.mxu1  ;;  %v4760_v53 = vpop.f32.mrf.mxu0 }
 0x60c   :  { %v7937_v58 = vmul.f32 -1.442695, %v4810_v60  ;;  %9058 = vpow2.f32 %v7936_v14  ;;  %v7939_v33 = vmul.f32 -1.442695, %v4830_v30 }
 0x60e   :  { %9060 = vpow2.f32 %v7937_v58 }
 0x60f   :  { %9062 = vpow2.f32 %v7938_v10 }
 0x610   :  { %9064 = vpow2.f32 %v7939_v33 }
 0x619   :  { %v9059_v59 = vpop.eup %9058 }
 0x61a   :  { %v4817_v3 = vadd.f32 1.0, %v9059_v59 }
 0x61b   :  { %v9061_v27 = vpop.eup %9060 }
 0x61c   :  { %v4818_v24 = vadd.f32 1.0, %v9061_v27  ;;  %9066 = vrcp.f32 %v4817_v3  ;;  %v9063_v32 = vpop.eup %9062 }
 0x61d   :  { %v9065_v11 = vpop.eup %9064  ;;  %v4837_v52 = vadd.f32 1.0, %v9063_v32  ;;  %v4861_v32 = vrot.slane %v10383_v39, 7 }
 0x61e   :  { %9068 = vrcp.f32 %v4818_v24  ;;  %v4838_v12 = vadd.f32 1.0, %v9065_v11 }
 0x61f   :  { %9070 = vrcp.f32 %v4837_v52  ;;  %v4862_v52 = vrot.slane %v10385_v50, 7 }
 0x620   :  { %9072 = vrcp.f32 %v4838_v12 }
 0x629   :  { %v9067_v14 = vpop.eup %9066 }
 0x62b   :  { %v9069_v62 = vpop.eup %9068 }
 0x62c   :  { %v9071_v27 = vpop.eup %9070 }
 0x62d   :  { %v9073_v3 = vpop.eup %9072  ;;  %v4857_v24 = vsub.f32 1.0, %v9071_v27 }
 0x645   :  { %v4796_v53 = vpop.f32.mrf.mxu1 }
 0x646   :  { %v4843_v22 = vadd.f32 %v4796_v53, %v9685_v23  ;;  %v4858_v53 = vsub.f32 1.0, %v9073_v3 }
 0x647   :  { %v4798_v17 = vpop.f32.mrf.mxu1 }
 0x648   :  { %v4847_v4 = vrot.slane %v4843_v22, 4  ;;  %v4844_v60 = vadd.f32 %v4798_v17, %v9689_v26  ;;  %v4865_v17 = vmul.f32 %v9071_v27, %v4861_v32  ;;  %v10712_v27 = vld [vmem:[#allocation10 + $0x2d0] ss:$24 sps:$4 sm:$0xff]   ;;  %v10722_v32 = vld [vmem:[#allocation10 + $0x2a4] ss:$24 sps:$4 sm:$0xff]  }
 0x649   :  { %v4800_v58 = vpop.f32.mrf.mxu1 }
 0x64a   :  { %v4851_v48 = vmul.f32 %v9067_v14, %v4847_v4  ;;  %v4848_v54 = vrot.slane %v4844_v60, 4  ;;  %v4866_v60 = vmul.f32 %v9073_v3, %v4862_v52  ;;  %v10714_v3 = vld [vmem:[#allocation10 + $0x2dc] ss:$24 sps:$4 sm:$0xff]   ;;  %v10729_v52 = vld [vmem:[#allocation10 + $0x2a8] ss:$24 sps:$4 sm:$0xff]  }
 0x64b   :  { %v4801_v30 = vpop.f32.mrf.mxu1  ;;  %11305 = vst [vmem:[#allocation30_spill] sm:$0xff] %v10714_v3  ;;  %11308 = vst [vmem:[#allocation33_spill] sm:$0xff] %v10729_v52 }
 0x64c   :  { %v4853_v10 = vadd.f32 %v4851_v48, %v9696_v41  ;;  %v4852_v33 = vmul.f32 %v9069_v62, %v4848_v54 }
 0x64e   :  { %9074 = vtanh.f32 %v4853_v10  ;;  %v4854_v59 = vadd.f32 %v4852_v33, %v9699_v51  ;;  %v10706_v33 = vld [vmem:[#allocation10 + $0x8] ss:$24 sps:$4 sm:$0xff]  }
 0x64f   :  { %11304 = vst [vmem:[#allocation29_spill] sm:$0xff] %v10706_v33 }
 0x650   :  { %9076 = vtanh.f32 %v4854_v59  ;;  %v10710_v59 = vld [vmem:[#allocation10 + $0x2d4] ss:$24 sps:$4 sm:$0xff]  }
 0x65b   :  { %v9075_v11 = vpop.eup %9074 }
 0x65c   :  { %v4859_v22 = vmul.f32 %v9075_v11, %v4857_v24  ;;  %v10717_v24 = vld [vmem:[#allocation10 + $0x2d8] ss:$24 sps:$4 sm:$0xff]  }
 0x65d   :  { %v9077_v4 = vpop.eup %9076  ;;  %11306 = vst [vmem:[#allocation31_spill] sm:$0xff] %v10717_v24  ;;  %v10724_v11 = vld [vmem:[#allocation10 + $0x2a0] ss:$24 sps:$4 sm:$0xff]  }
 0x65e   :  { %v4860_v12 = vmul.f32 %v9077_v4, %v4858_v53  ;;  %v10569_v14 = vadd.f32 %v4865_v17, %v4859_v22  ;;  %v10726_v53 = vld [vmem:[#allocation10 + $0x2ac] ss:$24 sps:$4 sm:$0xff]   ;;  %v10736_v17 = vld [vmem:[#allocation10 + $0x270] ss:$24 sps:$4 sm:$0xff]   ;;  %v10738_v4 = vld [vmem:[#allocation10 + $0x27c] ss:$24 sps:$4 sm:$0xff]  }
 0x65f   :  { %11307 = vst [vmem:[#allocation32_spill] sm:$0xff] %v10726_v53  ;;  %v10734_v22 = vld [vmem:[#allocation10 + $0x274] ss:$24 sps:$4 sm:$0xff]   ;;  %11309 = vst [vmem:[#allocation34_spill] sm:$0xff] %v10738_v4 }
 0x660   :  { %v10571_v58 = vadd.f32 %v4866_v60, %v4860_v12  ;;  %v4890_v48 = vpack.c.bf16 %v10569_v14, %v10569_v14  ;;  %v10741_v12 = vld [vmem:[#allocation10 + $0x278] ss:$24 sps:$4 sm:$0xff]   ;;  %v10743_v60 = vld [vmem:[#allocation10 + $0x244] ss:$24 sps:$4 sm:$0xff]  }
 0x661   :  { %11310 = vst [vmem:[#allocation35_spill] sm:$0xff] %v10741_v12 }
 0x662   :  { %v4891_v54 = vpack.c.bf16 %v10571_v58, %v10571_v58  ;;  %v4871_v39 = vcombine.high %v10569_v14, %v10571_v58  ;;  %v4990_v30 = vrot.slane %v4890_v48, 2  ;;  %v10747_v48 = vld [vmem:[#allocation10 + $0x240] ss:$24 sps:$4 sm:$0xff]  }
 0x664   :  { %v4991_v62 = vrot.slane %v4891_v54, 2  ;;  %v4878_v50 = vrot.slane %v4871_v39, %v9707_v46  ;;  %v10749_v54 = vld [vmem:[#allocation10 + $0x24c] ss:$24 sps:$4 sm:$0xff]   ;;  %v10753_v39 = vld [vmem:[#allocation10 + $0x248] ss:$24 sps:$4 sm:$0xff]  }
 0x665   :  { %11311 = vst [vmem:[#allocation37_spill] sm:$0xff] %v10749_v54  ;;  %11312 = vst [vmem:[#allocation36_spill] sm:$0xff] %v10753_v39 }
 0x666   :  { %5506 = vmatprep.mubr.bf16.mxu0 %v4991_v62  ;;  %5547 = vmatprep.mubr.bf16.mxu1 %v4991_v62  ;;  %v4885_v10 = vrot.slane %v4878_v50, %v9707_v46  ;;  %v10758_v50 = vld [vmem:[#allocation10 + $0x21c] ss:$24 sps:$4 sm:$0xff]  }
 0x667   :  { %5507 = vmatmul.mubr.bf16.vlgmr.msra.gmra.mxu0 %v4990_v30  ;;  %5548 = vmatmul.mubr.bf16.vlgmr.msra.gmra.mxu1 %v4990_v30  ;;  %11313 = vst [vmem:[#allocation38_spill] sm:$0xff] %v10758_v50 }
 0x668   :  { %4888 = vst.msk [vmem:[#allocation11 + $0x4] ss:$8 sm:$0x3] %vm9390_vm0, %v4885_v10  ;;  %5557 = vmatpush1.bf16.msra.mxu0 %v10394_v29  ;;  %5588 = vmatprep.mubr.bf16.mxu0 %v4991_v62  ;;  %v10614_v29 = vld [vmem:[#allocation10 + $0x150] ss:$24 sps:$4 sm:$0xff]  }
 0x669   :  { %5558 = vmatprep.subr.bf16.mxu0 %v10398_v63  ;;  %v10616_v63 = vld [vmem:[#allocation10 + $0x154] ss:$24 sps:$4 sm:$0xff]   ;;  %v10765_v10 = vld [vmem:[#allocation10 + $0x218] ss:$24 sps:$4 sm:$0xff]  }
 0x66a   :  { %6273 = vmatprep.subr.bf16.mxu1 %v10616_v63  ;;  %v10755_v62 = vld [vmem:[#allocation10 + $0x214] ss:$24 sps:$4 sm:$0xff]   ;;  %11314 = vst [vmem:[#allocation39_spill] sm:$0xff] %v10765_v10 }
 0x66b   :  { %6274 = vmatpush1.bf16.msra.mxu1 %v10614_v29 }
 0x66c   :  { %5559 = vmatpush1.bf16.msra.mxu0 %v10404_v44  ;;  %v10618_v44 = vld [vmem:[#allocation10 + $0x158] ss:$24 sps:$4 sm:$0xff]  }
 0x66d   :  { %5560 = vmatprep.subr.bf16.mxu0 %v10407_v6  ;;  %v10620_v6 = vld [vmem:[#allocation10 + $0x15c] ss:$24 sps:$4 sm:$0xff]  }
 0x670   :  { %5561 = vmatpush1.bf16.msra.mxu0 %v10414_v36  ;;  %v10622_v36 = vld [vmem:[#allocation10 + $0x124] ss:$24 sps:$4 sm:$0xff]  }
 0x671   :  { %5562 = vmatprep.subr.bf16.mxu0 %v10417_v55  ;;  %v10625_v55 = vld [vmem:[#allocation10 + $0x12c] ss:$24 sps:$4 sm:$0xff]   ;;  %6275 = vmatprep.subr.bf16.mxu1 %v10622_v36 }
 0x672   :  { %11291 = vst [vmem:[#allocation16_spill] sm:$0xff] %v10625_v55 }
 0x674   :  { %5563 = vmatpush1.bf16.msra.mxu0 %v10422_v35  ;;  %v10629_v35 = vld [vmem:[#allocation10 + $0x120] ss:$24 sps:$4 sm:$0xff]  }
 0x675   :  { %5564 = vmatprep.subr.bf16.mxu0 %v10425_v13  ;;  %v10633_v13 = vld [vmem:[#allocation10 + $0x128] ss:$24 sps:$4 sm:$0xff]   ;;  %6276 = vmatpush1.bf16.msra.mxu1 %v10629_v35 }
 0x676   :  { %11292 = vst [vmem:[#allocation17_spill] sm:$0xff] %v10633_v13 }
 0x678   :  { %5565 = vmatpush1.bf16.msra.mxu0 %v10430_v16  ;;  %v10635_v16 = vld [vmem:[#allocation10 + $0xf4] ss:$24 sps:$4 sm:$0xff]  }
 0x679   :  { %5566 = vmatprep.subr.bf16.mxu0 %v10433_v56  ;;  %v10638_v56 = vld [vmem:[#allocation10 + $0xfc] ss:$24 sps:$4 sm:$0xff]   ;;  %6277 = vmatprep.subr.bf16.mxu1 %v10635_v16 }
 0x67a   :  { %11293 = vst [vmem:[#allocation18_spill] sm:$0xff] %v10638_v56 }
 0x67c   :  { %5567 = vmatpush1.bf16.msra.mxu0 %v10438_v0  ;;  %v10641_v0 = vld [vmem:[#allocation10 + $0xf0] ss:$24 sps:$4 sm:$0xff]  }
 0x67d   :  { %5568 = vmatprep.subr.bf16.mxu0 %v10441_v8  ;;  %v10645_v8 = vld [vmem:[#allocation10 + $0xf8] ss:$24 sps:$4 sm:$0xff]   ;;  %6278 = vmatpush1.bf16.msra.mxu1 %v10641_v0 }
 0x67e   :  { %11294 = vst [vmem:[#allocation19_spill] sm:$0xff] %v10645_v8 }
 0x680   :  { %5569 = vmatpush1.bf16.msra.mxu0 %v10446_v18  ;;  %v10647_v18 = vld [vmem:[#allocation10 + $0xc4] ss:$24 sps:$4 sm:$0xff]  }
 0x681   :  { %5570 = vmatprep.subr.bf16.mxu0 %v10449_v37  ;;  %v10650_v37 = vld [vmem:[#allocation10 + $0xcc] ss:$24 sps:$4 sm:$0xff]   ;;  %6279 = vmatprep.subr.bf16.mxu1 %v10647_v18 }
 0x682   :  { %11295 = vst [vmem:[#allocation20_spill] sm:$0xff] %v10650_v37 }
 0x684   :  { %5571 = vmatpush1.bf16.msra.mxu0 %v10454_v57  ;;  %v10653_v57 = vld [vmem:[#allocation10 + $0xc0] ss:$24 sps:$4 sm:$0xff]  }
 0x685   :  { %5572 = vmatprep.subr.bf16.mxu0 %v10457_v21  ;;  %v10657_v21 = vld [vmem:[#allocation10 + $0xc8] ss:$24 sps:$4 sm:$0xff]   ;;  %6280 = vmatpush1.bf16.msra.mxu1 %v10653_v57 }
 0x686   :  { %11296 = vst [vmem:[#allocation21_spill] sm:$0xff] %v10657_v21 }
 0x688   :  { %5573 = vmatpush2.bf16.msra.mxu0 %v10462_v9  ;;  %v10659_v9 = vld [vmem:[#allocation10 + $0x94] ss:$24 sps:$4 sm:$0xff]  }
 0x689   :  { %5574 = vmatprep.subr.bf16.mxu0 %v10465_v19  ;;  %v10662_v19 = vld [vmem:[#allocation10 + $0x9c] ss:$24 sps:$4 sm:$0xff]   ;;  %6281 = vmatprep.subr.bf16.mxu1 %v10659_v9 }
 0x68a   :  { %11297 = vst [vmem:[#allocation22_spill] sm:$0xff] %v10662_v19 }
 0x68c   :  { %5575 = vmatpush2.bf16.msra.mxu0 %v10470_v25  ;;  %v10665_v25 = vld [vmem:[#allocation10 + $0x90] ss:$24 sps:$4 sm:$0xff]  }
 0x68d   :  { %5576 = vmatprep.subr.bf16.mxu0 %v10473_v28  ;;  %v10669_v28 = vld [vmem:[#allocation10 + $0x98] ss:$24 sps:$4 sm:$0xff]   ;;  %6282 = vmatpush1.bf16.msra.mxu1 %v10665_v25 }
 0x68e   :  { %11298 = vst [vmem:[#allocation23_spill] sm:$0xff] %v10669_v28 }
 0x690   :  { %5577 = vmatpush2.bf16.msra.mxu0 %v10478_v15  ;;  %v10671_v15 = vld [vmem:[#allocation10 + $0x64] ss:$24 sps:$4 sm:$0xff]  }
 0x691   :  { %5578 = vmatprep.subr.bf16.mxu0 %v10481_v34  ;;  %v10674_v34 = vld [vmem:[#allocation10 + $0x6c] ss:$24 sps:$4 sm:$0xff]   ;;  %6283 = vmatprep.subr.bf16.mxu1 %v10671_v15 }
 0x692   :  { %11299 = vst [vmem:[#allocation24_spill] sm:$0xff] %v10674_v34 }
 0x694   :  { %5579 = vmatpush2.bf16.msra.mxu0 %v10486_v2  ;;  %v10677_v2 = vld [vmem:[#allocation10 + $0x60] ss:$24 sps:$4 sm:$0xff]  }
 0x695   :  { %5580 = vmatprep.subr.bf16.mxu0 %v10489_v47  ;;  %v10681_v47 = vld [vmem:[#allocation10 + $0x68] ss:$24 sps:$4 sm:$0xff]   ;;  %6284 = vmatpush1.bf16.msra.mxu1 %v10677_v2 }
 0x696   :  { %11300 = vst [vmem:[#allocation25_spill] sm:$0xff] %v10681_v47 }
 0x698   :  { %5581 = vmatpush2.bf16.msra.mxu0 %v10494_v31  ;;  %v10683_v31 = vld [vmem:[#allocation10 + $0x34] ss:$24 sps:$4 sm:$0xff]  }
 0x699   :  { %5582 = vmatprep.subr.bf16.mxu0 %v10497_v7  ;;  %v10686_v7 = vld [vmem:[#allocation10 + $0x3c] ss:$24 sps:$4 sm:$0xff]   ;;  %6285 = vmatprep.subr.bf16.mxu1 %v10683_v31 }
 0x69a   :  { %11301 = vst [vmem:[#allocation26_spill] sm:$0xff] %v10686_v7 }
 0x69c   :  { %5583 = vmatpush2.bf16.msra.mxu0 %v10502_v42  ;;  %v10689_v42 = vld [vmem:[#allocation10 + $0x30] ss:$24 sps:$4 sm:$0xff]  }
 0x69d   :  { %5584 = vmatprep.subr.bf16.mxu0 %v10505_v20  ;;  %v10693_v20 = vld [vmem:[#allocation10 + $0x38] ss:$24 sps:$4 sm:$0xff]   ;;  %6286 = vmatpush1.bf16.msra.mxu1 %v10689_v42 }
 0x69e   :  { %11302 = vst [vmem:[#allocation27_spill] sm:$0xff] %v10693_v20 }
 0x6a0   :  { %5585 = vmatpush2.bf16.msra.mxu0 %v10510_v38  ;;  %v10695_v38 = vld [vmem:[#allocation10 + $0x4] ss:$24 sps:$4 sm:$0xff]  }
 0x6a1   :  { %5586 = vmatprep.subr.bf16.mxu0 %v10513_v40  ;;  %v10699_v40 = vld [vmem:[#allocation10] ss:$24 sps:$4 sm:$0xff]   ;;  %6287 = vmatprep.subr.bf16.mxu1 %v10695_v38 }
 0x6a2   :  { %6288 = vmatpush1.bf16.msra.mxu1 %v10699_v40 }
 0x6a3   :  { %6289 = vmatprep.subr.bf16.mxu1 %v10710_v59 }
 0x6a4   :  { %5587 = vmatpush2.bf16.msra.mxu0 %v10518_v1  ;;  %v10704_v1 = vld [vmem:[#allocation10 + $0xc] ss:$24 sps:$4 sm:$0xff]  }
 0x6a5   :  { %6314 = vmatprep.subr.bf16.mxu0 %v10620_v6  ;;  %11303 = vst [vmem:[#allocation28_spill] sm:$0xff] %v10704_v1 }
 0x6a6   :  { %6290 = vmatpush2.bf16.msra.mxu1 %v10712_v27 }
 0x6a7   :  { %5589 = vmatmul.mubr.bf16.vlgmr.msra.gmra.mxu0 %v4990_v30  ;;  %6291 = vmatprep.subr.bf16.mxu1 %v10722_v32  ;;  %v10761_v30 = vld [vmem:[#allocation10 + $0x210] ss:$24 sps:$4 sm:$0xff]  }
 0x6a8   :  { %6315 = vmatpush1.bf16.msra.mxu0 %v10618_v44 }
 0x6a9   :  { %6316 = vmatprep.subr.bf16.mxu0 %v10625_v55 }
 0x6aa   :  { %6292 = vmatpush2.bf16.msra.mxu1 %v10724_v11 }
 0x6ab   :  { %6293 = vmatprep.subr.bf16.mxu1 %v10734_v22 }
 0x6ac   :  { %6317 = vmatpush1.bf16.msra.mxu0 %v10633_v13 }
 0x6ad   :  { %6318 = vmatprep.subr.bf16.mxu0 %v10638_v56 }
 0x6ae   :  { %6294 = vmatpush2.bf16.msra.mxu1 %v10736_v17 }
 0x6af   :  { %6295 = vmatprep.subr.bf16.mxu1 %v10743_v60 }
 0x6b0   :  { %6319 = vmatpush1.bf16.msra.mxu0 %v10645_v8 }
 0x6b1   :  { %6320 = vmatprep.subr.bf16.mxu0 %v10650_v37 }
 0x6b2   :  { %6296 = vmatpush2.bf16.msra.mxu1 %v10747_v48 }
 0x6b3   :  { %6297 = vmatprep.subr.bf16.mxu1 %v10755_v62 }
 0x6b4   :  { %6321 = vmatpush1.bf16.msra.mxu0 %v10657_v21 }
 0x6b5   :  { %6322 = vmatprep.subr.bf16.mxu0 %v10662_v19 }
 0x6b6   :  { %6298 = vmatpush2.bf16.msra.mxu1 %v10761_v30 }
 0x6b8   :  { %6323 = vmatpush1.bf16.msra.mxu0 %v10669_v28 }
 0x6b9   :  { %6324 = vmatprep.subr.bf16.mxu0 %v10674_v34 }
 0x6bc   :  { %6325 = vmatpush1.bf16.msra.mxu0 %v10681_v47 }
 0x6bd   :  { %6326 = vmatprep.subr.bf16.mxu0 %v10686_v7 }
 0x6c0   :  { %6327 = vmatpush1.bf16.msra.mxu0 %v10693_v20 }
 0x6c1   :  { %6328 = vmatprep.subr.bf16.mxu0 %v10704_v1 }
 0x6c4   :  { %6329 = vmatpush1.bf16.msra.mxu0 %v10706_v33  ;;  %v10801_v33 = vld [vmem:[#allocation10 + $0x188] ss:$24 sps:$4 sm:$0xff]  }
 0x6c5   :  { %6330 = vmatprep.subr.bf16.mxu0 %v10714_v3  ;;  %v10794_v3 = vld [vmem:[#allocation10 + $0x18c] ss:$24 sps:$4 sm:$0xff]   ;;  %11320 = vst [vmem:[#allocation45_spill] sm:$0xff] %v10801_v33 }
 0x6c6   :  { %11319 = vst [vmem:[#allocation44_spill] sm:$0xff] %v10794_v3 }
 0x6c8   :  { %6331 = vmatpush2.bf16.msra.mxu0 %v10717_v24  ;;  %v10789_v24 = vld [vmem:[#allocation10 + $0x1b8] ss:$24 sps:$4 sm:$0xff]  }
 0x6c9   :  { %6332 = vmatprep.subr.bf16.mxu0 %v10726_v53  ;;  %v10782_v53 = vld [vmem:[#allocation10 + $0x1bc] ss:$24 sps:$4 sm:$0xff]   ;;  %11318 = vst [vmem:[#allocation43_spill] sm:$0xff] %v10789_v24 }
 0x6ca   :  { %11317 = vst [vmem:[#allocation42_spill] sm:$0xff] %v10782_v53 }
 0x6cc   :  { %6333 = vmatpush2.bf16.msra.mxu0 %v10729_v52  ;;  %v10777_v52 = vld [vmem:[#allocation10 + $0x1e8] ss:$24 sps:$4 sm:$0xff]  }
 0x6cd   :  { %6334 = vmatprep.subr.bf16.mxu0 %v10738_v4  ;;  %v10770_v4 = vld [vmem:[#allocation10 + $0x1ec] ss:$24 sps:$4 sm:$0xff]   ;;  %11316 = vst [vmem:[#allocation41_spill] sm:$0xff] %v10777_v52 }
 0x6ce   :  { %11315 = vst [vmem:[#allocation40_spill] sm:$0xff] %v10770_v4 }
 0x6d0   :  { %6335 = vmatpush2.bf16.msra.mxu0 %v10741_v12  ;;  %v10767_v12 = vld [vmem:[#allocation10 + $0x1e4] ss:$24 sps:$4 sm:$0xff]  }
 0x6d1   :  { %6336 = vmatprep.subr.bf16.mxu0 %v10749_v54  ;;  %v10773_v54 = vld [vmem:[#allocation10 + $0x1e0] ss:$24 sps:$4 sm:$0xff]   ;;  %6299 = vmatprep.subr.bf16.mxu1 %v10767_v12 }
 0x6d2   :  { %6300 = vmatpush2.bf16.msra.mxu1 %v10773_v54 }
 0x6d4   :  { %6337 = vmatpush2.bf16.msra.mxu0 %v10753_v39  ;;  %v10779_v39 = vld [vmem:[#allocation10 + $0x1b4] ss:$24 sps:$4 sm:$0xff]  }
 0x6d5   :  { %6338 = vmatprep.subr.bf16.mxu0 %v10758_v50  ;;  %v10785_v50 = vld [vmem:[#allocation10 + $0x1b0] ss:$24 sps:$4 sm:$0xff]   ;;  %6301 = vmatprep.subr.bf16.mxu1 %v10779_v39 }
 0x6d6   :  { %6302 = vmatpush2.bf16.msra.mxu1 %v10785_v50 }
 0x6d8   :  { %6339 = vmatpush2.bf16.msra.mxu0 %v10765_v10  ;;  %v10791_v10 = vld [vmem:[#allocation10 + $0x184] ss:$24 sps:$4 sm:$0xff]  }
 0x6d9   :  { %6340 = vmatprep.subr.bf16.mxu0 %v10770_v4  ;;  %v10797_v4 = vld [vmem:[#allocation10 + $0x180] ss:$24 sps:$4 sm:$0xff]   ;;  %6303 = vmatprep.subr.bf16.mxu1 %v10791_v10 }
 0x6da   :  { %6304 = vmatpush2.bf16.msra.mxu1 %v10797_v4 }
 0x6dc   :  { %6341 = vmatpush2.bf16.msra.mxu0 %v10777_v52  ;;  %v10806_v52 = vld [vmem:[#allocation10 + $0x164] ss:$24 sps:$4 sm:$0xff]  }
 0x6dd   :  { %6342 = vmatprep.subr.bf16.mxu0 %v10782_v53  ;;  %6355 = vmatprep.subr.bf16.mxu1 %v10806_v52 }
 0x6e0   :  { %6343 = vmatpush2.bf16.msra.mxu0 %v10789_v24 }
 0x6e1   :  { %6344 = vmatprep.subr.bf16.mxu0 %v10794_v3 }
 0x6e4   :  { %6345 = vmatpush2.bf16.msra.mxu0 %v10801_v33 }
 0x6e5   :  { %7068 = vmatprep.subr.bf16.mxu0 %v10616_v63 }
 0x727   :  { %v5508_v53 = vpop.f32.mrf.mxu0  ;;  %v5549_v1 = vpop.f32.mrf.mxu1 }
 0x728   :  { %v5599_v19 = vrot.slane %v5508_v53, 3  ;;  %v5619_v63 = vrot.slane %v5549_v1, 3 }
 0x729   :  { %v5510_v20 = vpop.f32.mrf.mxu0  ;;  %v5551_v24 = vpop.f32.mrf.mxu1 }
 0x72a   :  { %v5600_v3 = vrot.slane %v5510_v20, 3  ;;  %v5603_v21 = vadd.f32 %v5599_v19, %v9665_v43  ;;  %v5620_v56 = vrot.slane %v5551_v24, 3  ;;  %v5623_v13 = vadd.f32 %v5619_v63, %v9675_v61 }
 0x72b   :  { %v5512_v7 = vpop.f32.mrf.mxu0  ;;  %v5553_v47 = vpop.f32.mrf.mxu1 }
 0x72c   :  { %v5604_v33 = vadd.f32 %v5600_v3, %v9667_v49  ;;  %v8036_v37 = vmul.f32 -1.442695, %v5603_v21  ;;  %v5624_v55 = vadd.f32 %v5620_v56, %v9677_v5  ;;  %v8038_v7 = vmul.f32 -1.442695, %v5623_v13 }
 0x72d   :  { %v5513_v34 = vpop.f32.mrf.mxu0  ;;  %v5554_v28 = vpop.f32.mrf.mxu1 }
 0x72e   :  { %v8037_v8 = vmul.f32 -1.442695, %v5604_v33  ;;  %9078 = vpow2.f32 %v8036_v37  ;;  %v8039_v47 = vmul.f32 -1.442695, %v5624_v55 }
 0x730   :  { %9080 = vpow2.f32 %v8037_v8 }
 0x731   :  { %9082 = vpow2.f32 %v8038_v7 }
 0x732   :  { %9084 = vpow2.f32 %v8039_v47 }
 0x73b   :  { %v9079_v34 = vpop.eup %9078 }
 0x73c   :  { %v5611_v20 = vadd.f32 1.0, %v9079_v34 }
 0x73d   :  { %v9081_v28 = vpop.eup %9080 }
 0x73e   :  { %v5612_v19 = vadd.f32 1.0, %v9081_v28  ;;  %9086 = vrcp.f32 %v5611_v20  ;;  %v9083_v21 = vpop.eup %9082 }
 0x73f   :  { %v9085_v33 = vpop.eup %9084  ;;  %v5631_v1 = vadd.f32 1.0, %v9083_v21 }
 0x740   :  { %9088 = vrcp.f32 %v5612_v19  ;;  %v5632_v24 = vadd.f32 1.0, %v9085_v33 }
 0x741   :  { %9090 = vrcp.f32 %v5631_v1  ;;  %v5656_v1 = vrot.slane %v10571_v58, 7 }
 0x742   :  { %9092 = vrcp.f32 %v5632_v24 }
 0x74b   :  { %v9087_v55 = vpop.eup %9086 }
 0x74d   :  { %v9089_v47 = vpop.eup %9088 }
 0x74e   :  { %v9091_v21 = vpop.eup %9090 }
 0x74f   :  { %v9093_v33 = vpop.eup %9092 }
 0x767   :  { %v5590_v37 = vpop.f32.mrf.mxu0 }
 0x768   :  { %v5637_v8 = vadd.f32 %v5590_v37, %v9685_v23  ;;  %v5651_v37 = vsub.f32 1.0, %v9091_v21 }
 0x769   :  { %v5592_v3 = vpop.f32.mrf.mxu0 }
 0x76a   :  { %v5641_v53 = vrot.slane %v5637_v8, 3  ;;  %v5638_v13 = vadd.f32 %v5592_v3, %v9689_v26  ;;  %v5655_v8 = vrot.slane %v10569_v14, 7 }
 0x76b   :  { %v5594_v56 = vpop.f32.mrf.mxu0 }
 0x76c   :  { %v5645_v63 = vmul.f32 %v9087_v55, %v5641_v53  ;;  %v5642_v7 = vrot.slane %v5638_v13, 3  ;;  %v5652_v56 = vsub.f32 1.0, %v9093_v33  ;;  %v5659_v13 = vmul.f32 %v9091_v21, %v5655_v8 }
 0x76d   :  { %v5595_v34 = vpop.f32.mrf.mxu0 }
 0x76e   :  { %v5647_v28 = vadd.f32 %v5645_v63, %v9696_v41  ;;  %v5646_v20 = vmul.f32 %v9089_v47, %v5642_v7  ;;  %v5660_v34 = vmul.f32 %v9093_v33, %v5656_v1  ;;  %v10841_v1 = vld [vmem:[#allocation10 + $0x130] ss:$24 sps:$4 sm:$0xff]  }
 0x770   :  { %9094 = vtanh.f32 %v5647_v28  ;;  %v5648_v19 = vadd.f32 %v5646_v20, %v9699_v51 }
 0x772   :  { %9096 = vtanh.f32 %v5648_v19 }
 0x77d   :  { %v9095_v3 = vpop.eup %9094 }
 0x77e   :  { %v5653_v53 = vmul.f32 %v9095_v3, %v5651_v37  ;;  %v10831_v37 = vld [vmem:[#allocation10 + $0x160] ss:$24 sps:$4 sm:$0xff]   ;;  %v10835_v3 = vld [vmem:[#allocation10 + $0x134] ss:$24 sps:$4 sm:$0xff]  }
 0x77f   :  { %v9097_v55 = vpop.eup %9096 }
 0x780   :  { %v5654_v24 = vmul.f32 %v9097_v55, %v5652_v56  ;;  %v10820_v63 = vadd.f32 %v5659_v13, %v5653_v53  ;;  %v10846_v53 = vld [vmem:[#allocation10 + $0x104] ss:$24 sps:$4 sm:$0xff]   ;;  %v10851_v13 = vld [vmem:[#allocation10 + $0x100] ss:$24 sps:$4 sm:$0xff]   ;;  %v10854_v55 = vld [vmem:[#allocation10 + $0xd4] ss:$24 sps:$4 sm:$0xff]  }
 0x782   :  { %v10822_v7 = vadd.f32 %v5660_v34, %v5654_v24  ;;  %v5685_v47 = vpack.c.bf16 %v10820_v63, %v10820_v63  ;;  %v10859_v24 = vld [vmem:[#allocation10 + $0xd0] ss:$24 sps:$4 sm:$0xff]   ;;  %v11330_v34 = vld [vmem:[#allocation25_spill] sm:$0xff] }
 0x784   :  { %v5686_v28 = vpack.c.bf16 %v10822_v7, %v10822_v7  ;;  %v5665_v14 = vcombine.high %v10820_v63, %v10822_v7  ;;  %v5784_v20 = vshrl.u32 %v5685_v47, 16  ;;  %v11332_v47 = vld [vmem:[#allocation27_spill] sm:$0xff] }
 0x786   :  { %v5788_v58 = vshrl.u32 %v5686_v28, 16  ;;  %v5672_v19 = vrot.slane %v5665_v14, %v9707_v46  ;;  %v10833_v8 = vrot.slane %v5784_v20, 2  ;;  %v11333_v28 = vld [vmem:[#allocation28_spill] sm:$0xff]  ;;  %v11334_v14 = vld [vmem:[#allocation29_spill] sm:$0xff]  ;;  %v11335_v20 = vld [vmem:[#allocation30_spill] sm:$0xff] }
 0x788   :  { %v5790_v21 = vrot.slane %v5788_v58, 2  ;;  %v5673_v33 = vcombine.high %v5672_v19, %v5672_v19  ;;  %v11336_v58 = vld [vmem:[#allocation31_spill] sm:$0xff]  ;;  %v11337_v19 = vld [vmem:[#allocation32_spill] sm:$0xff] }
 0x78a   :  { %6305 = vmatprep.mubr.bf16.mxu1 %v5790_v21  ;;  %6346 = vmatprep.mubr.bf16.mxu0 %v5790_v21  ;;  %v5680_v56 = vrot.slane %v5673_v33, %v9707_v46  ;;  %v11339_v33 = vld [vmem:[#allocation34_spill] sm:$0xff] }
 0x78b   :  { %6306 = vmatmul.mubr.bf16.vlgmr.msra.gmra.mxu1 %v10833_v8  ;;  %6347 = vmatmul.mubr.bf16.vlgmr.msra.gmra.mxu0 %v10833_v8 }
 0x78c   :  { %6356 = vmatpush1.bf16.msra.mxu1 %v10831_v37  ;;  %6387 = vmatprep.mubr.bf16.mxu1 %v5790_v21  ;;  %5683 = vst.msk [vmem:[#allocation11 + $0x5] ss:$8 sm:$0x3] %vm9390_vm0, %v5680_v56  ;;  %v11338_v21 = vld [vmem:[#allocation33_spill] sm:$0xff] }
 0x78d   :  { %6357 = vmatprep.subr.bf16.mxu1 %v10835_v3  ;;  %7069 = vmatpush1.bf16.msra.mxu0 %v10614_v29  ;;  %v10862_v29 = vld [vmem:[#allocation10 + $0xa4] ss:$24 sps:$4 sm:$0xff]  }
 0x78e   :  { %7070 = vmatprep.subr.bf16.mxu0 %v10622_v36  ;;  %v10867_v36 = vld [vmem:[#allocation10 + $0xa0] ss:$24 sps:$4 sm:$0xff]  }
 0x78f   :  { %v11341_v56 = vld [vmem:[#allocation37_spill] sm:$0xff] }
 0x790   :  { %6358 = vmatpush1.bf16.msra.mxu1 %v10841_v1 }
 0x791   :  { %6359 = vmatprep.subr.bf16.mxu1 %v10846_v53  ;;  %7071 = vmatpush1.bf16.msra.mxu0 %v10629_v35  ;;  %v10870_v35 = vld [vmem:[#allocation10 + $0x74] ss:$24 sps:$4 sm:$0xff]  }
 0x792   :  { %7072 = vmatprep.subr.bf16.mxu0 %v10635_v16  ;;  %v10875_v16 = vld [vmem:[#allocation10 + $0x70] ss:$24 sps:$4 sm:$0xff]  }
 0x794   :  { %6360 = vmatpush1.bf16.msra.mxu1 %v10851_v13 }
 0x795   :  { %6361 = vmatprep.subr.bf16.mxu1 %v10854_v55  ;;  %7073 = vmatpush1.bf16.msra.mxu0 %v10641_v0  ;;  %v10878_v0 = vld [vmem:[#allocation10 + $0x44] ss:$24 sps:$4 sm:$0xff]  }
 0x796   :  { %7074 = vmatprep.subr.bf16.mxu0 %v10647_v18  ;;  %v10883_v18 = vld [vmem:[#allocation10 + $0x40] ss:$24 sps:$4 sm:$0xff]  }
 0x798   :  { %6362 = vmatpush1.bf16.msra.mxu1 %v10859_v24 }
 0x799   :  { %6363 = vmatprep.subr.bf16.mxu1 %v10862_v29  ;;  %7075 = vmatpush1.bf16.msra.mxu0 %v10653_v57  ;;  %v10886_v57 = vld [vmem:[#allocation10 + $0x14] ss:$24 sps:$4 sm:$0xff]  }
 0x79a   :  { %7076 = vmatprep.subr.bf16.mxu0 %v10659_v9  ;;  %v10891_v9 = vld [vmem:[#allocation10 + $0x10] ss:$24 sps:$4 sm:$0xff]  }
 0x79c   :  { %6364 = vmatpush1.bf16.msra.mxu1 %v10867_v36 }
 0x79d   :  { %6365 = vmatprep.subr.bf16.mxu1 %v10870_v35  ;;  %7077 = vmatpush1.bf16.msra.mxu0 %v10665_v25  ;;  %v10894_v25 = vld [vmem:[#allocation10 + $0x2e4] ss:$24 sps:$4 sm:$0xff]  }
 0x79e   :  { %7078 = vmatprep.subr.bf16.mxu0 %v10671_v15  ;;  %v10899_v15 = vld [vmem:[#allocation10 + $0x2e0] ss:$24 sps:$4 sm:$0xff]  }
 0x7a0   :  { %6366 = vmatpush1.bf16.msra.mxu1 %v10875_v16 }
 0x7a1   :  { %6367 = vmatprep.subr.bf16.mxu1 %v10878_v0  ;;  %7079 = vmatpush1.bf16.msra.mxu0 %v10677_v2  ;;  %v10902_v2 = vld [vmem:[#allocation10 + $0x2b4] ss:$24 sps:$4 sm:$0xff]  }
 0x7a2   :  { %7080 = vmatprep.subr.bf16.mxu0 %v10683_v31  ;;  %v10907_v31 = vld [vmem:[#allocation10 + $0x2b0] ss:$24 sps:$4 sm:$0xff]  }
 0x7a4   :  { %6368 = vmatpush1.bf16.msra.mxu1 %v10883_v18 }
 0x7a5   :  { %6369 = vmatprep.subr.bf16.mxu1 %v10886_v57  ;;  %7081 = vmatpush1.bf16.msra.mxu0 %v10689_v42  ;;  %v10910_v42 = vld [vmem:[#allocation10 + $0x284] ss:$24 sps:$4 sm:$0xff]  }
 0x7a6   :  { %7082 = vmatprep.subr.bf16.mxu0 %v10695_v38  ;;  %v10915_v38 = vld [vmem:[#allocation10 + $0x280] ss:$24 sps:$4 sm:$0xff]  }
 0x7a8   :  { %6370 = vmatpush1.bf16.msra.mxu1 %v10891_v9 }
 0x7a9   :  { %6371 = vmatprep.subr.bf16.mxu1 %v10894_v25  ;;  %7083 = vmatpush1.bf16.msra.mxu0 %v10699_v40  ;;  %v10918_v40 = vld [vmem:[#allocation10 + $0x254] ss:$24 sps:$4 sm:$0xff]  }
 0x7aa   :  { %7084 = vmatprep.subr.bf16.mxu0 %v10710_v59  ;;  %v10923_v59 = vld [vmem:[#allocation10 + $0x250] ss:$24 sps:$4 sm:$0xff]  }
 0x7ac   :  { %6372 = vmatpush2.bf16.msra.mxu1 %v10899_v15 }
 0x7ad   :  { %6373 = vmatprep.subr.bf16.mxu1 %v10902_v2  ;;  %7085 = vmatpush2.bf16.msra.mxu0 %v10712_v27  ;;  %v10926_v27 = vld [vmem:[#allocation10 + $0x224] ss:$24 sps:$4 sm:$0xff]  }
 0x7ae   :  { %7086 = vmatprep.subr.bf16.mxu0 %v10722_v32  ;;  %v10931_v32 = vld [vmem:[#allocation10 + $0x220] ss:$24 sps:$4 sm:$0xff]  }
 0x7b0   :  { %6374 = vmatpush2.bf16.msra.mxu1 %v10907_v31 }
 0x7b1   :  { %6375 = vmatprep.subr.bf16.mxu1 %v10910_v42  ;;  %7087 = vmatpush2.bf16.msra.mxu0 %v10724_v11  ;;  %v10934_v11 = vld [vmem:[#allocation10 + $0x1f4] ss:$24 sps:$4 sm:$0xff]  }
 0x7b2   :  { %7088 = vmatprep.subr.bf16.mxu0 %v10734_v22  ;;  %v10939_v22 = vld [vmem:[#allocation10 + $0x1f0] ss:$24 sps:$4 sm:$0xff]  }
 0x7b4   :  { %6376 = vmatpush2.bf16.msra.mxu1 %v10915_v38 }
 0x7b5   :  { %6377 = vmatprep.subr.bf16.mxu1 %v10918_v40  ;;  %7089 = vmatpush2.bf16.msra.mxu0 %v10736_v17  ;;  %v10942_v17 = vld [vmem:[#allocation10 + $0x1c4] ss:$24 sps:$4 sm:$0xff]  }
 0x7b6   :  { %7090 = vmatprep.subr.bf16.mxu0 %v10743_v60  ;;  %v10947_v60 = vld [vmem:[#allocation10 + $0x1c0] ss:$24 sps:$4 sm:$0xff]  }
 0x7b8   :  { %6378 = vmatpush2.bf16.msra.mxu1 %v10923_v59 }
 0x7b9   :  { %6379 = vmatprep.subr.bf16.mxu1 %v10926_v27  ;;  %7091 = vmatpush2.bf16.msra.mxu0 %v10747_v48  ;;  %v10950_v48 = vld [vmem:[#allocation10 + $0x194] ss:$24 sps:$4 sm:$0xff]  }
 0x7ba   :  { %7092 = vmatprep.subr.bf16.mxu0 %v10755_v62  ;;  %v10955_v62 = vld [vmem:[#allocation10 + $0x190] ss:$24 sps:$4 sm:$0xff]  }
 0x7bc   :  { %6380 = vmatpush2.bf16.msra.mxu1 %v10931_v32 }
 0x7bd   :  { %6381 = vmatprep.subr.bf16.mxu1 %v10934_v11  ;;  %7093 = vmatpush2.bf16.msra.mxu0 %v10761_v30  ;;  %v11325_v30 = vld [vmem:[#allocation20_spill] sm:$0xff] }
 0x7be   :  { %7094 = vmatprep.subr.bf16.mxu0 %v10767_v12  ;;  %v11321_v12 = vld [vmem:[#allocation16_spill] sm:$0xff] }
 0x7c0   :  { %6382 = vmatpush2.bf16.msra.mxu1 %v10939_v22 }
 0x7c1   :  { %6383 = vmatprep.subr.bf16.mxu1 %v10942_v17  ;;  %7095 = vmatpush2.bf16.msra.mxu0 %v10773_v54  ;;  %v11322_v54 = vld [vmem:[#allocation17_spill] sm:$0xff] }
 0x7c2   :  { %7096 = vmatprep.subr.bf16.mxu0 %v10779_v39  ;;  %v11323_v39 = vld [vmem:[#allocation18_spill] sm:$0xff] }
 0x7c4   :  { %6384 = vmatpush2.bf16.msra.mxu1 %v10947_v60 }
 0x7c5   :  { %6385 = vmatprep.subr.bf16.mxu1 %v10950_v48  ;;  %7097 = vmatpush2.bf16.msra.mxu0 %v10785_v50  ;;  %v11324_v50 = vld [vmem:[#allocation19_spill] sm:$0xff] }
 0x7c6   :  { %7098 = vmatprep.subr.bf16.mxu0 %v10791_v10  ;;  %v11326_v10 = vld [vmem:[#allocation21_spill] sm:$0xff] }
 0x7c8   :  { %6386 = vmatpush2.bf16.msra.mxu1 %v10955_v62 }
 0x7c9   :  { %7109 = vmatprep.subr.bf16.mxu1 %v10620_v6  ;;  %7099 = vmatpush2.bf16.msra.mxu0 %v10797_v4  ;;  %v11327_v6 = vld [vmem:[#allocation22_spill] sm:$0xff]  ;;  %v11328_v4 = vld [vmem:[#allocation23_spill] sm:$0xff] }
 0x7ca   :  { %7150 = vmatprep.subr.bf16.mxu0 %v10806_v52  ;;  %v11329_v52 = vld [vmem:[#allocation24_spill] sm:$0xff] }
 0x7cb   :  { %6388 = vmatmul.mubr.bf16.vlgmr.msra.gmra.mxu1 %v10833_v8  ;;  %v11340_v8 = vld [vmem:[#allocation35_spill] sm:$0xff] }
 0x7cc   :  { %7110 = vmatpush1.bf16.msra.mxu1 %v10618_v44  ;;  %v11331_v44 = vld [vmem:[#allocation26_spill] sm:$0xff] }
 0x7cd   :  { %7111 = vmatprep.subr.bf16.mxu1 %v11321_v12  ;;  %v11342_v12 = vld [vmem:[#allocation36_spill] sm:$0xff] }
 0x7d0   :  { %7112 = vmatpush1.bf16.msra.mxu1 %v11322_v54  ;;  %v11343_v54 = vld [vmem:[#allocation38_spill] sm:$0xff] }
 0x7d1   :  { %7113 = vmatprep.subr.bf16.mxu1 %v11323_v39  ;;  %v11344_v39 = vld [vmem:[#allocation39_spill] sm:$0xff] }
 0x7d4   :  { %7114 = vmatpush1.bf16.msra.mxu1 %v11324_v50  ;;  %v11345_v50 = vld [vmem:[#allocation40_spill] sm:$0xff] }
 0x7d5   :  { %7115 = vmatprep.subr.bf16.mxu1 %v11325_v30  ;;  %v11346_v30 = vld [vmem:[#allocation41_spill] sm:$0xff] }
 0x7d8   :  { %7116 = vmatpush1.bf16.msra.mxu1 %v11326_v10  ;;  %v11347_v10 = vld [vmem:[#allocation42_spill] sm:$0xff] }
 0x7d9   :  { %7117 = vmatprep.subr.bf16.mxu1 %v11327_v6  ;;  %v11348_v6 = vld [vmem:[#allocation43_spill] sm:$0xff] }
 0x7dc   :  { %7118 = vmatpush1.bf16.msra.mxu1 %v11328_v4  ;;  %v11349_v4 = vld [vmem:[#allocation44_spill] sm:$0xff] }
 0x7dd   :  { %7119 = vmatprep.subr.bf16.mxu1 %v11329_v52  ;;  %v11350_v52 = vld [vmem:[#allocation45_spill] sm:$0xff] }
 0x7e0   :  { %7120 = vmatpush1.bf16.msra.mxu1 %v11330_v34 }
 0x7e1   :  { %7121 = vmatprep.subr.bf16.mxu1 %v11331_v44 }
 0x7e4   :  { %7122 = vmatpush1.bf16.msra.mxu1 %v11332_v47 }
 0x7e5   :  { %7123 = vmatprep.subr.bf16.mxu1 %v11333_v28 }
 0x7e8   :  { %7124 = vmatpush1.bf16.msra.mxu1 %v11334_v14 }
 0x7e9   :  { %7125 = vmatprep.subr.bf16.mxu1 %v11335_v20 }
 0x7ec   :  { %7126 = vmatpush2.bf16.msra.mxu1 %v11336_v58 }
 0x7ed   :  { %7127 = vmatprep.subr.bf16.mxu1 %v11337_v19 }
 0x7f0   :  { %7128 = vmatpush2.bf16.msra.mxu1 %v11338_v21 }
 0x7f1   :  { %7129 = vmatprep.subr.bf16.mxu1 %v11339_v33 }
 0x7f4   :  { %7130 = vmatpush2.bf16.msra.mxu1 %v11340_v8 }
 0x7f5   :  { %7131 = vmatprep.subr.bf16.mxu1 %v11341_v56 }
 0x7f8   :  { %7132 = vmatpush2.bf16.msra.mxu1 %v11342_v12 }
 0x7f9   :  { %7133 = vmatprep.subr.bf16.mxu1 %v11343_v54 }
 0x7fc   :  { %7134 = vmatpush2.bf16.msra.mxu1 %v11344_v39 }
 0x7fd   :  { %7135 = vmatprep.subr.bf16.mxu1 %v11345_v50 }
 0x800   :  { %7136 = vmatpush2.bf16.msra.mxu1 %v11346_v30 }
 0x801   :  { %7137 = vmatprep.subr.bf16.mxu1 %v11347_v10 }
 0x804   :  { %7138 = vmatpush2.bf16.msra.mxu1 %v11348_v6 }
 0x805   :  { %7139 = vmatprep.subr.bf16.mxu1 %v11349_v4 }
 0x808   :  { %7140 = vmatpush2.bf16.msra.mxu1 %v11350_v52 }
 0x84b   :  { %v6307_v34 = vpop.f32.mrf.mxu1  ;;  %v6348_v44 = vpop.f32.mrf.mxu0 }
 0x84c   :  { %v6398_v21 = vrot.slane %v6307_v34, 2  ;;  %v6418_v39 = vrot.slane %v6348_v44, 2 }
 0x84d   :  { %v6309_v47 = vpop.f32.mrf.mxu1  ;;  %v6350_v28 = vpop.f32.mrf.mxu0 }
 0x84e   :  { %v6399_v33 = vrot.slane %v6309_v47, 2  ;;  %v6402_v8 = vadd.f32 %v6398_v21, %v9665_v43  ;;  %v6419_v50 = vrot.slane %v6350_v28, 2  ;;  %v6422_v30 = vadd.f32 %v6418_v39, %v9675_v61 }
 0x84f   :  { %v6311_v14 = vpop.f32.mrf.mxu1  ;;  %v6352_v20 = vpop.f32.mrf.mxu0 }
 0x850   :  { %v6403_v56 = vadd.f32 %v6399_v33, %v9667_v49  ;;  %v8136_v12 = vmul.f32 -1.442695, %v6402_v8  ;;  %v6423_v10 = vadd.f32 %v6419_v50, %v9677_v5  ;;  %v8138_v6 = vmul.f32 -1.442695, %v6422_v30 }
 0x851   :  { %v6312_v58 = vpop.f32.mrf.mxu1  ;;  %v6353_v19 = vpop.f32.mrf.mxu0 }
 0x852   :  { %v8137_v54 = vmul.f32 -1.442695, %v6403_v56  ;;  %9098 = vpow2.f32 %v8136_v12  ;;  %v8139_v4 = vmul.f32 -1.442695, %v6423_v10 }
 0x854   :  { %9100 = vpow2.f32 %v8137_v54 }
 0x855   :  { %9102 = vpow2.f32 %v8138_v6 }
 0x856   :  { %9104 = vpow2.f32 %v8139_v4 }
 0x85f   :  { %v9099_v52 = vpop.eup %9098 }
 0x860   :  { %v6410_v47 = vadd.f32 1.0, %v9099_v52 }
 0x861   :  { %v9101_v34 = vpop.eup %9100 }
 0x862   :  { %v6411_v14 = vadd.f32 1.0, %v9101_v34  ;;  %9106 = vrcp.f32 %v6410_v47  ;;  %v9103_v20 = vpop.eup %9102 }
 0x863   :  { %v9105_v58 = vpop.eup %9104  ;;  %v6430_v44 = vadd.f32 1.0, %v9103_v20  ;;  %v6454_v20 = vrot.slane %v10820_v63, 7 }
 0x864   :  { %9108 = vrcp.f32 %v6411_v14  ;;  %v6431_v33 = vadd.f32 1.0, %v9105_v58 }
 0x865   :  { %9110 = vrcp.f32 %v6430_v44  ;;  %v6455_v44 = vrot.slane %v10822_v7, 7 }
 0x866   :  { %9112 = vrcp.f32 %v6431_v33 }
 0x86f   :  { %v9107_v12 = vpop.eup %9106 }
 0x871   :  { %v9109_v30 = vpop.eup %9108 }
 0x872   :  { %v9111_v34 = vpop.eup %9110 }
 0x873   :  { %v9113_v47 = vpop.eup %9112  ;;  %v6450_v14 = vsub.f32 1.0, %v9111_v34 }
 0x88b   :  { %v6389_v19 = vpop.f32.mrf.mxu1 }
 0x88c   :  { %v6436_v28 = vadd.f32 %v6389_v19, %v9685_v23  ;;  %v6451_v19 = vsub.f32 1.0, %v9113_v47 }
 0x88d   :  { %v6391_v21 = vpop.f32.mrf.mxu1 }
 0x88e   :  { %v6440_v8 = vrot.slane %v6436_v28, 2  ;;  %v6437_v56 = vadd.f32 %v6391_v21, %v9689_v26  ;;  %v6458_v21 = vmul.f32 %v9111_v34, %v6454_v20 }
 0x88f   :  { %v6393_v54 = vpop.f32.mrf.mxu1 }
 0x890   :  { %v6444_v39 = vmul.f32 %v9107_v12, %v6440_v8  ;;  %v6441_v50 = vrot.slane %v6437_v56, 2  ;;  %v6459_v56 = vmul.f32 %v9113_v47, %v6455_v44 }
 0x891   :  { %v6394_v10 = vpop.f32.mrf.mxu1 }
 0x892   :  { %v6446_v6 = vadd.f32 %v6444_v39, %v9696_v41  ;;  %v6445_v4 = vmul.f32 %v9109_v30, %v6441_v50 }
 0x894   :  { %9114 = vtanh.f32 %v6446_v6  ;;  %v6447_v52 = vadd.f32 %v6445_v4, %v9699_v51 }
 0x896   :  { %9116 = vtanh.f32 %v6447_v52 }
 0x8a1   :  { %v9115_v58 = vpop.eup %9114 }
 0x8a2   :  { %v6452_v28 = vmul.f32 %v9115_v58, %v6450_v14 }
 0x8a3   :  { %v9117_v8 = vpop.eup %9116 }
 0x8a4   :  { %v6453_v33 = vmul.f32 %v9117_v8, %v6451_v19  ;;  %v11006_v12 = vadd.f32 %v6458_v21, %v6452_v28 }
 0x8a6   :  { %v11008_v54 = vadd.f32 %v6459_v56, %v6453_v33  ;;  %v6484_v39 = vpack.c.bf16 %v11006_v12, %v11006_v12  ;;  %v7249_v8 = vrot.slane %v11006_v12, 7 }
 0x8a8   :  { %v6485_v50 = vpack.c.bf16 %v11008_v54, %v11008_v54  ;;  %v6464_v63 = vcombine.high %v11006_v12, %v11008_v54  ;;  %v6584_v10 = vrot.slane %v6484_v39, 3 }
 0x8aa   :  { %v6585_v30 = vrot.slane %v6485_v50, 3  ;;  %v6471_v7 = vrot.slane %v6464_v63, %v9707_v46 }
 0x8ac   :  { %7100 = vmatprep.mubr.bf16.mxu0 %v6585_v30  ;;  %7141 = vmatprep.mubr.bf16.mxu1 %v6585_v30  ;;  %v6478_v6 = vrot.slane %v6471_v7, %v9707_v46 }
 0x8ad   :  { %7101 = vmatmul.mubr.bf16.vlgmr.msra.gmra.mxu0 %v6584_v10  ;;  %7142 = vmatmul.mubr.bf16.vlgmr.msra.gmra.mxu1 %v6584_v10 }
 0x8ae   :  { %v6479_v4 = vcombine.high %v6478_v6, %v6478_v6  ;;  %7151 = vmatpush1.bf16.msra.mxu0 %v10831_v37  ;;  %7182 = vmatprep.mubr.bf16.mxu0 %v6585_v30 }
 0x8af   :  { %7152 = vmatprep.subr.bf16.mxu0 %v10835_v3 }
 0x8b0   :  { %6482 = vst.msk [vmem:[#allocation11 + $0x6] ss:$8 sm:$0x3] %vm9390_vm0, %v6479_v4 }
 0x8b2   :  { %7153 = vmatpush1.bf16.msra.mxu0 %v10841_v1 }
 0x8b3   :  { %7154 = vmatprep.subr.bf16.mxu0 %v10846_v53 }
 0x8b6   :  { %7155 = vmatpush1.bf16.msra.mxu0 %v10851_v13 }
 0x8b7   :  { %7156 = vmatprep.subr.bf16.mxu0 %v10854_v55 }
 0x8ba   :  { %7157 = vmatpush1.bf16.msra.mxu0 %v10859_v24 }
 0x8bb   :  { %7158 = vmatprep.subr.bf16.mxu0 %v10862_v29 }
 0x8be   :  { %7159 = vmatpush1.bf16.msra.mxu0 %v10867_v36 }
 0x8bf   :  { %7160 = vmatprep.subr.bf16.mxu0 %v10870_v35 }
 0x8c2   :  { %7161 = vmatpush1.bf16.msra.mxu0 %v10875_v16 }
 0x8c3   :  { %7162 = vmatprep.subr.bf16.mxu0 %v10878_v0 }
 0x8c6   :  { %7163 = vmatpush1.bf16.msra.mxu0 %v10883_v18 }
 0x8c7   :  { %7164 = vmatprep.subr.bf16.mxu0 %v10886_v57 }
 0x8ca   :  { %7165 = vmatpush1.bf16.msra.mxu0 %v10891_v9 }
 0x8cb   :  { %7166 = vmatprep.subr.bf16.mxu0 %v10894_v25 }
 0x8ce   :  { %7167 = vmatpush2.bf16.msra.mxu0 %v10899_v15 }
 0x8cf   :  { %7168 = vmatprep.subr.bf16.mxu0 %v10902_v2 }
 0x8d2   :  { %7169 = vmatpush2.bf16.msra.mxu0 %v10907_v31 }
 0x8d3   :  { %7170 = vmatprep.subr.bf16.mxu0 %v10910_v42 }
 0x8d6   :  { %7171 = vmatpush2.bf16.msra.mxu0 %v10915_v38 }
 0x8d7   :  { %7172 = vmatprep.subr.bf16.mxu0 %v10918_v40 }
 0x8da   :  { %7173 = vmatpush2.bf16.msra.mxu0 %v10923_v59 }
 0x8db   :  { %7174 = vmatprep.subr.bf16.mxu0 %v10926_v27 }
 0x8de   :  { %7175 = vmatpush2.bf16.msra.mxu0 %v10931_v32 }
 0x8df   :  { %7176 = vmatprep.subr.bf16.mxu0 %v10934_v11 }
 0x8e2   :  { %7177 = vmatpush2.bf16.msra.mxu0 %v10939_v22 }
 0x8e3   :  { %7178 = vmatprep.subr.bf16.mxu0 %v10942_v17 }
 0x8e6   :  { %7179 = vmatpush2.bf16.msra.mxu0 %v10947_v60 }
 0x8e7   :  { %7180 = vmatprep.subr.bf16.mxu0 %v10950_v48 }
 0x8ea   :  { %7181 = vmatpush2.bf16.msra.mxu0 %v10955_v62 }
 0x8ed   :  { %7183 = vmatmul.mubr.bf16.vlgmr.msra.gmra.mxu0 %v6584_v10 }
 0x96d   :  { %v7102_v37 = vpop.f32.mrf.mxu0  ;;  %v7143_v3 = vpop.f32.mrf.mxu1 }
 0x96e   :  { %v7193_v36 = vrot.slane %v7102_v37, 1  ;;  %v7213_v9 = vrot.slane %v7143_v3, 1 }
 0x96f   :  { %v7104_v1 = vpop.f32.mrf.mxu0  ;;  %v7145_v53 = vpop.f32.mrf.mxu1 }
 0x970   :  { %v7194_v35 = vrot.slane %v7104_v1, 1  ;;  %v7197_v16 = vadd.f32 %v7193_v36, %v9665_v43  ;;  %v7214_v25 = vrot.slane %v7145_v53, 1  ;;  %v7217_v15 = vadd.f32 %v7213_v9, %v9675_v61 }
 0x971   :  { %v7106_v13 = vpop.f32.mrf.mxu0  ;;  %v7147_v55 = vpop.f32.mrf.mxu1 }
 0x972   :  { %v7198_v0 = vadd.f32 %v7194_v35, %v9667_v49  ;;  %v8236_v18 = vmul.f32 -1.442695, %v7197_v16  ;;  %v7218_v2 = vadd.f32 %v7214_v25, %v9677_v5  ;;  %v8238_v31 = vmul.f32 -1.442695, %v7217_v15 }
 0x973   :  { %v7107_v24 = vpop.f32.mrf.mxu0  ;;  %v7148_v29 = vpop.f32.mrf.mxu1 }
 0x974   :  { %v8237_v57 = vmul.f32 -1.442695, %v7198_v0  ;;  %9118 = vpow2.f32 %v8236_v18  ;;  %v8239_v42 = vmul.f32 -1.442695, %v7218_v2 }
 0x976   :  { %9120 = vpow2.f32 %v8237_v57 }
 0x977   :  { %9122 = vpow2.f32 %v8238_v31 }
 0x978   :  { %9124 = vpow2.f32 %v8239_v42 }
 0x981   :  { %v9119_v38 = vpop.eup %9118 }
 0x982   :  { %v7205_v59 = vadd.f32 1.0, %v9119_v38 }
 0x983   :  { %v9121_v40 = vpop.eup %9120 }
 0x984   :  { %v7206_v43 = vadd.f32 1.0, %v9121_v40  ;;  %9126 = vrcp.f32 %v7205_v59  ;;  %v9123_v49 = vpop.eup %9122 }
 0x985   :  { %v9125_v27 = vpop.eup %9124  ;;  %v7225_v11 = vadd.f32 1.0, %v9123_v49 }
 0x986   :  { %9128 = vrcp.f32 %v7206_v43  ;;  %v7226_v61 = vadd.f32 1.0, %v9125_v27 }
 0x987   :  { %9130 = vrcp.f32 %v7225_v11 }
 0x988   :  { %9132 = vrcp.f32 %v7226_v61 }
 0x991   :  { %v9127_v48 = vpop.eup %9126 }
 0x993   :  { %v9129_v47 = vpop.eup %9128 }
 0x9ad   :  { %v7184_v32 = vpop.f32.mrf.mxu0 }
 0x9ae   :  { %v7231_v22 = vadd.f32 %v7184_v32, %v9685_v23  ;;  %v9131_v23 = vpop.eup %9130 }
 0x9af   :  { %v7186_v17 = vpop.f32.mrf.mxu0  ;;  %v9133_v44 = vpop.eup %9132  ;;  %v7245_v28 = vsub.f32 1.0, %v9131_v23  ;;  %v7253_v50 = vmul.f32 %v9131_v23, %v7249_v8 }
 0x9b0   :  { %v7235_v60 = vrot.slane %v7231_v22, 1  ;;  %v7232_v5 = vadd.f32 %v7186_v17, %v9689_v26  ;;  %v7250_v26 = vrot.slane %v11008_v54, 7  ;;  %v7246_v56 = vsub.f32 1.0, %v9133_v44 }
 0x9b1   :  { %v7188_v62 = vpop.f32.mrf.mxu0 }
 0x9b2   :  { %v7239_v52 = vmul.f32 %v9127_v48, %v7235_v60  ;;  %v7236_v34 = vrot.slane %v7232_v5, 1  ;;  %v7254_v63 = vmul.f32 %v9133_v44, %v7250_v26 }
 0x9b3   :  { %v7189_v14 = vpop.f32.mrf.mxu0 }
 0x9b4   :  { %v7241_v20 = vadd.f32 %v7239_v52, %v9696_v41  ;;  %v7240_v58 = vmul.f32 %v9129_v47, %v7236_v34 }
 0x9b6   :  { %9134 = vtanh.f32 %v7241_v20  ;;  %v7242_v19 = vadd.f32 %v7240_v58, %v9699_v51 }
 0x9b8   :  { %9136 = vtanh.f32 %v7242_v19 }
 0x9c3   :  { %v9135_v21 = vpop.eup %9134 }
 0x9c4   :  { %v7247_v33 = vmul.f32 %v9135_v21, %v7245_v28 }
 0x9c5   :  { %v9137_v39 = vpop.eup %9136 }
 0x9c6   :  { %v7248_v30 = vmul.f32 %v9137_v39, %v7246_v56  ;;  %v7255_v41 = vadd.f32 %v7253_v50, %v7247_v33 }
 0x9c8   :  { %v7256_v7 = vadd.f32 %v7254_v63, %v7248_v30 }
 0x9ca   :  { %v7259_v10 = vcombine.high %v7255_v41, %v7256_v7 }
 0x9cc   :  { %v7266_v51 = vrot.slane %v7259_v10, %v9707_v46 }
 0x9ce   :  { %v7267_v6 = vcombine.high %v7266_v51, %v7266_v51 }
 0x9d0   :  { %v7274_v4 = vrot.slane %v7267_v6, %v9707_v46 }
 0x9d2   :  { %v7275_v37 = vcombine.high %v7274_v4, %v7274_v4 }
 0x9d4   :  { %7278 = vst.msk [vmem:[#allocation11 + $0x7] ss:$8 sm:$0x3] %vm9390_vm0, %v7275_v37 }
 0x9d5   :  { %9260 = shalt.err (!%p9257_p5)
}
 0x9d6   :  { %7289 = dma.vmem_to_hbm [thread:$0]  %s7287_s19, 256, %s11075_s7, [#allocation5]  }
 0x9d7   :  { %9275 = dma.done.wait [#allocation5], 256  }
 0x9d8   :  { %9276 = vsyncadd [#allocation5], 4294967040 }
 0x9d9   :  { %7293 = vsyncpa [#allocation4], 1 }
 0x9da   :  { %7294 = vsyncpa [#allocation9], 1 }
 0x9db   :  { %7295 = vsyncpa [#allocation5], 1 }
 0x9dc   :  { %7296 = vsyncpa [#allocation6], 1 }

</bundles_post_ra>
